<compile_context>
chip_gen: v7x
topology: tpu7x:2x2x1
jax: 0.10.0
libtpu: 0.0.40
codegen_flags: <defaults>
</compile_context>

<pallas_src>
import functools

import jax
import jax.numpy as jnp
from jax.experimental import pallas as pl
from jax.experimental.pallas import tpu as pltpu

NORM_EPS = 1e-12                 # F.normalize default eps
NOISE_VAR = 0.13                 # `variance` in contrastive_learning()


def _vmem_limit_bytes(default=48 * 1024 * 1024):
    """~75% of this chip's physical VMEM (v5e/v6e: 128 MiB, v7x: 64 MiB)."""
    try:
        return int(pltpu.get_tpu_info().vmem_capacity_bytes * 3 // 4)
    except Exception:  # pragma: no cover - conservative fallback
        return default


def _pick_row_tile(n, preferred):
    """Largest 'nice' row tile <= preferred that divides n (falls back to n)."""
    for t in (preferred, 512, 256, 128, 64, 32, 16, 8):
        if t <= preferred and n % t == 0:
            return t
    return n


# ---------------------------------------------------------------------------
# Kernel 1: normalize -> +noise (both views) -> projector -> normalize
# ---------------------------------------------------------------------------
def _project_kernel(x_ref, noise_ref, w1_ref, w2_ref, z_ref, *, noise_std):
    x = x_ref[...]                                            # [tb, D] f32
    tb, d = x.shape

    # F.normalize(x, dim=1): x / max(||x||, eps)  ==  x * rsqrt(max(ss, eps^2))
    ss = jnp.sum(x * x, axis=-1, keepdims=True)
    xn = x * jax.lax.rsqrt(jnp.maximum(ss, NORM_EPS * NORM_EPS))

    # Both views in one stacked LHS: [2, tb, D] -> [2*tb, D]
    noise = noise_ref[...].astype(jnp.float32)                # [2, tb, D]
    pos = (xn + noise_std * noise).reshape(2 * tb, d)

    # projector: Linear(D, D, bias=False) -> ReLU -> Linear(D, P, bias=False)
    # bf16 MXU operands, f32 accumulation.
    h = jnp.dot(pos.astype(jnp.bfloat16), w1_ref[...],
                preferred_element_type=jnp.float32)
    h = jnp.maximum(h, 0.0).astype(jnp.bfloat16)
    z = jnp.dot(h, w2_ref[...], preferred_element_type=jnp.float32)

    # F.normalize(features, dim=1) from info_nce_loss, fused here (row-wise op)
    zs = jnp.sum(z * z, axis=-1, keepdims=True)
    zn = z * jax.lax.rsqrt(jnp.maximum(zs, NORM_EPS * NORM_EPS))
    z_ref[...] = zn.reshape(2, tb, -1).astype(z_ref.dtype)


def simclr_project(x2d, noise, w1, w2, *, row_tile=512):
    """x2d [N, D], noise [2, N, D], w1 [D, D], w2 [D, P] -> unit-norm [2, N, P]."""
    n, d = x2d.shape
    p = w2.shape[1]
    assert noise.shape == (2, n, d)

    tb = _pick_row_tile(n, row_tile)
    grid = (n // tb,)

    # bf16 operands for the MXU + halved weight / noise HBM traffic.
    w1b = w1.astype(jnp.bfloat16)
    w2b = w2.astype(jnp.bfloat16)
    noise_b = noise.astype(jnp.bfloat16)

    flops = 2 * (2 * n) * d * (d + p) + 12 * n * d
    bytes_accessed = 4 * n * d + 2 * (2 * n * d) + 2 * (d * d + d * p) + 4 * (2 * n * p)
    cost = pl.CostEstimate(flops=int(flops), transcendentals=int(3 * n),
                           bytes_accessed=int(bytes_accessed))

    return pl.pallas_call(
        functools.partial(_project_kernel, noise_std=NOISE_VAR ** 0.5),
        out_shape=jax.ShapeDtypeStruct((2, n, p), jnp.float32),
        grid=grid,
        in_specs=[
            pl.BlockSpec((tb, d), lambda i: (i, 0)),          # x row tile
            pl.BlockSpec((2, tb, d), lambda i: (0, i, 0)),    # noise, both views
            pl.BlockSpec((d, d), lambda i: (0, 0)),           # w1: VMEM-resident
            pl.BlockSpec((d, p), lambda i: (0, 0)),           # w2: VMEM-resident
        ],
        out_specs=pl.BlockSpec((2, tb, p), lambda i: (0, i, 0)),
        compiler_params=pltpu.CompilerParams(
            dimension_semantics=("parallel",),
            vmem_limit_bytes=_vmem_limit_bytes()),
        cost_estimate=cost,
    )(x2d, noise_b, w1b, w2b)


# ---------------------------------------------------------------------------
# Kernel 2: InfoNCE / NT-Xent per-row loss (row-tiled, parallel partials)
# ---------------------------------------------------------------------------
def _info_nce_kernel(f_ref, fpart_ref, ft_ref, loss_ref, *, row_tile, inv_temp):
    i = pl.program_id(0)

    f = f_ref[...]                                            # [tb, P] f32
    # sim[r, c] = <feat_r, feat_c> / T ; stationary operand pre-transposed [P, M]
    sim = jnp.dot(f, ft_ref[...], preferred_element_type=jnp.float32) * inv_temp

    rows = jax.lax.broadcasted_iota(jnp.int32, sim.shape, 0) + i * row_tile
    cols = jax.lax.broadcasted_iota(jnp.int32, sim.shape, 1)
    masked = jnp.where(rows == cols, jnp.float32(-1e30), sim)  # drop self-sim

    m = jnp.max(masked, axis=-1, keepdims=True)
    lse = m + jnp.log(jnp.sum(jnp.exp(masked - m), axis=-1, keepdims=True))

    # positive(i) = <feat_i, feat_{(i+N) mod 2N}> / T via the partner row tile
    pos = jnp.sum(f * fpart_ref[...], axis=-1, keepdims=True) * inv_temp

    # CrossEntropy with target class 0 on [positive | negatives] == lse - pos
    loss_ref[...] = lse - pos


def simclr_info_nce_loss(features, n_per_view, temperature, *, row_tile=256):
    """features [M, P] (unit-norm rows, M = 2*n_per_view) -> per-row loss [M, 1]."""
    m, p = features.shape
    assert m == 2 * n_per_view

    tb = _pick_row_tile(n_per_view, row_tile)   # tb | N  =>  tb | 2N
    n_tiles = m // tb
    half = n_per_view // tb                     # tile offset of the positive pair

    feats_t = features.T                        # one-time XLA transpose

    cost = pl.CostEstimate(flops=int(2 * m * m * p + 2 * m * p + 6 * m * m),
                           transcendentals=int(m * m + m),
                           bytes_accessed=int(4 * (3 * m * p + m)))

    return pl.pallas_call(
        functools.partial(_info_nce_kernel, row_tile=tb,
                          inv_temp=1.0 / float(temperature)),
        out_shape=jax.ShapeDtypeStruct((m, 1), jnp.float32),
        grid=(n_tiles,),
        in_specs=[
            pl.BlockSpec((tb, p), lambda i: (i, 0)),                       # query tile
            pl.BlockSpec((tb, p), lambda i: ((i + half) % n_tiles, 0)),    # partner tile
            pl.BlockSpec((p, m), lambda i: (0, 0)),                        # f.T resident
        ],
        out_specs=pl.BlockSpec((tb, 1), lambda i: (i, 0)),
        compiler_params=pltpu.CompilerParams(
            dimension_semantics=("parallel",),
            vmem_limit_bytes=_vmem_limit_bytes()),
        cost_estimate=cost,
    )(features, features, feats_t)


# ---------------------------------------------------------------------------
# Full SimCLR.forward
# ---------------------------------------------------------------------------
def simclr_loss_pallas(A, w1, w2, noise, temperature=0.5):
    """A [x, y, z]; w1 [z, z], w2 [z, P] (Linear weights pre-transposed to
    [in, out]); noise [2, x*y, z] ~ N(0, 1). Returns the scalar SimCLR loss."""
    x, y, z = A.shape
    n = x * y
    b2d = A.reshape(n, z)
    feats = simclr_project(b2d, noise, w1, w2)            # [2, N, P], unit rows
    feats = feats.reshape(2 * n, -1)                      # == cat([z_i, z_j], 0)
    per_row = simclr_info_nce_loss(feats, n_per_view=n, temperature=temperature)
    return jnp.mean(per_row)                              # tiny reduction in XLA


def simclr_loss_ref(A, w1, w2, noise, temperature=0.5, mxu_bf16=False):
    """Pure-JAX mirror of SimCLR.forward (same noise, n_views=2).
    mxu_bf16=True emulates the kernel's bf16-operand / f32-accum matmuls."""
    x, y, z = A.shape
    n = x * y
    b = A.reshape(n, z)
    bn = b / jnp.maximum(jnp.linalg.norm(b, axis=1, keepdims=True), NORM_EPS)
    std = NOISE_VAR ** 0.5

    if mxu_bf16:
        w1m, w2m = w1.astype(jnp.bfloat16), w2.astype(jnp.bfloat16)

        def proj(t):
            h = jnp.dot(t.astype(jnp.bfloat16), w1m,
                        preferred_element_type=jnp.float32)
            h = jnp.maximum(h, 0.0)
            return jnp.dot(h.astype(jnp.bfloat16), w2m,
                           preferred_element_type=jnp.float32)
    else:
        def proj(t):
            h = jnp.maximum(jnp.dot(t, w1, precision="highest"), 0.0)
            return jnp.dot(h, w2, precision="highest")

    z_i = proj(bn + std * noise[0])
    z_j = proj(bn + std * noise[1])
    f = jnp.concatenate([z_i, z_j], axis=0)
    f = f / jnp.maximum(jnp.linalg.norm(f, axis=1, keepdims=True), NORM_EPS)
    sim = jnp.dot(f, f.T, precision="highest")
    m_tot = f.shape[0]
    idx = jnp.arange(m_tot)
    positives = sim[idx, (idx + n) % m_tot] / temperature
    logits = jnp.where(jnp.eye(m_tot, dtype=bool), -jnp.inf, sim / temperature)
    mx = jnp.max(logits, axis=1)
    lse = mx + jnp.log(jnp.sum(jnp.exp(logits - mx[:, None]), axis=1))
    # CrossEntropy(target=0) where each logits row is [positive, negatives...]
    return jnp.mean(lse - positives)


if __name__ == "__main__":
    key = jax.random.PRNGKey(0)
    # A: [x, y, z] -> B: [x*y, z]. N = 1024 rows per view, M = 2048 total, so
    # both grids have >1 step and all blocks are (8, 128)-aligned.
    X_DIM, Y_DIM, FEAT_DIM, PROJ_DIM = 8, 128, 128, 128
    TEMPERATURE = 0.5

    k_a, k_n, k_w1, k_w2 = jax.random.split(key, 4)
    A = jax.random.normal(k_a, (X_DIM, Y_DIM, FEAT_DIM), jnp.float32)
    # Noise is carried in bf16 (kernel 1's largest HBM stream; perf-review item).
    noise = jax.random.normal(
        k_n, (2, X_DIM * Y_DIM, FEAT_DIM), jnp.float32).astype(jnp.bfloat16)
    # nn.Linear weights, stored pre-transposed to [in, out]
    w1 = jax.random.normal(k_w1, (FEAT_DIM, FEAT_DIM), jnp.float32) * (FEAT_DIM ** -0.5)
    w2 = jax.random.normal(k_w2, (FEAT_DIM, PROJ_DIM), jnp.float32) * (FEAT_DIM ** -0.5)

    loss = simclr_loss_pallas(A, w1, w2, noise, temperature=TEMPERATURE)
    loss = jax.block_until_ready(loss)

    noise_f32 = noise.astype(jnp.float32)
    # Tight check vs a reference that applies the same bf16-operand matmuls.
    ref_bf16 = simclr_loss_ref(A, w1, w2, noise_f32, TEMPERATURE, mxu_bf16=True)
    # Looser sanity check vs the exact f32 PyTorch-semantics reference.
    ref_f32 = simclr_loss_ref(A, w1, w2, noise_f32, TEMPERATURE, mxu_bf16=False)

    assert loss.shape == ()
    assert bool(jnp.isfinite(loss))
    assert jnp.allclose(loss, ref_bf16, atol=5e-3, rtol=5e-3), (float(loss), float(ref_bf16))
    assert jnp.allclose(loss, ref_f32, atol=5e-2, rtol=5e-2), (float(loss), float(ref_f32))

    print("KERNEL_OK")
</pallas_src>

<mosaic_0001>
module attributes {stable_mosaic.version = 11 : i64} {
  func.func @_project_kernel(%arg0: i32, %arg1: memref<512x128xf32, #tpu.memory_space<vmem>>, %arg2: memref<2x512x128xbf16, #tpu.memory_space<vmem>>, %arg3: memref<128x128xbf16, #tpu.memory_space<vmem>>, %arg4: memref<128x128xbf16, #tpu.memory_space<vmem>>, %arg5: memref<2x512x128xf32, #tpu.memory_space<vmem>>) attributes {dimension_semantics = [#tpu.dimension_semantics<parallel>], iteration_bounds = array<i64: 2>, scalar_prefetch = 0 : i64, scratch_operands = 0 : i64, tpu.core_type = #tpu.core_type<tc>, window_params = [{transform_indices = @transform_0, window_bounds = array<i64: 512, 128>}, {transform_indices = @transform_1, window_bounds = array<i64: 2, 512, 128>}, {pipeline_mode = #tpu.pipeline_mode<synchronous>, transform_indices = @transform_2, window_bounds = array<i64: 128, 128>}, {pipeline_mode = #tpu.pipeline_mode<synchronous>, transform_indices = @transform_3, window_bounds = array<i64: 128, 128>}, {transform_indices = @transform_4, window_bounds = array<i64: 2, 512, 128>}]} {
    %c0 = arith.constant 0 : index
    %c0_0 = arith.constant 0 : index
    %0 = vector.load %arg1[%c0, %c0_0] : memref<512x128xf32, #tpu.memory_space<vmem>>, vector<512x128xf32>
    %1 = arith.mulf %0, %0 : vector<512x128xf32>
    %cst = arith.constant dense<0.000000e+00> : vector<512xf32>
    %2 = vector.multi_reduction <add>, %1, %cst [1] : vector<512x128xf32> to vector<512xf32>
    %3 = vector.shape_cast %2 : vector<512xf32> to vector<512x1xf32>
    %cst_1 = arith.constant 1.000000e-24 : f32
    %4 = vector.broadcast %cst_1 : f32 to vector<512x1xf32>
    %5 = arith.maximumf %3, %4 : vector<512x1xf32>
    %6 = math.rsqrt %5 : vector<512x1xf32>
    %7 = vector.broadcast %6 : vector<512x1xf32> to vector<512x128xf32>
    %8 = arith.mulf %0, %7 : vector<512x128xf32>
    %c0_2 = arith.constant 0 : index
    %c0_3 = arith.constant 0 : index
    %c0_4 = arith.constant 0 : index
    %9 = vector.load %arg2[%c0_2, %c0_3, %c0_4] : memref<2x512x128xbf16, #tpu.memory_space<vmem>>, vector<2x512x128xbf16>
    %10 = arith.extf %9 : vector<2x512x128xbf16> to vector<2x512x128xf32>
    %cst_5 = arith.constant 0.360555142 : f32
    %11 = vector.broadcast %cst_5 : f32 to vector<2x512x128xf32>
    %12 = arith.mulf %11, %10 : vector<2x512x128xf32>
    %13 = vector.shape_cast %8 : vector<512x128xf32> to vector<1x512x128xf32>
    %14 = vector.broadcast %13 : vector<1x512x128xf32> to vector<2x512x128xf32>
    %15 = arith.addf %14, %12 : vector<2x512x128xf32>
    %16 = vector.shape_cast %15 : vector<2x512x128xf32> to vector<1024x128xf32>
    %17 = arith.truncf %16 : vector<1024x128xf32> to vector<1024x128xbf16>
    %c0_6 = arith.constant 0 : index
    %c0_7 = arith.constant 0 : index
    %18 = vector.load %arg3[%c0_6, %c0_7] : memref<128x128xbf16, #tpu.memory_space<vmem>>, vector<128x128xbf16>
    %cst_8 = arith.constant dense<0.000000e+00> : vector<1024x128xf32>
    %19 = tpu.matmul %17, %18, %cst_8 {dimension_numbers = #tpu.dot_dimension_numbers<[1], [0], [0], [1], [0, 0, 1, 1], [], []>} : vector<1024x128xbf16>, vector<128x128xbf16>, vector<1024x128xf32> -> vector<1024x128xf32>
    %cst_9 = arith.constant 0.000000e+00 : f32
    %20 = vector.broadcast %cst_9 : f32 to vector<1024x128xf32>
    %21 = arith.maximumf %19, %20 : vector<1024x128xf32>
    %22 = arith.truncf %21 : vector<1024x128xf32> to vector<1024x128xbf16>
    %c0_10 = arith.constant 0 : index
    %c0_11 = arith.constant 0 : index
    %23 = vector.load %arg4[%c0_10, %c0_11] : memref<128x128xbf16, #tpu.memory_space<vmem>>, vector<128x128xbf16>
    %cst_12 = arith.constant dense<0.000000e+00> : vector<1024x128xf32>
    %24 = tpu.matmul %22, %23, %cst_12 {dimension_numbers = #tpu.dot_dimension_numbers<[1], [0], [0], [1], [0, 0, 1, 1], [], []>} : vector<1024x128xbf16>, vector<128x128xbf16>, vector<1024x128xf32> -> vector<1024x128xf32>
    %25 = arith.mulf %24, %24 : vector<1024x128xf32>
    %cst_13 = arith.constant dense<0.000000e+00> : vector<1024xf32>
    %26 = vector.multi_reduction <add>, %25, %cst_13 [1] : vector<1024x128xf32> to vector<1024xf32>
    %27 = vector.shape_cast %26 : vector<1024xf32> to vector<1024x1xf32>
    %cst_14 = arith.constant 1.000000e-24 : f32
    %28 = vector.broadcast %cst_14 : f32 to vector<1024x1xf32>
    %29 = arith.maximumf %27, %28 : vector<1024x1xf32>
    %30 = math.rsqrt %29 : vector<1024x1xf32>
    %31 = vector.broadcast %30 : vector<1024x1xf32> to vector<1024x128xf32>
    %32 = arith.mulf %24, %31 : vector<1024x128xf32>
    %33 = vector.shape_cast %32 : vector<1024x128xf32> to vector<2x512x128xf32>
    %c0_15 = arith.constant 0 : index
    %c0_16 = arith.constant 0 : index
    %c0_17 = arith.constant 0 : index
    %34 = vector.load %arg5[%c0_15, %c0_16, %c0_17] : memref<2x512x128xf32, #tpu.memory_space<vmem>>, vector<2x512x128xf32>
    tpu.vector_store %arg5[%c0_15, %c0_16, %c0_17], %33 {strides = array<i32>} : memref<2x512x128xf32, #tpu.memory_space<vmem>>, vector<2x512x128xf32>,
    return
  }
  func.func @transform_0(%arg0: i32) -> (i32, i32) {
    %c0_i32 = arith.constant 0 : i32
    %c0_i32_0 = arith.constant 0 : i32
    return %arg0, %c0_i32 : i32, i32
  }
  func.func @transform_1(%arg0: i32) -> (i32, i32, i32) {
    %c0_i32 = arith.constant 0 : i32
    %c0_i32_0 = arith.constant 0 : i32
    %c0_i32_1 = arith.constant 0 : i32
    return %c0_i32, %arg0, %c0_i32_0 : i32, i32, i32
  }
  func.func @transform_2(%arg0: i32) -> (i32, i32) {
    %c0_i32 = arith.constant 0 : i32
    %c0_i32_0 = arith.constant 0 : i32
    %c0_i32_1 = arith.constant 0 : i32
    return %c0_i32, %c0_i32_0 : i32, i32
  }
  func.func @transform_3(%arg0: i32) -> (i32, i32) {
    %c0_i32 = arith.constant 0 : i32
    %c0_i32_0 = arith.constant 0 : i32
    %c0_i32_1 = arith.constant 0 : i32
    return %c0_i32, %c0_i32_0 : i32, i32
  }
  func.func @transform_4(%arg0: i32) -> (i32, i32, i32) {
    %c0_i32 = arith.constant 0 : i32
    %c0_i32_0 = arith.constant 0 : i32
    %c0_i32_1 = arith.constant 0 : i32
    return %c0_i32, %arg0, %c0_i32_0 : i32, i32, i32
  }
}

</mosaic_0001>

<bundles_post_ra>
// kernel: tpu_custom_call.1
= control target key start
LH: loop header
LB: loop body
LE: loop exit
PB: predicated region body
PF: predicated region fallthrough
CT: control target
= control target key end

     0   :  { %9 = vsyncpa [#allocation3], 0  ;;  %s7216_s0 = inlined_call_operand.hbm [shape: f32[1024,128], index: 0, kind: input, shape index: {}]   ;;  %s7217_s1 = inlined_call_operand.hbm [shape: bf16[2,1024,128], index: 1, kind: input, shape index: {}]   ;;  %s7218_s2 = inlined_call_operand.hbm [shape: bf16[128,128], index: 2, kind: input, shape index: {}]   ;;  %s7219_s3 = inlined_call_operand.hbm [shape: bf16[128,128], index: 3, kind: input, shape index: {}]   ;;  %s7220_s4 = inlined_call_operand.hbm [shape: f32[2,1024,128], index: 4, kind: output, shape index: {}]  }
   0x1   :  { %11 = vsyncpa [#allocation3 + $0x1], 0 }
   0x2   :  { %12 = vsyncpa [#allocation6], 0 }
   0x3   :  { %14 = vsyncpa [#allocation6 + $0x1], 0 }
   0x4   :  { %15 = vsyncpa [#allocation9], 0 }
   0x5   :  { %16 = vsyncpa [#allocation4], 0 }
   0x6   :  { %18 = vsyncpa [#allocation4 + $0x1], 0  ;;  %s5322_s15 = smov 0   ;;  %s5324_s16 = smov 0  }
   0x7   :  { %s5326_s17 = smov 0   ;;  %s5328_s18 = smov 0  }
   0x8 LB: > { %s5343_s19 = sadd.s32 4294967295, %s5276_s18   ;;  %s3802_s20 = sadd.s32 4294967294, %s5276_s18   ;;  %s5276_s18 = sphi %s5328_s18, %s7498_s18   ;;  %s5272_s17 = sphi %s5326_s17, %s7497_s17   ;;  %s5268_s16 = sphi %s5324_s16, %s7496_s16   ;;  %s5264_s15 = sphi %s5322_s15, %s7495_s15  }
   0x9   : > { %s5347_s21 = sadd.s32 1, %s5276_s18   ;;  %s31_s22 = sadd.s32 1, %s5272_s17 }
   0xa   : > { %s28_s23 = ssub.s32 %s5276_s18, %s5347_s21  ;;  %p38_p0 = scmp.ne.s32.totalorder %s5272_s17, %s5268_s16 }
   0xb   : > { %p29_p1 = scmp.eq.s32.totalorder %s28_s23, 0  ;;  %p39_p2 = scmp.eq.s32.totalorder %s5276_s18, 0 }
   0xc   : > { %p44_p3 = scmp.ne.s32.totalorder %s5268_s16, %s5264_s15  ;;  %p7221_p4 = scmp.eq.s32.totalorder %s5343_s19, 0 }
   0xd   : > { %s5359_s24 = scalar_select %p29_p1, %s5272_s17, %s31_s22  }
   0xe   : > { %p5361_p5 = por %p39_p2, %p38_p0  ;;  %p5367_p6 = por %p7221_p4, %p44_p3 }
   0xf   : > { %p136_p7 = scmp.eq.s32.totalorder %s5343_s19, 1  ;;  %p142_p8 = scmp.eq.s32.totalorder %s3802_s20, 1 }
  0x10   : > { %s7281_s25 = scalar_select %p5361_p5, 1, 0 }
  0x11   : > { %s7282_s26 = scalar_select %p5367_p6, 1, 0 }
  0x12   : > { %p3803_p9 = scmp.ge.s32.totalorder %s5276_s18, 1  ;;  %p149_p10 = scmp.lt.s32.totalorder %s5276_s18, 3 }
  0x13   : > { %p5374_p11 = por %p136_p7, %p38_p0  ;;  %p5378_p12 = por %p142_p8, %p44_p3 }
  0x14   : > { %p5382_p13 = pnand %p3803_p9, %p149_p10  ;;  %s5278_s30 = smov [#allocation7]  }
  0x15   : > { %s7283_s27 = scalar_select %p5374_p11, 1, 0 }
  0x16   : > { %s7284_s28 = scalar_select %p5378_p12, 1, 0 }
  0x17   : > { %s7285_s29 = scalar_select %p5382_p13, 1, 0 }
  0x18   : > { %p4623_p1 = pneg %p5382_p13  ;;  %s161_s5 = sshll.u32 %s5278_s30, 4  ;;  %s162_s5 = int_to_ptr.vmem [resolvable:$true] %s161_s5 }
  0x19   : > { %s5279_s7 = smov [#allocation8]   ;;  %s5142_s11 = scalar_lea.hbm %s7218_s2, 1024 }
  0x1a   : > { %p5390_p2 = pnand %p4623_p1, %p7221_p4  ;;  %s174_s8 = sshll.u32 %s5279_s7, 4  ;;  %s5394_s8 = int_to_ptr.vmem [resolvable:$true] %s174_s8 }
  0x1b   : > { %p5143_p0 = scmp.ne.s32.totalorder %s7218_s2, %s5142_s11  ;;  %p5149_p9 = scmp.lt.u32.totalorder %s5142_s11, %s7218_s2 }
  0x1c   : > { %p5144_p3 = pneg %p5390_p2 }
  0x1e   : > { %p5145_p7 = pnand %p5144_p3, %p5143_p0 }
  0x20   : > { %p5146_p8 = pneg %p5145_p7 }
  0x22   : > { %p5151_p10 = pnand %p5149_p9, %p5146_p8 }
  0x24   : > { %5154 = shalt.err (!%p5151_p10)
}
  0x25   : > { %s5155_s22 = scalar_lea.vmem %s162_s5, 1024  ;;  %p5163_p11 = scmp.lt.s32.totalorder %s162_s5, %s162_s5 }
  0x26   : > { %p5156_p1 = scmp.ne.s32.totalorder %s162_s5, %s5155_s22  ;;  %p5164_p6 = scmp.lt.s32.totalorder %s5155_s22, %s5155_s22 }
  0x28   : > { %p5158_p4 = pnand %p5156_p1, %p5144_p3  ;;  %p5165_p13 = por %p5164_p6, %p5163_p11 }
  0x2a   : > { %p5159_p12 = pneg %p5158_p4 }
  0x2c   : > { %p5166_p5 = pnand %p5165_p13, %p5159_p12 }
  0x2e   : > { %5169 = shalt.err (!%p5166_p5)
}
  0x2f   : > { %s5280_s23 = smov 64   ;;  %s5281_s30 = smov 4  }
  0x30   : > { %4626 = dma.hbm_to_vmem [thread:$0]  (!%p5390_p2), %s7218_s2, 1024, %s162_s5, [#allocation6], %s5280_s23, %s5280_s23, %s5281_s30  }
  0x31   : > { %s5170_s12 = scalar_lea.hbm %s7219_s3, 1024 }
  0x32   : > { %p5171_p4 = scmp.ne.s32.totalorder %s7219_s3, %s5170_s12  ;;  %p5177_p11 = scmp.lt.u32.totalorder %s5170_s12, %s7219_s3 }
  0x34   : > { %p5173_p5 = pnand %p5171_p4, %p5144_p3 }
  0x36   : > { %p5174_p6 = pneg %p5173_p5 }
  0x38   : > { %p5179_p12 = pnand %p5177_p11, %p5174_p6 }
  0x3a   : > { %5182 = shalt.err (!%p5179_p12)
}
  0x3b   : > { %s5183_s5 = scalar_lea.vmem %s5394_s8, 1024  ;;  %p5191_p8 = scmp.lt.s32.totalorder %s5394_s8, %s5394_s8 }
  0x3c   : > { %p5184_p13 = scmp.ne.s32.totalorder %s5394_s8, %s5183_s5  ;;  %p5192_p9 = scmp.lt.s32.totalorder %s5183_s5, %s5183_s5 }
  0x3e   : > { %p5186_p0 = pnand %p5184_p13, %p5144_p3  ;;  %p5193_p10 = por %p5192_p9, %p5191_p8 }
  0x40   : > { %p5187_p7 = pneg %p5186_p0 }
  0x42   : > { %p5194_p1 = pnand %p5193_p10, %p5187_p7 }
  0x44   : > { %5197 = shalt.err (!%p5194_p1)
}
  0x45   : > { %4629 = dma.hbm_to_vmem [thread:$0]  (!%p5390_p2), %s7219_s3, 1024, %s5394_s8, [#allocation9], %s5280_s23, %s5280_s23, %s5281_s30  }
  0x46   : > { %p3806_p4 = scmp.ge.s32.totalorder %s5276_s18, 2 }
  0x47   : > { %s188_s10 = sand.u32 (!%p3806_p4), 1, %s5272_s17   ;;  %s3842_s11 = sshll.u32 (!%p3806_p4), %s5276_s18, 13 }
  0x48   : > { %184 = sbr.rel (%p3806_p4) target bundleno = 110 (0x6e), region = 24  ;;  %s5448_s12 = sshll.u32 (!%p3806_p4), %s188_s10, 9 }
  0x49   : > { %s5453_s6 = scalar_lea.hbm (!%p3806_p4), %s7216_s0, %s3842_s11  ;;  %s192_s8 = scalar_lea.vmem (!%p3806_p4), [#allocation2], %s5448_s12 }
  0x4a   : > { %s199_s23 = sshll.u32 (!%p3806_p4), %s192_s8, 4  ;;  %s5458_s30 = scalar_lea.sflag (!%p3806_p4), [#allocation3], %s188_s10  ;;  %s5456_s23 = int_to_ptr.vmem [resolvable:$true] %s199_s23 }
  0x4b   : > { %s5198_s20 = scalar_lea.hbm (!%p3806_p4), %s5453_s6, 8192  ;;  %p7287_p3 = scmp.ne.s32.totalorder (!%p3806_p4), %s7281_s25, 0 }
  0x4c   : > { %p5199_p2 = scmp.ne.s32.totalorder (!%p3806_p4), %s5453_s6, %s5198_s20  ;;  %s5202_s7 = scalar_lea.hbm (!%p3806_p4), %s7216_s0, 16384 }
  0x4d   : > { %p5203_p11 = scmp.lt.u32.totalorder (!%p3806_p4), %s5453_s6, %s7216_s0  ;;  %p5204_p12 = scmp.lt.u32.totalorder (!%p3806_p4), %s5202_s7, %s5198_s20 }
  0x4e   : > { %p5200_p5 = pnand (!%p3806_p4), %p5199_p2, %p7287_p3  ;;  %p5206_p0 = scmp.lt.u32.totalorder (!%p3806_p4), %s5198_s20, %s5453_s6 }
  0x4f   : > { %p5205_p13 = por %p5204_p12, %p5203_p11 }
  0x50   : > { %p5201_p6 = pneg %p5200_p5 }
  0x51   : > { %p5207_p7 = por %p5206_p0, %p5205_p13 }
  0x53   : > { %p5208_p8 = pnand %p5207_p7, %p5201_p6 }
  0x55   : > { %5211 = shalt.err (!%p5208_p8)
}
  0x56   : > { %s5212_s10 = scalar_lea.vmem %s5456_s23, 8192  ;;  %s5282_s13 = smov [#allocation2]  }
  0x57   : > { %p5213_p9 = scmp.ne.s32.totalorder %s5456_s23, %s5212_s10  ;;  %s5216_s14 = sshll.u32 %s5282_s13, 4  ;;  %s5217_s14 = int_to_ptr.vmem [resolvable:$false] %s5216_s14 }
  0x58   : > { %s5218_s8 = scalar_lea.vmem %s5217_s14, 16384  ;;  %p5219_p2 = scmp.lt.s32.totalorder %s5456_s23, %s5217_s14 }
  0x59   : > { %p5214_p10 = pnand %p5213_p9, %p7287_p3  ;;  %p5220_p5 = scmp.lt.s32.totalorder %s5218_s8, %s5212_s10 }
  0x5b   : > { %p5215_p1 = pneg %p5214_p10  ;;  %p5221_p11 = por %p5220_p5, %p5219_p2 }
  0x5d   : > { %p5222_p12 = pnand %p5221_p11, %p5215_p1 }
  0x5f   : > { %5225 = shalt.err (!%p5222_p12)
}
  0x60   : > { %s5283_s20 = smov 128   ;;  %s5284_s22 = smov 8  }
  0x61   : > { %4600 = dma.hbm_to_vmem [thread:$0]  (%p7287_p3), %s5453_s6, 8192, %s5456_s23, %s5458_s30, %s5283_s20, %s5283_s20, %s5284_s22  }
  0x62   : > { %s209_s5 = sand.u32 1, %s5276_s18   ;;  %s3843_s7 = sshll.u32 %s5276_s18, 12 }
  0x63   : > { %s4601_s9 = scalar_select %p7287_p3, [#allocation0], [#allocation15] }
  0x64   : > { %s213_s11 = scalar_lea.vmem [#allocation5], %s5448_s12  ;;  %s5285_s14 = smov 8192  }
  0x65   : > { %s232_s10 = sshll.u32 %s213_s11, 4  ;;  %s224_s13 = sld [smem:[%s4601_s9]]   ;;  %s233_s10 = int_to_ptr.vmem [resolvable:$true] %s232_s10 }
  0x66   : > { %4602 = sst [smem:[#allocation12]] (%p7287_p3), %s5285_s14  ;;  %s219_s30 = scalar_lea.hbm %s7217_s1, %s3843_s7 }
  0x67   : > { %s5286_s8 = smov 4096   ;;  %s5287_s20 = smov 64  }
  0x68   : > { %4603 = sst [smem:[#allocation12 + $0x1]] (%p7287_p3), %s5286_s8  ;;  %s5288_s22 = smov 4  }
  0x69   : > { %4604 = sst [smem:[#allocation12 + $0x2]] (%p7287_p3), %s5287_s20  ;;  %s210_s11 = scalar_lea.sflag [#allocation6], %s209_s5 }
  0x6a   : > { %4605 = sst [smem:[#allocation12 + $0x3]] (%p7287_p3), %s5287_s20  ;;  %s5289_s14 = smov [#allocation11]  }
  0x6b   : > { %4606 = sst [smem:[#allocation12 + $0x4]] (%p7287_p3), %s5287_s20  ;;  %s3813_s12 = sshll.u32 %s224_s13, 26 }
  0x6c   : > { %4607 = sst [smem:[#allocation12 + $0x5]] (%p7287_p3), %s5288_s22  ;;  %s3814_s9 = sadd.s32 134217728, %s3813_s12 }
  0x6d   : > { %4608 = dma.general (%p7287_p3), %s219_s30, 8192, %s233_s10, %s210_s11, %s5289_s14, [#allocation12], %s3814_s9, 0  }
  0x6e PF: > { %p7288_p6 = scmp.ne.s32.totalorder %s7285_s29, 0 }
  0x70   : > { %257 = sbr.rel (%p7288_p6) target bundleno = 1161 (0x489), region = 36 }
  0x77   : > { %s5507_s7 = sand.u32 1, %s5268_s16   ;;  %p7289_p13 = scmp.ne.s32.totalorder %s7282_s26, 0 }
  0x78   : > { %s3816_s6 = sshll.u32 %s5507_s7, 9  ;;  %s260_s13 = scalar_lea.sflag [#allocation3], %s5507_s7 }
  0x79   : > { %s5511_s23 = scalar_lea.vmem [#allocation2], %s3816_s6 }
  0x7a   : > { %5243 = dma.done.wait (%p7289_p13), %s260_s13, 8192  }
  0x7b   : > { %5245 = vsyncadd (%p7289_p13), %s260_s13, 4294959104  ;;  %s268_s25 = sand.u32 1, %s5343_s19   ;;  %s5518_s5 = scalar_lea.vmem [#allocation5], %s3816_s6 }
  0x7c   : > { %s269_s29 = scalar_lea.sflag [#allocation6], %s268_s25 }
  0x7d   : > { %5247 = dma.done.wait (%p7289_p13), %s269_s29, 8192  }
  0x7e   : > { %5249 = vsyncadd (%p7289_p13), %s269_s29, 4294959104  ;;  %p7290_p3 = scmp.eq.s32.totalorder %s5343_s19, 0 }
  0x80   : > { %5251 = dma.done.wait (%p7290_p3), [#allocation6], 1024   ;;  %p7291_p0 = pmov %p7290_p3 }
  0x82   : > { %5253 = vsyncadd (%p7291_p0), [#allocation6], 4294966272  ;;  %p7292_p7 = pmov %p7291_p0 }
  0x83   : > { %p7293_p8 = pmov %p7291_p0 }
  0x84   : > { %5255 = dma.done.wait (%p7292_p7), [#allocation9], 1024  }
  0x85   : > { %5257 = vsyncadd (%p7293_p8), [#allocation9], 4294966272  ;;  %v5533_v0 = vld [vmem:[%s5511_s23 + $0x10] sm:$0xff]  ;;  %v5536_v1 = vld [vmem:[%s5511_s23] sm:$0xff]  ;;  %s3820_s26 = sshll.u32 %s5507_s7, 10  ;;  %s3645_s30 = scalar_lea.sflag [#allocation4], %s5507_s7 }
  0x86   : > { %v5539_v2 = vld [vmem:[%s5511_s23 + $0x18] sm:$0xff]  ;;  %v380_v3 = vmul.f32 %v5533_v0, %v5533_v0  ;;  %v378_v4 = vmul.f32 %v5536_v1, %v5536_v1  ;;  %v5546_v5 = vld [vmem:[%s5511_s23 + $0x8] sm:$0xff]  ;;  %v5556_v9 = vld [vmem:[%s5511_s23 + $0x20] sm:$0xff]  ;;  %s6729_s10 = scalar_lea.vmem [#allocation10], %s3820_s26 }
  0x87   : > { %v381_v6 = vmul.f32 %v5539_v2, %v5539_v2  ;;  %v379_v7 = vmul.f32 %v5546_v5, %v5546_v5  ;;  %v5553_v8 = vld [vmem:[%s5511_s23 + $0x28] sm:$0xff]  ;;  %v382_v11 = vmul.f32 %v5556_v9, %v5556_v9  ;;  %v5563_v12 = vld [vmem:[%s5511_s23 + $0x38] sm:$0xff]  ;;  %v5566_v13 = vld [vmem:[%s5511_s23 + $0x30] sm:$0xff] }
  0x88   : > { %446 = vadd.xlane.f32.xlu1 %v380_v3  ;;  %442 = vadd.xlane.f32.xlu0 %v378_v4  ;;  %v383_v10 = vmul.f32 %v5553_v8, %v5553_v8  ;;  %v385_v14 = vmul.f32 %v5563_v12, %v5563_v12  ;;  %v384_v15 = vmul.f32 %v5566_v13, %v5566_v13  ;;  %v5573_v16 = vld [vmem:[%s5511_s23 + $0x48] sm:$0xff]  ;;  %v5576_v17 = vld [vmem:[%s5511_s23 + $0x40] sm:$0xff]  ;;  %v5583_v20 = vld [vmem:[%s5511_s23 + $0x58] sm:$0xff] }
  0x89   : > { %v387_v18 = vmul.f32 %v5573_v16, %v5573_v16  ;;  %v386_v19 = vmul.f32 %v5576_v17, %v5576_v17  ;;  %v324_v21 = vld [vmem:[%s5511_s23 + $0x50] sm:$0xff]  ;;  %v389_v22 = vmul.f32 %v5583_v20, %v5583_v20  ;;  %v327_v24 = vld [vmem:[%s5511_s23 + $0x68] sm:$0xff]  ;;  %v326_v25 = vld [vmem:[%s5511_s23 + $0x60] sm:$0xff] }
  0x8a   : > { %v388_v23 = vmul.f32 %v324_v21, %v324_v21  ;;  %v329_v26 = vld [vmem:[%s5511_s23 + $0x78] sm:$0xff]  ;;  %v4689_v27 = vld [vmem:[#allocation7] sm:$0xff]   ;;  %v391_v28 = vmul.f32 %v327_v24, %v327_v24  ;;  %v390_v29 = vmul.f32 %v326_v25, %v326_v25  ;;  %v4690_v30 = vld [vmem:[#allocation7 + $0x8] sm:$0xff]  }
  0x8b   : > { %v328_v31 = vld [vmem:[%s5511_s23 + $0x70] sm:$0xff]  ;;  %4308 = vmatprep.subr.bf16.mxu0 %v4689_v27  ;;  %v393_v33 = vmul.f32 %v329_v26, %v329_v26  ;;  %v331_v35 = vld [vmem:[%s5511_s23 + $0x88] sm:$0xff]  ;;  %v330_v36 = vld [vmem:[%s5511_s23 + $0x80] sm:$0xff] }
  0x8c   : > { %448 = vadd.xlane.f32.xlu1 %v381_v6  ;;  %444 = vadd.xlane.f32.xlu0 %v379_v7  ;;  %v4691_v32 = vld [vmem:[#allocation7 + $0x10] sm:$0xff]   ;;  %v392_v34 = vmul.f32 %v328_v31, %v328_v31  ;;  %v4692_v37 = vld [vmem:[#allocation7 + $0x18] sm:$0xff]   ;;  %v395_v38 = vmul.f32 %v331_v35, %v331_v35  ;;  %v394_v39 = vmul.f32 %v330_v36, %v330_v36  ;;  %v4693_v42 = vld [vmem:[#allocation7 + $0x20] sm:$0xff]  }
  0x8d   : > { %4309 = vmatpush3.bf16.msra.mxu0 %v4689_v27  ;;  %v333_v40 = vld [vmem:[%s5511_s23 + $0x98] sm:$0xff]  ;;  %v332_v41 = vld [vmem:[%s5511_s23 + $0x90] sm:$0xff]  ;;  %v335_v45 = vld [vmem:[%s5511_s23 + $0xa8] sm:$0xff] }
  0x8e   : > { %4310 = vmatprep.subr.bf16.mxu0 %v4690_v30  ;;  %v397_v43 = vmul.f32 %v333_v40, %v333_v40  ;;  %v396_v44 = vmul.f32 %v332_v41, %v332_v41  ;;  %v334_v46 = vld [vmem:[%s5511_s23 + $0xa0] sm:$0xff]  ;;  %v4694_v47 = vld [vmem:[#allocation7 + $0x28] sm:$0xff]   ;;  %v399_v48 = vmul.f32 %v335_v45, %v335_v45  ;;  %v337_v50 = vld [vmem:[%s5511_s23 + $0xb8] sm:$0xff] }
  0x8f   : > { %v398_v49 = vmul.f32 %v334_v46, %v334_v46  ;;  %v336_v51 = vld [vmem:[%s5511_s23 + $0xb0] sm:$0xff]  ;;  %v401_v53 = vmul.f32 %v337_v50, %v337_v50  ;;  %v339_v55 = vld [vmem:[%s5511_s23 + $0xc8] sm:$0xff]  ;;  %v338_v56 = vld [vmem:[%s5511_s23 + $0xc0] sm:$0xff] }
  0x90   : > { %452 = vadd.xlane.f32.xlu1 %v383_v10  ;;  %450 = vadd.xlane.f32.xlu0 %v382_v11  ;;  %v4695_v52 = vld [vmem:[#allocation7 + $0x30] sm:$0xff]   ;;  %v400_v54 = vmul.f32 %v336_v51, %v336_v51  ;;  %v4696_v57 = vld [vmem:[#allocation7 + $0x38] sm:$0xff]   ;;  %v403_v58 = vmul.f32 %v339_v55, %v339_v55  ;;  %v402_v59 = vmul.f32 %v338_v56, %v338_v56  ;;  %v343_v3 = vld [vmem:[%s5511_s23 + $0xe8] sm:$0xff] }
  0x91   : > { %4311 = vmatpush3.bf16.msra.mxu0 %v4690_v30  ;;  %v341_v60 = vld [vmem:[%s5511_s23 + $0xd8] sm:$0xff]  ;;  %v340_v61 = vld [vmem:[%s5511_s23 + $0xd0] sm:$0xff]  ;;  %v342_v4 = vld [vmem:[%s5511_s23 + $0xe0] sm:$0xff]  ;;  %v407_v6 = vmul.f32 %v343_v3, %v343_v3 }
  0x92   : > { %4312 = vmatprep.subr.bf16.mxu0 %v4691_v32  ;;  %v405_v62 = vmul.f32 %v341_v60, %v341_v60  ;;  %v404_v63 = vmul.f32 %v340_v61, %v340_v61  ;;  %v406_v7 = vmul.f32 %v342_v4, %v342_v4  ;;  %v345_v10 = vld [vmem:[%s5511_s23 + $0xf8] sm:$0xff]  ;;  %v344_v11 = vld [vmem:[%s5511_s23 + $0xf0] sm:$0xff]  ;;  %v351_v27 = vld [vmem:[%s5511_s23 + $0x128] sm:$0xff] }
  0x93   : > { %v348_v24 = vld [vmem:[%s5511_s23 + $0x110] sm:$0xff]  ;;  %v353_v31 = vld [vmem:[%s5511_s23 + $0x138] sm:$0xff]  ;;  %v355_v35 = vld [vmem:[%s5511_s23 + $0x148] sm:$0xff] }
  0x94   : > { %456 = vadd.xlane.f32.xlu1 %v385_v14  ;;  %454 = vadd.xlane.f32.xlu0 %v384_v15  ;;  %v409_v14 = vmul.f32 %v345_v10, %v345_v10  ;;  %v408_v15 = vmul.f32 %v344_v11, %v344_v11  ;;  %v412_v26 = vmul.f32 %v348_v24, %v348_v24  ;;  %v354_v36 = vld [vmem:[%s5511_s23 + $0x140] sm:$0xff]  ;;  %v356_v40 = vld [vmem:[%s5511_s23 + $0x150] sm:$0xff]  ;;  %v363_v51 = vld [vmem:[%s5511_s23 + $0x188] sm:$0xff] }
  0x95   : > { %4313 = vmatpush3.bf16.msra.mxu0 %v4691_v32  ;;  %v352_v32 = vld [vmem:[%s5511_s23 + $0x130] sm:$0xff]  ;;  %v365_v55 = vld [vmem:[%s5511_s23 + $0x198] sm:$0xff]  ;;  %v366_v60 = vld [vmem:[%s5511_s23 + $0x1a0] sm:$0xff] }
  0x96   : > { %4314 = vmatprep.subr.bf16.mxu0 %v4692_v37  ;;  %v364_v56 = vld [vmem:[%s5511_s23 + $0x190] sm:$0xff]  ;;  %v370_v10 = vld [vmem:[%s5511_s23 + $0x1c0] sm:$0xff] }
  0x97   : > { %v368_v3 = vld [vmem:[%s5511_s23 + $0x1b0] sm:$0xff]  ;;  %v3846_v24 = vld [vmem:[%s5518_s5] sm:$0xff]  }
  0x98   : > { %460 = vadd.xlane.f32.xlu1 %v387_v18  ;;  %458 = vadd.xlane.f32.xlu0 %v386_v19  ;;  %v347_v18 = vld [vmem:[%s5511_s23 + $0x108] sm:$0xff]  ;;  %v346_v19 = vld [vmem:[%s5511_s23 + $0x100] sm:$0xff] }
  0x99   : > { %4315 = vmatpush3.bf16.msra.mxu0 %v4692_v37  ;;  %v411_v21 = vmul.f32 %v347_v18, %v347_v18  ;;  %v419_v37 = vmul.f32 %v355_v35, %v355_v35  ;;  %v372_v18 = vld [vmem:[%s5511_s23 + $0x1d0] sm:$0xff] }
  0x9a   : > { %4316 = vmatprep.subr.bf16.mxu0 %v4693_v42 }
  0x9c   : > { %464 = vadd.xlane.f32.xlu1 %v389_v22  ;;  %462 = vadd.xlane.f32.xlu0 %v388_v23  ;;  %v410_v22 = vmul.f32 %v346_v19, %v346_v19  ;;  %v349_v23 = vld [vmem:[%s5511_s23 + $0x118] sm:$0xff] }
  0x9d   : > { %4317 = vmatpush3.bf16.msra.mxu0 %v4693_v42  ;;  %v413_v25 = vmul.f32 %v349_v23, %v349_v23  ;;  %v420_v42 = vmul.f32 %v356_v40, %v356_v40  ;;  %v374_v23 = vld [vmem:[%s5511_s23 + $0x1e0] sm:$0xff] }
  0x9e   : > { %4318 = vmatprep.subr.bf16.mxu0 %v4694_v47 }
  0xa0   : > { %468 = vadd.xlane.f32.xlu1 %v391_v28  ;;  %466 = vadd.xlane.f32.xlu0 %v390_v29  ;;  %v350_v28 = vld [vmem:[%s5511_s23 + $0x120] sm:$0xff]  ;;  %v415_v29 = vmul.f32 %v351_v27, %v351_v27  ;;  %v4133_v27 = vld [vmem:[%s5518_s5 + $0x108] sm:$0xff]  }
  0xa1   : > { %4319 = vmatpush3.bf16.msra.mxu0 %v4694_v47  ;;  %v414_v30 = vmul.f32 %v350_v28, %v350_v28  ;;  %v361_v47 = vld [vmem:[%s5511_s23 + $0x178] sm:$0xff] }
  0xa2   : > { %4320 = vmatprep.subr.bf16.mxu0 %v4695_v52 }
  0xa4   : > { %472 = vadd.xlane.f32.xlu1 %v393_v33  ;;  %470 = vadd.xlane.f32.xlu0 %v392_v34  ;;  %v417_v33 = vmul.f32 %v353_v31, %v353_v31  ;;  %v416_v34 = vmul.f32 %v352_v32, %v352_v32  ;;  %v376_v31 = vld [vmem:[%s5511_s23 + $0x1f0] sm:$0xff]  ;;  %v3847_v32 = vunpack.c.l.bf16 %v3846_v24 }
  0xa5   : > { %4321 = vmatpush3.bf16.msra.mxu0 %v4695_v52  ;;  %v362_v52 = vld [vmem:[%s5511_s23 + $0x180] sm:$0xff]  ;;  %v440_v40 = vmul.f32 %v376_v31, %v376_v31  ;;  %v4107_v31 = vld [vmem:[%s5518_s5 + $0x38] sm:$0xff]  }
  0xa6   : > { %4322 = vmatprep.subr.bf16.mxu0 %v4696_v57 }
  0xa8   : > { %476 = vadd.xlane.f32.xlu1 %v395_v38  ;;  %474 = vadd.xlane.f32.xlu0 %v394_v39  ;;  %v418_v38 = vmul.f32 %v354_v36, %v354_v36  ;;  %v357_v39 = vld [vmem:[%s5511_s23 + $0x158] sm:$0xff]  ;;  %v3848_v36 = vunpack.c.h.bf16 %v3846_v24  ;;  %v4138_v24 = vld [vmem:[%s5518_s5 + $0x130] sm:$0xff]  }
  0xa9   : > { %4323 = vmatpush3.bf16.msra.mxu0 %v4696_v57  ;;  %v421_v41 = vmul.f32 %v357_v39, %v357_v39  ;;  %v429_v57 = vmul.f32 %v365_v55, %v365_v55 }
  0xac   : > { %480 = vadd.xlane.f32.xlu1 %v397_v43  ;;  %478 = vadd.xlane.f32.xlu0 %v396_v44  ;;  %v359_v43 = vld [vmem:[%s5511_s23 + $0x168] sm:$0xff]  ;;  %v358_v44 = vld [vmem:[%s5511_s23 + $0x160] sm:$0xff] }
  0xad   : > { %v423_v45 = vmul.f32 %v359_v43, %v359_v43  ;;  %v422_v46 = vmul.f32 %v358_v44, %v358_v44  ;;  %v5647_v43 = vmul.f32 0.36055514, %v3847_v32 }
  0xb0   : > { %484 = vadd.xlane.f32.xlu1 %v399_v48  ;;  %482 = vadd.xlane.f32.xlu0 %v398_v49  ;;  %v360_v48 = vld [vmem:[%s5511_s23 + $0x170] sm:$0xff]  ;;  %v425_v49 = vmul.f32 %v361_v47, %v361_v47  ;;  %v4135_v47 = vld [vmem:[%s5518_s5 + $0x118] sm:$0xff]  }
  0xb1   : > { %v424_v50 = vmul.f32 %v360_v48, %v360_v48 }
  0xb4   : > { %488 = vadd.xlane.f32.xlu1 %v401_v53  ;;  %486 = vadd.xlane.f32.xlu0 %v400_v54  ;;  %v427_v53 = vmul.f32 %v363_v51, %v363_v51  ;;  %v426_v54 = vmul.f32 %v362_v52, %v362_v52 }
  0xb8   : > { %492 = vadd.xlane.f32.xlu1 %v403_v58  ;;  %490 = vadd.xlane.f32.xlu0 %v402_v59  ;;  %v428_v58 = vmul.f32 %v364_v56, %v364_v56  ;;  %v367_v59 = vld [vmem:[%s5511_s23 + $0x1a8] sm:$0xff] }
  0xb9   : > { %v431_v61 = vmul.f32 %v367_v59, %v367_v59 }
  0xbc   : > { %496 = vadd.xlane.f32.xlu1 %v405_v62  ;;  %494 = vadd.xlane.f32.xlu0 %v404_v63  ;;  %v430_v62 = vmul.f32 %v366_v60, %v366_v60  ;;  %v369_v63 = vld [vmem:[%s5511_s23 + $0x1b8] sm:$0xff]  ;;  %v4105_v60 = vld [vmem:[%s5518_s5 + $0x28] sm:$0xff]  }
  0xbd   : > { %v433_v4 = vmul.f32 %v369_v63, %v369_v63 }
  0xc0   : > { %500 = vadd.xlane.f32.xlu1 %v407_v6  ;;  %498 = vadd.xlane.f32.xlu0 %v406_v7  ;;  %v432_v6 = vmul.f32 %v368_v3, %v368_v3  ;;  %v371_v7 = vld [vmem:[%s5511_s23 + $0x1c8] sm:$0xff] }
  0xc1   : > { %v435_v11 = vmul.f32 %v371_v7, %v371_v7 }
  0xc4   : > { %504 = vadd.xlane.f32.xlu1 %v409_v14  ;;  %502 = vadd.xlane.f32.xlu0 %v408_v15  ;;  %v434_v14 = vmul.f32 %v370_v10, %v370_v10  ;;  %v373_v15 = vld [vmem:[%s5511_s23 + $0x1d8] sm:$0xff] }
  0xc5   : > { %v437_v19 = vmul.f32 %v373_v15, %v373_v15 }
  0xc8   : > { %508 = vadd.xlane.f32.xlu1 %v411_v21  ;;  %506 = vadd.xlane.f32.xlu0 %v410_v22  ;;  %v436_v21 = vmul.f32 %v372_v18, %v372_v18  ;;  %v375_v22 = vld [vmem:[%s5511_s23 + $0x1e8] sm:$0xff] }
  0xc9   : > { %v439_v28 = vmul.f32 %v375_v22, %v375_v22  ;;  %v4137_v18 = vld [vmem:[%s5518_s5 + $0x128] sm:$0xff]  }
  0xca   : > { %v3995_v32 = vunpack.c.l.bf16 %v4137_v18 }
  0xcc   : > { %512 = vadd.xlane.f32.xlu1 %v413_v25  ;;  %510 = vadd.xlane.f32.xlu0 %v412_v26  ;;  %v4101_v25 = vld [vmem:[%s5518_s5 + $0x8] sm:$0xff]   ;;  %v4132_v26 = vld [vmem:[%s5518_s5 + $0x100] sm:$0xff]  }
  0xcd   : > { %v3975_v35 = vunpack.c.l.bf16 %v4132_v26 }
  0xcf   : > { %v5653_v51 = vmul.f32 0.36055514, %v3975_v35 }
  0xd0   : > { %516 = vadd.xlane.f32.xlu1 %v415_v29  ;;  %514 = vadd.xlane.f32.xlu0 %v414_v30  ;;  %v438_v29 = vmul.f32 %v374_v23, %v374_v23  ;;  %v377_v30 = vld [vmem:[%s5511_s23 + $0x1f8] sm:$0xff] }
  0xd1   : > { %v441_v39 = vmul.f32 %v377_v30, %v377_v30 }
  0xd4   : > { %520 = vadd.xlane.f32.xlu1 %v417_v33  ;;  %518 = vadd.xlane.f32.xlu0 %v416_v34  ;;  %v3851_v33 = vunpack.c.l.bf16 %v4101_v25  ;;  %v4102_v34 = vld [vmem:[%s5518_s5 + $0x10] sm:$0xff]  }
  0xd5   : > { %v3855_v44 = vunpack.c.l.bf16 %v4102_v34 }
  0xd6   : > { %v5650_v48 = vmul.f32 0.36055514, %v3851_v33  ;;  %v3996_v33 = vunpack.c.h.bf16 %v4137_v18 }
  0xd7   : > { %v5663_v63 = vmul.f32 0.36055514, %v3855_v44 }
  0xd8   : > { %524 = vadd.xlane.f32.xlu1 %v419_v37  ;;  %522 = vadd.xlane.f32.xlu0 %v418_v38  ;;  %v3979_v37 = vunpack.c.l.bf16 %v4133_v27  ;;  %v4134_v38 = vld [vmem:[%s5518_s5 + $0x110] sm:$0xff]  }
  0xd9   : > { %v3983_v52 = vunpack.c.l.bf16 %v4134_v38  ;;  %v3984_v56 = vunpack.c.h.bf16 %v4134_v38  ;;  %v3999_v38 = vunpack.c.l.bf16 %v4138_v24 }
  0xda   : > { %v5657_v55 = vmul.f32 0.36055514, %v3979_v37 }
  0xdb   : > { %v5677_v22 = vmul.f32 0.36055514, %v3984_v56  ;;  %v5707_v56 = vmul.f32 0.36055514, %v3996_v33  ;;  %v4111_v33 = vld [vmem:[%s5518_s5 + $0x58] sm:$0xff]  }
  0xdc   : > { %528 = vadd.xlane.f32.xlu1 %v421_v41  ;;  %526 = vadd.xlane.f32.xlu0 %v420_v42  ;;  %v3852_v41 = vunpack.c.h.bf16 %v4101_v25  ;;  %v4103_v42 = vld [vmem:[%s5518_s5 + $0x18] sm:$0xff]  }
  0xdd   : > { %v3860_v59 = vunpack.c.h.bf16 %v4103_v42 }
  0xdf   : > { %v5680_v25 = vmul.f32 0.36055514, %v3860_v59 }
  0xe0   : > { %532 = vadd.xlane.f32.xlu1 %v423_v45  ;;  %530 = vadd.xlane.f32.xlu0 %v422_v46  ;;  %v3976_v45 = vunpack.c.h.bf16 %v4132_v26  ;;  %v3980_v46 = vunpack.c.h.bf16 %v4133_v27  ;;  %v3868_v26 = vunpack.c.h.bf16 %v4105_v60 }
  0xe2   : > { %v5699_v44 = vmul.f32 0.36055514, %v3868_v26 }
  0xe4   : > { %536 = vadd.xlane.f32.xlu1 %v425_v49  ;;  %534 = vadd.xlane.f32.xlu0 %v424_v50  ;;  %v3856_v49 = vunpack.c.h.bf16 %v4102_v34  ;;  %v4104_v50 = vld [vmem:[%s5518_s5 + $0x20] sm:$0xff]   ;;  %v4139_v34 = vld [vmem:[%s5518_s5 + $0x138] sm:$0xff]  }
  0xe5   : > { %v3863_v3 = vunpack.c.l.bf16 %v4104_v50  ;;  %v3864_v10 = vunpack.c.h.bf16 %v4104_v50  ;;  %v4140_v50 = vld [vmem:[%s5518_s5 + $0x140] sm:$0xff]  }
  0xe6   : > { %v5669_v7 = vmul.f32 0.36055514, %v3856_v49  ;;  %v4003_v49 = vunpack.c.l.bf16 %v4139_v34  ;;  %v4007_v18 = vunpack.c.l.bf16 %v4140_v50 }
  0xe7   : > { %v5690_v35 = vmul.f32 0.36055514, %v3864_v10  ;;  %v4141_v10 = vld [vmem:[%s5518_s5 + $0x148] sm:$0xff]  }
  0xe8   : > { %540 = vadd.xlane.f32.xlu1 %v427_v53  ;;  %538 = vadd.xlane.f32.xlu0 %v426_v54  ;;  %v5655_v53 = vmul.f32 0.36055514, %v3848_v36  ;;  %v3859_v54 = vunpack.c.l.bf16 %v4103_v42  ;;  %v4000_v42 = vunpack.c.h.bf16 %v4138_v24 }
  0xec   : > { %544 = vadd.xlane.f32.xlu1 %v429_v57  ;;  %542 = vadd.xlane.f32.xlu0 %v428_v58  ;;  %v4136_v57 = vld [vmem:[%s5518_s5 + $0x120] sm:$0xff]   ;;  %v5660_v58 = vmul.f32 0.36055514, %v3852_v41 }
  0xed   : > { %v3991_v15 = vunpack.c.l.bf16 %v4136_v57  ;;  %v3992_v23 = vunpack.c.h.bf16 %v4136_v57  ;;  %v4004_v57 = vunpack.c.h.bf16 %v4139_v34 }
  0xef   : > { %v5692_v37 = vmul.f32 0.36055514, %v3991_v15  ;;  %v5697_v41 = vmul.f32 0.36055514, %v3992_v23  ;;  %v5715_v15 = vmul.f32 0.36055514, %v4000_v42 }
  0xf0   : > { %548 = vadd.xlane.f32.xlu1 %v431_v61  ;;  %546 = vadd.xlane.f32.xlu0 %v430_v62  ;;  %v3987_v61 = vunpack.c.l.bf16 %v4135_v47  ;;  %v3988_v62 = vunpack.c.h.bf16 %v4135_v47  ;;  %v4109_v47 = vld [vmem:[%s5518_s5 + $0x48] sm:$0xff]   ;;  %v4142_v23 = vld [vmem:[%s5518_s5 + $0x150] sm:$0xff]   ;;  %v5725_v34 = vmul.f32 0.36055514, %v4004_v57  ;;  %v3891_v57 = vunpack.c.l.bf16 %v4111_v33 }
  0xf2   : > { %v5682_v27 = vmul.f32 0.36055514, %v3987_v61  ;;  %7297 = vst [vmem:[#allocation24_spill] sm:$0xff] %v5725_v34 }
  0xf4   : > { %552 = vadd.xlane.f32.xlu1 %v433_v4  ;;  %550 = vadd.xlane.f32.xlu0 %v432_v6  ;;  %v5665_v4 = vmul.f32 0.36055514, %v3976_v45  ;;  %v5667_v6 = vmul.f32 0.36055514, %v3980_v46  ;;  %v3875_v45 = vunpack.c.l.bf16 %v4107_v31  ;;  %v3876_v46 = vunpack.c.h.bf16 %v4107_v31 }
  0xf5   : > { %v5722_v31 = vmul.f32 0.36055514, %v4003_v49 }
  0xf6   : > { %v5718_v24 = vmul.f32 0.36055514, %v3875_v45  ;;  %v5720_v26 = vmul.f32 0.36055514, %v3876_v46  ;;  %v4143_v45 = vld [vmem:[%s5518_s5 + $0x158] sm:$0xff]  }
  0xf7   : > { %7296 = vst [vmem:[#allocation23_spill] sm:$0xff] %v5722_v31  ;;  %v5734_v46 = vmul.f32 0.36055514, %v4007_v18  ;;  %v3892_v31 = vunpack.c.h.bf16 %v4111_v33  ;;  %v4144_v33 = vld [vmem:[%s5518_s5 + $0x160] sm:$0xff]  }
  0xf8   : > { %556 = vadd.xlane.f32.xlu1 %v435_v11  ;;  %554 = vadd.xlane.f32.xlu0 %v434_v14  ;;  %v4106_v11 = vld [vmem:[%s5518_s5 + $0x30] sm:$0xff]   ;;  %v5672_v14 = vmul.f32 0.36055514, %v3983_v52  ;;  %7295 = vst [vmem:[#allocation22_spill] sm:$0xff] %v5718_v24 }
  0xf9   : > { %v3871_v30 = vunpack.c.l.bf16 %v4106_v11  ;;  %v3872_v36 = vunpack.c.h.bf16 %v4106_v11  ;;  %v3883_v11 = vunpack.c.l.bf16 %v4109_v47  ;;  %7301 = vst [vmem:[#allocation28_spill] sm:$0xff] %v5734_v46 }
  0xfb   : > { %v5703_v52 = vmul.f32 0.36055514, %v3871_v30  ;;  %v5709_v59 = vmul.f32 0.36055514, %v3872_v36  ;;  %v3884_v30 = vunpack.c.h.bf16 %v4109_v47  ;;  %v4011_v36 = vunpack.c.l.bf16 %v4141_v10 }
  0xfc   : > { %560 = vadd.xlane.f32.xlu1 %v437_v19  ;;  %558 = vadd.xlane.f32.xlu0 %v436_v21  ;;  %v5675_v19 = vmul.f32 0.36055514, %v3859_v54  ;;  %v3867_v21 = vunpack.c.l.bf16 %v4105_v60  ;;  %v5705_v54 = vmul.f32 0.36055514, %v3995_v32  ;;  %v5732_v24 = vmul.f32 0.36055514, %v3883_v11 }
  0xfd   : > { %v5738_v49 = vmul.f32 0.36055514, %v3884_v30  ;;  %v4019_v11 = vunpack.c.l.bf16 %v4143_v45  ;;  %v4020_v30 = vunpack.c.h.bf16 %v4143_v45  ;;  %v4145_v45 = vld [vmem:[%s5518_s5 + $0x168] sm:$0xff]  }
  0xfe   : > { %7300 = vst [vmem:[#allocation27_spill] sm:$0xff] %v5732_v24 }
  0xff   : > { %7303 = vst [vmem:[#allocation30_spill] sm:$0xff] %v5738_v49 }
 0x100   : > { %564 = vadd.xlane.f32.xlu1 %v439_v28  ;;  %562 = vadd.xlane.f32.xlu0 %v438_v29  ;;  %v5684_v28 = vmul.f32 0.36055514, %v3988_v62  ;;  %v5686_v29 = vmul.f32 0.36055514, %v3863_v3  ;;  %v4110_v62 = vld [vmem:[%s5518_s5 + $0x50] sm:$0xff]  }
 0x101   : > { %v5712_v3 = vmul.f32 0.36055514, %v3999_v38  ;;  %v3887_v32 = vunpack.c.l.bf16 %v4110_v62  ;;  %v4012_v38 = vunpack.c.h.bf16 %v4141_v10  ;;  %v4112_v10 = vld [vmem:[%s5518_s5 + $0x60] sm:$0xff]  }
 0x103   : > { %7294 = vst [vmem:[#allocation21_spill] sm:$0xff] %v5712_v3  ;;  %v4015_v3 = vunpack.c.l.bf16 %v4142_v23 }
 0x104   : > { %568 = vadd.xlane.f32.xlu1 %v441_v39  ;;  %566 = vadd.xlane.f32.xlu0 %v440_v40  ;;  %v5694_v39 = vmul.f32 0.36055514, %v3867_v21  ;;  %v4108_v40 = vld [vmem:[%s5518_s5 + $0x40] sm:$0xff]   ;;  %v4008_v21 = vunpack.c.h.bf16 %v4140_v50  ;;  %v3888_v50 = vunpack.c.h.bf16 %v4110_v62  ;;  %v5745_v62 = vmul.f32 0.36055514, %v4012_v38 }
 0x105   : > { %v3879_v60 = vunpack.c.l.bf16 %v4108_v40  ;;  %v3880_v61 = vunpack.c.h.bf16 %v4108_v40  ;;  %v3896_v38 = vunpack.c.h.bf16 %v4112_v10 }
 0x106   : > { %v5736_v47 = vmul.f32 0.36055514, %v4008_v21  ;;  %7306 = vst [vmem:[#allocation33_spill] sm:$0xff] %v5745_v62  ;;  %v5747_v46 = vmul.f32 0.36055514, %v3888_v50  ;;  %v4114_v62 = vld [vmem:[%s5518_s5 + $0x70] sm:$0xff]  }
 0x107   : > { %v5727_v40 = vmul.f32 0.36055514, %v3879_v60  ;;  %v5729_v42 = vmul.f32 0.36055514, %v3880_v61  ;;  %v4016_v60 = vunpack.c.h.bf16 %v4142_v23  ;;  %v5743_v61 = vmul.f32 0.36055514, %v4011_v36 }
 0x108   : > { %7302 = vst [vmem:[#allocation29_spill] sm:$0xff] %v5736_v47  ;;  %7307 = vst [vmem:[#allocation34_spill] sm:$0xff] %v5747_v46  ;;  %v5749_v21 = vmul.f32 0.36055514, %v4015_v3  ;;  %v3895_v23 = vunpack.c.l.bf16 %v4112_v10  ;;  %v5755_v36 = vmul.f32 0.36055514, %v3892_v31  ;;  %v4023_v3 = vunpack.c.l.bf16 %v4144_v33 }
 0x109   : > { %7298 = vst [vmem:[#allocation25_spill] sm:$0xff] %v5727_v40  ;;  %7299 = vst [vmem:[#allocation26_spill] sm:$0xff] %v5729_v42  ;;  %v5741_v40 = vmul.f32 0.36055514, %v3887_v32  ;;  %v4113_v32 = vld [vmem:[%s5518_s5 + $0x68] sm:$0xff]  }
 0x10a   : > { %7305 = vst [vmem:[#allocation32_spill] sm:$0xff] %v5743_v61  ;;  %7308 = vst [vmem:[#allocation35_spill] sm:$0xff] %v5749_v21  ;;  %v5757_v61 = vmul.f32 0.36055514, %v4016_v60  ;;  %v5760_v50 = vmul.f32 0.36055514, %v4019_v11  ;;  %v4024_v21 = vunpack.c.h.bf16 %v4144_v33  ;;  %v3899_v46 = vunpack.c.l.bf16 %v4113_v32 }
 0x10b   : > { %7304 = vst [vmem:[#allocation31_spill] sm:$0xff] %v5741_v40  ;;  %v5753_v40 = vmul.f32 0.36055514, %v3891_v57  ;;  %7310 = vst [vmem:[#allocation37_spill] sm:$0xff] %v5755_v36  ;;  %v3900_v42 = vunpack.c.h.bf16 %v4113_v32  ;;  %v5763_v57 = vmul.f32 0.36055514, %v4020_v30  ;;  %v3903_v60 = vunpack.c.l.bf16 %v4114_v62 }
 0x10c   : > { %7311 = vst [vmem:[#allocation38_spill] sm:$0xff] %v5757_v61  ;;  %7312 = vst [vmem:[#allocation39_spill] sm:$0xff] %v5760_v50  ;;  %v5765_v10 = vmul.f32 0.36055514, %v3895_v23  ;;  %v4027_v11 = vunpack.c.l.bf16 %v4145_v45  ;;  %v4028_v50 = vunpack.c.h.bf16 %v4145_v45  ;;  %v4146_v33 = vld [vmem:[%s5518_s5 + $0x170] sm:$0xff]   ;;  %v4116_v45 = vld [vmem:[%s5518_s5 + $0x80] sm:$0xff]  }
 0x10d   : > { %7309 = vst [vmem:[#allocation36_spill] sm:$0xff] %v5753_v40  ;;  %7313 = vst [vmem:[#allocation40_spill] sm:$0xff] %v5763_v57  ;;  %v5770_v36 = vmul.f32 0.36055514, %v4023_v3  ;;  %v5772_v32 = vmul.f32 0.36055514, %v4024_v21  ;;  %v4031_v57 = vunpack.c.l.bf16 %v4146_v33 }
 0x10e   : > { %7314 = vst [vmem:[#allocation41_spill] sm:$0xff] %v5765_v10  ;;  %v5776_v23 = vmul.f32 0.36055514, %v3900_v42  ;;  %v4147_v61 = vld [vmem:[%s5518_s5 + $0x178] sm:$0xff]   ;;  %v5785_v21 = vmul.f32 0.36055514, %v4028_v50 }
 0x10f   : > { %7316 = vst [vmem:[#allocation43_spill] sm:$0xff] %v5770_v36  ;;  %7317 = vst [vmem:[#allocation44_spill] sm:$0xff] %v5772_v32  ;;  %v4148_v42 = vld [vmem:[%s5518_s5 + $0x180] sm:$0xff]   ;;  %v4035_v36 = vunpack.c.l.bf16 %v4147_v61  ;;  %v4036_v32 = vunpack.c.h.bf16 %v4147_v61 }
 0x110   : > { %7319 = vst [vmem:[#allocation46_spill] sm:$0xff] %v5776_v23  ;;  %7322 = vst [vmem:[#allocation49_spill] sm:$0xff] %v5785_v21 }
 0x115   : > { %v447_v18 = vpop.xlane.xlu1 %446  ;;  %v443_v24 = vpop.xlane.xlu0 %442 }
 0x116   : > { %v572_v49 = vmax.f32 %v447_v18, 1e-24  ;;  %v570_v47 = vmax.f32 %v443_v24, 1e-24 }
 0x118   : > { %4705 = vrsqrt.f32 %v572_v49  ;;  %v5767_v49 = vmul.f32 0.36055514, %v3896_v38  ;;  %v4115_v38 = vld [vmem:[%s5518_s5 + $0x78] sm:$0xff]  }
 0x119   : > { %4707 = vrsqrt.f32 %v570_v47  ;;  %v449_v18 = vpop.xlane.xlu1 %448  ;;  %v445_v24 = vpop.xlane.xlu0 %444  ;;  %v3904_v47 = vunpack.c.h.bf16 %v4114_v62  ;;  %v5783_v62 = vmul.f32 0.36055514, %v4027_v11  ;;  %v3912_v11 = vunpack.c.h.bf16 %v4116_v45 }
 0x11a   : > { %v573_v31 = vmax.f32 %v449_v18, 1e-24  ;;  %v571_v40 = vmax.f32 %v445_v24, 1e-24  ;;  %7315 = vst [vmem:[#allocation42_spill] sm:$0xff] %v5767_v49 }
 0x11b   : > { %v5774_v24 = vmul.f32 0.36055514, %v3899_v46  ;;  %7321 = vst [vmem:[#allocation48_spill] sm:$0xff] %v5783_v62  ;;  %v5787_v3 = vmul.f32 0.36055514, %v3904_v47  ;;  %v3907_v46 = vunpack.c.l.bf16 %v4115_v38  ;;  %v4039_v47 = vunpack.c.l.bf16 %v4148_v42 }
 0x11c   : > { %4709 = vrsqrt.f32 %v573_v31  ;;  %v5781_v31 = vmul.f32 0.36055514, %v3903_v60  ;;  %v5790_v62 = vmul.f32 0.36055514, %v4031_v57 }
 0x11d   : > { %4711 = vrsqrt.f32 %v571_v40  ;;  %v453_v30 = vpop.xlane.xlu1 %452  ;;  %v451_v18 = vpop.xlane.xlu0 %450  ;;  %7318 = vst [vmem:[#allocation45_spill] sm:$0xff] %v5774_v24  ;;  %v4032_v40 = vunpack.c.h.bf16 %v4146_v33  ;;  %7323 = vst [vmem:[#allocation50_spill] sm:$0xff] %v5787_v3  ;;  %v3908_v24 = vunpack.c.h.bf16 %v4115_v38  ;;  %v4040_v38 = vunpack.c.h.bf16 %v4148_v42 }
 0x11e   : > { %v575_v10 = vmax.f32 %v453_v30, 1e-24  ;;  %v574_v49 = vmax.f32 %v451_v18, 1e-24  ;;  %7320 = vst [vmem:[#allocation47_spill] sm:$0xff] %v5781_v31  ;;  %v3911_v18 = vunpack.c.l.bf16 %v4116_v45 }
 0x11f   : > { %v5793_v33 = vmul.f32 0.36055514, %v4032_v40  ;;  %v5796_v3 = vmul.f32 0.36055514, %v3907_v46  ;;  %v5798_v21 = vmul.f32 0.36055514, %v3908_v24 }
 0x120   : > { %4713 = vrsqrt.f32 %v575_v10  ;;  %v5800_v57 = vmul.f32 0.36055514, %v3911_v18  ;;  %v5802_v45 = vmul.f32 0.36055514, %v4035_v36  ;;  %v4117_v18 = vld [vmem:[%s5518_s5 + $0x88] sm:$0xff]  }
 0x121   : > { %4715 = vrsqrt.f32 %v574_v49  ;;  %v457_v23 = vpop.xlane.xlu1 %456  ;;  %v455_v30 = vpop.xlane.xlu0 %454 }
 0x122   : > { %v4706_v34 = vpop.eup %4705  ;;  %v577_v60 = vmax.f32 %v457_v23, 1e-24  ;;  %v576_v31 = vmax.f32 %v455_v30, 1e-24  ;;  %v5806_v30 = vmul.f32 0.36055514, %v3912_v11 }
 0x123   : > { %v4708_v50 = vpop.eup %4707  ;;  %v700_v10 = vmul.f32 %v4706_v34, %v5533_v0  ;;  %v5804_v0 = vmul.f32 0.36055514, %v4036_v32 }
 0x124   : > { %4717 = vrsqrt.f32 %v577_v60  ;;  %v698_v49 = vmul.f32 %v4708_v50, %v5536_v1  ;;  %v5812_v60 = vmul.f32 0.36055514, %v4040_v38 }
 0x125   : > { %4719 = vrsqrt.f32 %v576_v31  ;;  %v461_v61 = vpop.xlane.xlu1 %460  ;;  %v459_v23 = vpop.xlane.xlu0 %458  ;;  %v1148_v24 = vadd.f32 %v5650_v48, %v700_v10  ;;  %v5810_v31 = vmul.f32 0.36055514, %v4039_v47  ;;  %v5818_v50 = vadd.f32 %v5657_v55, %v700_v10 }
 0x126   : > { %v4710_v34 = vpop.eup %4709  ;;  %v579_v40 = vmax.f32 %v461_v61, 1e-24  ;;  %v578_v42 = vmax.f32 %v459_v23, 1e-24  ;;  %v1146_v32 = vadd.f32 %v5647_v43, %v698_v49  ;;  %v5822_v48 = vadd.f32 %v5653_v51, %v698_v49 }
 0x127   : > { %v4712_v1 = vpop.eup %4711  ;;  %v701_v46 = vmul.f32 %v4710_v34, %v5539_v2 }
 0x128   : > { %4721 = vrsqrt.f32 %v579_v40  ;;  %v699_v36 = vmul.f32 %v4712_v1, %v5546_v5  ;;  %v4149_v1 = vld [vmem:[%s5518_s5 + $0x188] sm:$0xff]  }
 0x129   : > { %4723 = vrsqrt.f32 %v578_v42  ;;  %v465_v11 = vpop.xlane.xlu1 %464  ;;  %v463_v61 = vpop.xlane.xlu0 %462  ;;  %v1149_v2 = vadd.f32 %v5660_v58, %v701_v46  ;;  %v5825_v47 = vadd.f32 %v5667_v6, %v701_v46  ;;  %v3915_v58 = vunpack.c.l.bf16 %v4117_v18 }
 0x12a   : > { %v4714_v38 = vpop.eup %4713  ;;  %v581_v5 = vmax.f32 %v465_v11, 1e-24  ;;  %v580_v23 = vmax.f32 %v463_v61, 1e-24  ;;  %v1147_v43 = vadd.f32 %v5655_v53, %v699_v36  ;;  %v5829_v55 = vadd.f32 %v5665_v4, %v699_v36 }
 0x12b   : > { %v4716_v10 = vpop.eup %4715  ;;  %v1275_v34 = vpack.c.bf16 %v1149_v2, %v1148_v24  ;;  %v703_v40 = vmul.f32 %v4714_v38, %v5553_v8  ;;  %v3916_v24 = vunpack.c.h.bf16 %v4117_v18  ;;  %v4044_v18 = vunpack.c.h.bf16 %v4149_v1 }
 0x12c   : > { %4725 = vrsqrt.f32 %v581_v5  ;;  %v1274_v49 = vpack.c.bf16 %v1147_v43, %v1146_v32  ;;  %v702_v6 = vmul.f32 %v4716_v10, %v5556_v9  ;;  %v5847_v5 = vmul.f32 0.36055514, %v3915_v58  ;;  %v4118_v43 = vld [vmem:[%s5518_s5 + $0x90] sm:$0xff]  }
 0x12d   : > { %4727 = vrsqrt.f32 %v580_v23  ;;  %v469_v53 = vpop.xlane.xlu1 %468  ;;  %v467_v4 = vpop.xlane.xlu0 %466  ;;  %v1151_v46 = vadd.f32 %v5669_v7, %v703_v40  ;;  %v5840_v8 = vadd.f32 %v5677_v22, %v703_v40  ;;  %v4043_v7 = vunpack.c.l.bf16 %v4149_v1 }
 0x12e   : > { %v4718_v36 = vpop.eup %4717  ;;  %4324 = vmatprep.mubr.bf16.mxu0 %v1274_v49  ;;  %v583_v11 = vmax.f32 %v469_v53, 1e-24  ;;  %v582_v32 = vmax.f32 %v467_v4, 1e-24  ;;  %v1150_v9 = vadd.f32 %v5663_v63, %v702_v6  ;;  %v5844_v61 = vadd.f32 %v5672_v14, %v702_v6 }
 0x12f   : > { %v4720_v2 = vpop.eup %4719  ;;  %4325 = vmatmul.mubr.bf16.vlgmr.msra.gmra.mrb[0].mxu0 %v1275_v34  ;;  %v705_v38 = vmul.f32 %v4718_v36, %v5563_v12  ;;  %v5854_v34 = vmul.f32 0.36055514, %v3916_v24  ;;  %v5866_v24 = vmul.f32 0.36055514, %v4044_v18 }
 0x130   : > { %4729 = vrsqrt.f32 %v583_v11  ;;  %v1276_v22 = vpack.c.bf16 %v1151_v46, %v1150_v9  ;;  %v704_v23 = vmul.f32 %v4720_v2, %v5566_v13  ;;  %v3919_v46 = vunpack.c.l.bf16 %v4118_v43 }
 0x131   : > { %4731 = vrsqrt.f32 %v582_v32  ;;  %v473_v63 = vpop.xlane.xlu1 %472  ;;  %v471_v14 = vpop.xlane.xlu0 %470  ;;  %v1153_v40 = vadd.f32 %v5680_v25, %v705_v38  ;;  %v5857_v12 = vadd.f32 %v5684_v28, %v705_v38  ;;  %v5864_v25 = vmul.f32 0.36055514, %v4043_v7  ;;  %v4150_v32 = vld [vmem:[%s5518_s5 + $0x190] sm:$0xff]  }
 0x132   : > { %v4722_v58 = vpop.eup %4721  ;;  %v585_v49 = vmax.f32 %v473_v63, 1e-24  ;;  %4328 = vmatprep.mubr.bf16.mxu0 %v1276_v22  ;;  %v584_v6 = vmax.f32 %v471_v14, 1e-24  ;;  %v1152_v13 = vadd.f32 %v5675_v19, %v704_v23  ;;  %v5861_v1 = vadd.f32 %v5682_v27, %v704_v23 }
 0x133   : > { %v4724_v53 = vpop.eup %4723  ;;  %v707_v4 = vmul.f32 %v4722_v58, %v5573_v16  ;;  %v3920_v16 = vunpack.c.h.bf16 %v4118_v43  ;;  %v5881_v14 = vmul.f32 0.36055514, %v3919_v46  ;;  %v4048_v43 = vunpack.c.h.bf16 %v4150_v32 }
 0x134   : > { %7324 = vst [vmem:[#allocation51_spill] sm:$0xff] %v5861_v1  ;;  %4733 = vrsqrt.f32 %v585_v49  ;;  %v1277_v28 = vpack.c.bf16 %v1153_v40, %v1152_v13  ;;  %v706_v36 = vmul.f32 %v4724_v53, %v5576_v17  ;;  %v5089_v40 = vld [vmem:[%s5511_s23 + $0x50] sm:$0xff]  ;;  %v4119_v49 = vld [vmem:[%s5518_s5 + $0x98] sm:$0xff]  }
 0x135   : > { %4735 = vrsqrt.f32 %v584_v6  ;;  %v477_v19 = vpop.xlane.xlu1 %476  ;;  %v475_v27 = vpop.xlane.xlu0 %474  ;;  %v1155_v9 = vadd.f32 %v5690_v35, %v707_v4  ;;  %v5874_v2 = vadd.f32 %v5697_v41, %v707_v4  ;;  %v4047_v35 = vunpack.c.l.bf16 %v4150_v32 }
 0x136   : > { %v4726_v38 = vpop.eup %4725  ;;  %v587_v7 = vmax.f32 %v477_v19, 1e-24  ;;  %v586_v18 = vmax.f32 %v475_v27, 1e-24  ;;  %v1154_v17 = vadd.f32 %v5686_v29, %v706_v36  ;;  %v5878_v22 = vadd.f32 %v5692_v37, %v706_v36  ;;  %v5090_v27 = vld [vmem:[%s5511_s23 + $0x68] sm:$0xff] }
 0x137   : > { %7325 = vst [vmem:[#allocation52_spill] sm:$0xff] %v5874_v2  ;;  %v4728_v23 = vpop.eup %4727  ;;  %4329 = vmatmul.mubr.bf16.gmra.mrb[4].mxu0 %v1277_v28  ;;  %v709_v63 = vmul.f32 %v4726_v38, %v5583_v20  ;;  %v5888_v53 = vmul.f32 0.36055514, %v3920_v16  ;;  %v5898_v16 = vmul.f32 0.36055514, %v4047_v35 }
 0x138   : > { %7326 = vst [vmem:[#allocation53_spill] sm:$0xff] %v5878_v22  ;;  %4737 = vrsqrt.f32 %v587_v7  ;;  %v1278_v41 = vpack.c.bf16 %v1155_v9, %v1154_v17  ;;  %v708_v58 = vmul.f32 %v5089_v40, %v4728_v23  ;;  %v5900_v38 = vmul.f32 0.36055514, %v4048_v43  ;;  %v5091_v7 = vld [vmem:[%s5511_s23 + $0x60] sm:$0xff] }
 0x139   : > { %4739 = vrsqrt.f32 %v586_v18  ;;  %v481_v37 = vpop.xlane.xlu1 %480  ;;  %v479_v6 = vpop.xlane.xlu0 %478  ;;  %v1157_v13 = vadd.f32 %v5699_v44, %v709_v63  ;;  %v5891_v20 = vadd.f32 %v5707_v56, %v709_v63  ;;  %v3923_v44 = vunpack.c.l.bf16 %v4119_v49 }
 0x13a   : > { %v4730_v4 = vpop.eup %4729  ;;  %v589_v46 = vmax.f32 %v481_v37, 1e-24  ;;  %4332 = vmatprep.mubr.bf16.mxu0 %v1278_v41  ;;  %v588_v28 = vmax.f32 %v479_v6, 1e-24  ;;  %v1156_v36 = vadd.f32 %v5694_v39, %v708_v58  ;;  %v5895_v32 = vadd.f32 %v5705_v54, %v708_v58  ;;  %v4151_v39 = vld [vmem:[%s5518_s5 + $0x198] sm:$0xff]   ;;  %v7330_v6 = vld [vmem:[#allocation21_spill] sm:$0xff] }
 0x13b   : > { %7327 = vst [vmem:[#allocation54_spill] sm:$0xff] %v5891_v20  ;;  %v4732_v19 = vpop.eup %4731  ;;  %v711_v9 = vmul.f32 %v5090_v27, %v4730_v4  ;;  %v3924_v41 = vunpack.c.h.bf16 %v4119_v49  ;;  %v4052_v49 = vunpack.c.h.bf16 %v4151_v39 }
 0x13c   : > { %7328 = vst [vmem:[#allocation55_spill] sm:$0xff] %v5895_v32  ;;  %4741 = vrsqrt.f32 %v589_v46  ;;  %v1279_v56 = vpack.c.bf16 %v1157_v13, %v1156_v36  ;;  %v710_v18 = vmul.f32 %v5091_v7, %v4732_v19  ;;  %v5092_v46 = vld [vmem:[%s5511_s23 + $0x78] sm:$0xff]  ;;  %v5915_v36 = vmul.f32 0.36055514, %v3923_v44  ;;  %v5093_v19 = vld [vmem:[%s5511_s23 + $0x70] sm:$0xff] }
 0x13d   : > { %4743 = vrsqrt.f32 %v588_v28  ;;  %v485_v54 = vpop.xlane.xlu1 %484  ;;  %v483_v23 = vpop.xlane.xlu0 %482  ;;  %v1159_v63 = vadd.f32 %v5709_v59, %v711_v9  ;;  %v5908_v35 = vadd.f32 %v5715_v15, %v711_v9  ;;  %v4051_v59 = vunpack.c.l.bf16 %v4151_v39  ;;  %v4120_v9 = vld [vmem:[%s5518_s5 + $0xa0] sm:$0xff]   ;;  %v7332_v44 = vld [vmem:[#allocation24_spill] sm:$0xff] }
 0x13e   : > { %v4734_v43 = vpop.eup %4733  ;;  %v591_v40 = vmax.f32 %v485_v54, 1e-24  ;;  %v590_v58 = vmax.f32 %v483_v23, 1e-24  ;;  %v1158_v37 = vadd.f32 %v5703_v52, %v710_v18  ;;  %v5912_v13 = vadd.f32 %v7330_v6, %v710_v18  ;;  %v7335_v6 = vld [vmem:[#allocation23_spill] sm:$0xff] }
 0x13f   : > { %7329 = vst [vmem:[#allocation56_spill] sm:$0xff] %v5908_v35  ;;  %v4736_v4 = vpop.eup %4735  ;;  %4333 = vmatmul.mubr.bf16.gmra.mrb[8].mxu0 %v1279_v56  ;;  %v713_v28 = vmul.f32 %v5092_v46, %v4734_v43  ;;  %v5922_v54 = vmul.f32 0.36055514, %v3924_v41  ;;  %v5094_v46 = vld [vmem:[%s5511_s23 + $0x88] sm:$0xff]  ;;  %v5932_v41 = vmul.f32 0.36055514, %v4051_v59 }
 0x140   : > { %7331 = vst [vmem:[#allocation21_spill] sm:$0xff] %v5912_v13  ;;  %4745 = vrsqrt.f32 %v591_v40  ;;  %v1280_v15 = vpack.c.bf16 %v1159_v63, %v1158_v37  ;;  %v712_v27 = vmul.f32 %v5093_v19, %v4736_v4  ;;  %v7334_v40 = vld [vmem:[#allocation22_spill] sm:$0xff]  ;;  %v5934_v52 = vmul.f32 0.36055514, %v4052_v49 }
 0x141   : > { %4747 = vrsqrt.f32 %v590_v58  ;;  %v489_v7 = vpop.xlane.xlu1 %488  ;;  %v487_v18 = vpop.xlane.xlu0 %486  ;;  %v1161_v56 = vadd.f32 %v5720_v26, %v713_v28  ;;  %v5925_v23 = vadd.f32 %v7332_v44, %v713_v28  ;;  %v3927_v26 = vunpack.c.l.bf16 %v4120_v9  ;;  %v5095_v44 = vld [vmem:[%s5511_s23 + $0x80] sm:$0xff] }
 0x142   : > { %v4738_v39 = vpop.eup %4737  ;;  %v593_v63 = vmax.f32 %v489_v7, 1e-24  ;;  %4336 = vmatprep.mubr.bf16.mxu0 %v1280_v15  ;;  %v592_v43 = vmax.f32 %v487_v18, 1e-24  ;;  %v1160_v37 = vadd.f32 %v7334_v40, %v712_v27  ;;  %v5929_v4 = vadd.f32 %v7335_v6, %v712_v27  ;;  %v4152_v18 = vld [vmem:[%s5518_s5 + $0x1a0] sm:$0xff]   ;;  %v7337_v6 = vld [vmem:[#allocation26_spill] sm:$0xff] }
 0x143   : > { %7333 = vst [vmem:[#allocation24_spill] sm:$0xff] %v5925_v23  ;;  %v4740_v58 = vpop.eup %4739  ;;  %v715_v19 = vmul.f32 %v5094_v46, %v4738_v39  ;;  %v3928_v39 = vunpack.c.h.bf16 %v4120_v9  ;;  %v7338_v46 = vld [vmem:[#allocation29_spill] sm:$0xff]  ;;  %v5949_v10 = vmul.f32 0.36055514, %v3927_v26  ;;  %v4055_v9 = vunpack.c.l.bf16 %v4152_v18 }
 0x144   : > { %7336 = vst [vmem:[#allocation22_spill] sm:$0xff] %v5929_v4  ;;  %4749 = vrsqrt.f32 %v593_v63  ;;  %v1281_v28 = vpack.c.bf16 %v1161_v56, %v1160_v37  ;;  %v714_v7 = vmul.f32 %v5095_v44, %v4740_v58  ;;  %v7340_v37 = vld [vmem:[#allocation25_spill] sm:$0xff]  ;;  %v7341_v44 = vld [vmem:[#allocation28_spill] sm:$0xff] }
 0x145   : > { %4751 = vrsqrt.f32 %v592_v43  ;;  %v493_v27 = vpop.xlane.xlu1 %492  ;;  %v491_v40 = vpop.xlane.xlu0 %490  ;;  %v1163_v17 = vadd.f32 %v7337_v6, %v715_v19  ;;  %v5942_v59 = vadd.f32 %v7338_v46, %v715_v19  ;;  %v5096_v43 = vld [vmem:[%s5511_s23 + $0x98] sm:$0xff]  ;;  %v4056_v6 = vunpack.c.h.bf16 %v4152_v18  ;;  %v5097_v46 = vld [vmem:[%s5511_s23 + $0x90] sm:$0xff]  ;;  %v7344_v26 = vld [vmem:[#allocation33_spill] sm:$0xff] }
 0x146   : > { %v4742_v49 = vpop.eup %4741  ;;  %v595_v56 = vmax.f32 %v493_v27, 1e-24  ;;  %v594_v63 = vmax.f32 %v491_v40, 1e-24  ;;  %v1162_v58 = vadd.f32 %v7340_v37, %v714_v7  ;;  %v5946_v29 = vadd.f32 %v7341_v44, %v714_v7  ;;  %v4121_v27 = vld [vmem:[%s5518_s5 + $0xa8] sm:$0xff]  }
 0x147   : > { %7339 = vst [vmem:[#allocation23_spill] sm:$0xff] %v5942_v59  ;;  %v4744_v15 = vpop.eup %4743  ;;  %4337 = vmatmul.mubr.bf16.gmra.mrb[12].mxu0 %v1281_v28  ;;  %v717_v11 = vmul.f32 %v5096_v43, %v4742_v49  ;;  %v7343_v44 = vld [vmem:[#allocation30_spill] sm:$0xff]  ;;  %v5956_v42 = vmul.f32 0.36055514, %v3928_v39  ;;  %v7347_v43 = vld [vmem:[#allocation32_spill] sm:$0xff] }
 0x148   : > { %7342 = vst [vmem:[#allocation26_spill] sm:$0xff] %v5946_v29  ;;  %4753 = vrsqrt.f32 %v595_v56  ;;  %v1282_v19 = vpack.c.bf16 %v1163_v17, %v1162_v58  ;;  %v716_v51 = vmul.f32 %v5097_v46, %v4744_v15  ;;  %v7346_v56 = vld [vmem:[#allocation27_spill] sm:$0xff]  ;;  %v5098_v40 = vld [vmem:[%s5511_s23 + $0xa8] sm:$0xff]  ;;  %v5966_v39 = vmul.f32 0.36055514, %v4055_v9 }
 0x149   : > { %4755 = vrsqrt.f32 %v594_v63  ;;  %v497_v7 = vpop.xlane.xlu1 %496  ;;  %v495_v37 = vpop.xlane.xlu0 %494  ;;  %v1165_v28 = vadd.f32 %v7343_v44, %v717_v11  ;;  %v5959_v49 = vadd.f32 %v7344_v26, %v717_v11  ;;  %v3931_v44 = vunpack.c.l.bf16 %v4121_v27  ;;  %v5099_v26 = vld [vmem:[%s5511_s23 + $0xa0] sm:$0xff] }
 0x14a   : > { %v4746_v18 = vpop.eup %4745  ;;  %v597_v17 = vmax.f32 %v497_v7, 1e-24  ;;  %4340 = vmatprep.mubr.bf16.mxu0 %v1282_v19  ;;  %v596_v15 = vmax.f32 %v495_v37, 1e-24  ;;  %v1164_v58 = vadd.f32 %v7346_v56, %v716_v51  ;;  %v5963_v46 = vadd.f32 %v7347_v43, %v716_v51  ;;  %v4153_v37 = vld [vmem:[%s5518_s5 + $0x1a8] sm:$0xff]  }
 0x14b   : > { %7345 = vst [vmem:[#allocation29_spill] sm:$0xff] %v5959_v49  ;;  %v4748_v63 = vpop.eup %4747  ;;  %v719_v29 = vmul.f32 %v5098_v40, %v4746_v18  ;;  %v5968_v59 = vmul.f32 0.36055514, %v4056_v6  ;;  %v7349_v43 = vld [vmem:[#allocation34_spill] sm:$0xff]  ;;  %v3932_v40 = vunpack.c.h.bf16 %v4121_v27  ;;  %v5983_v49 = vmul.f32 0.36055514, %v3931_v44 }
 0x14c   : > { %7348 = vst [vmem:[#allocation25_spill] sm:$0xff] %v5963_v46  ;;  %4757 = vrsqrt.f32 %v597_v17  ;;  %v1283_v11 = vpack.c.bf16 %v1165_v28, %v1164_v58  ;;  %v718_v7 = vmul.f32 %v5099_v26, %v4748_v63  ;;  %v7350_v18 = vld [vmem:[#allocation38_spill] sm:$0xff]  ;;  %v7352_v58 = vld [vmem:[#allocation31_spill] sm:$0xff]  ;;  %v4059_v27 = vunpack.c.l.bf16 %v4153_v37  ;;  %v7356_v44 = vld [vmem:[#allocation40_spill] sm:$0xff] }
 0x14d   : > { %4759 = vrsqrt.f32 %v596_v15  ;;  %v501_v51 = vpop.xlane.xlu1 %500  ;;  %v499_v56 = vpop.xlane.xlu0 %498  ;;  %v1167_v4 = vadd.f32 %v7349_v43, %v719_v29  ;;  %v5976_v9 = vadd.f32 %v7350_v18, %v719_v29  ;;  %v7353_v26 = vld [vmem:[#allocation35_spill] sm:$0xff]  ;;  %v5100_v15 = vld [vmem:[%s5511_s23 + $0xb8] sm:$0xff]  ;;  %v4060_v43 = vunpack.c.h.bf16 %v4153_v37 }
 0x14e   : > { %v4750_v6 = vpop.eup %4749  ;;  %v599_v28 = vmax.f32 %v501_v51, 1e-24  ;;  %v598_v17 = vmax.f32 %v499_v56, 1e-24  ;;  %v1166_v63 = vadd.f32 %v7352_v58, %v718_v7  ;;  %v5980_v23 = vadd.f32 %v7353_v26, %v718_v7  ;;  %v5101_v18 = vld [vmem:[%s5511_s23 + $0xb0] sm:$0xff]  ;;  %v7355_v26 = vld [vmem:[#allocation37_spill] sm:$0xff] }
 0x14f   : > { %7351 = vst [vmem:[#allocation28_spill] sm:$0xff] %v5976_v9  ;;  %v4752_v19 = vpop.eup %4751  ;;  %4341 = vmatmul.mubr.bf16.gmra.mrb[16].mxu0 %v1283_v11  ;;  %v721_v46 = vmul.f32 %v5100_v15, %v4750_v6  ;;  %v4122_v51 = vld [vmem:[%s5518_s5 + $0xb0] sm:$0xff]   ;;  %v5990_v35 = vmul.f32 0.36055514, %v3932_v40  ;;  %v5102_v56 = vld [vmem:[%s5511_s23 + $0xc8] sm:$0xff] }
 0x150   : > { %7354 = vst [vmem:[#allocation30_spill] sm:$0xff] %v5980_v23  ;;  %4761 = vrsqrt.f32 %v599_v28  ;;  %v1284_v29 = vpack.c.bf16 %v1167_v4, %v1166_v63  ;;  %v720_v13 = vmul.f32 %v5101_v18, %v4752_v19  ;;  %v7358_v28 = vld [vmem:[#allocation36_spill] sm:$0xff]  ;;  %v7359_v15 = vld [vmem:[#allocation39_spill] sm:$0xff]  ;;  %v6000_v40 = vmul.f32 0.36055514, %v4059_v27 }
 0x151   : > { %4763 = vrsqrt.f32 %v598_v17  ;;  %v505_v7 = vpop.xlane.xlu1 %504  ;;  %v503_v58 = vpop.xlane.xlu0 %502  ;;  %v1169_v11 = vadd.f32 %v7355_v26, %v721_v46  ;;  %v5993_v6 = vadd.f32 %v7356_v44, %v721_v46  ;;  %v3935_v26 = vunpack.c.l.bf16 %v4122_v51  ;;  %v5103_v44 = vld [vmem:[%s5511_s23 + $0xc0] sm:$0xff] }
 0x152   : > { %v4754_v37 = vpop.eup %4753  ;;  %v601_v4 = vmax.f32 %v505_v7, 1e-24  ;;  %4344 = vmatprep.mubr.bf16.mxu0 %v1284_v29  ;;  %v600_v19 = vmax.f32 %v503_v58, 1e-24  ;;  %v1168_v63 = vadd.f32 %v7358_v28, %v720_v13  ;;  %v5997_v18 = vadd.f32 %v7359_v15, %v720_v13  ;;  %v4154_v58 = vld [vmem:[%s5518_s5 + $0x1b0] sm:$0xff]   ;;  %v7361_v15 = vld [vmem:[#allocation42_spill] sm:$0xff] }
 0x153   : > { %7357 = vst [vmem:[#allocation33_spill] sm:$0xff] %v5993_v6  ;;  %v4756_v17 = vpop.eup %4755  ;;  %v723_v23 = vmul.f32 %v5102_v56, %v4754_v37  ;;  %v6002_v9 = vmul.f32 0.36055514, %v4060_v43  ;;  %v3936_v56 = vunpack.c.h.bf16 %v4122_v51  ;;  %v7362_v37 = vld [vmem:[#allocation44_spill] sm:$0xff]  ;;  %v6017_v6 = vmul.f32 0.36055514, %v3935_v26 }
 0x154   : > { %7360 = vst [vmem:[#allocation27_spill] sm:$0xff] %v5997_v18  ;;  %4765 = vrsqrt.f32 %v601_v4  ;;  %v1285_v46 = vpack.c.bf16 %v1169_v11, %v1168_v63  ;;  %v722_v7 = vmul.f32 %v5103_v44, %v4756_v17  ;;  %v7364_v63 = vld [vmem:[#allocation41_spill] sm:$0xff]  ;;  %v7365_v44 = vld [vmem:[#allocation43_spill] sm:$0xff]  ;;  %v4063_v51 = vunpack.c.l.bf16 %v4154_v58 }
 0x155   : > { %4767 = vrsqrt.f32 %v600_v19  ;;  %v509_v13 = vpop.xlane.xlu1 %508  ;;  %v507_v28 = vpop.xlane.xlu0 %506  ;;  %v1171_v32 = vadd.f32 %v7361_v15, %v723_v23  ;;  %v6010_v27 = vadd.f32 %v7362_v37, %v723_v23  ;;  %v5104_v19 = vld [vmem:[%s5511_s23 + $0xd8] sm:$0xff]  ;;  %v4064_v15 = vunpack.c.h.bf16 %v4154_v58  ;;  %v5105_v37 = vld [vmem:[%s5511_s23 + $0xd0] sm:$0xff]  ;;  %v7368_v26 = vld [vmem:[#allocation49_spill] sm:$0xff] }
 0x156   : > { %v4758_v43 = vpop.eup %4757  ;;  %v603_v11 = vmax.f32 %v509_v13, 1e-24  ;;  %v602_v4 = vmax.f32 %v507_v28, 1e-24  ;;  %v1170_v17 = vadd.f32 %v7364_v63, %v722_v7  ;;  %v6014_v20 = vadd.f32 %v7365_v44, %v722_v7  ;;  %v4123_v13 = vld [vmem:[%s5518_s5 + $0xb8] sm:$0xff]   ;;  %v7367_v44 = vld [vmem:[#allocation46_spill] sm:$0xff] }
 0x157   : > { %7363 = vst [vmem:[#allocation32_spill] sm:$0xff] %v6010_v27  ;;  %v4760_v29 = vpop.eup %4759  ;;  %4345 = vmatmul.mubr.bf16.gmra.mrb[20].mxu0 %v1285_v46  ;;  %v725_v18 = vmul.f32 %v5104_v19, %v4758_v43  ;;  %v6024_v2 = vmul.f32 0.36055514, %v3936_v56  ;;  %v7371_v19 = vld [vmem:[#allocation48_spill] sm:$0xff]  ;;  %v5106_v28 = vld [vmem:[%s5511_s23 + $0xe8] sm:$0xff] }
 0x158   : > { %7366 = vst [vmem:[#allocation34_spill] sm:$0xff] %v6014_v20  ;;  %4769 = vrsqrt.f32 %v603_v11  ;;  %v1286_v23 = vpack.c.bf16 %v1171_v32, %v1170_v17  ;;  %v724_v22 = vmul.f32 %v5105_v37, %v4760_v29  ;;  %v7370_v11 = vld [vmem:[#allocation45_spill] sm:$0xff]  ;;  %v6034_v56 = vmul.f32 0.36055514, %v4063_v51 }
 0x159   : > { %4771 = vrsqrt.f32 %v602_v4  ;;  %v513_v7 = vpop.xlane.xlu1 %512  ;;  %v511_v63 = vpop.xlane.xlu0 %510  ;;  %v1173_v46 = vadd.f32 %v7367_v44, %v725_v18  ;;  %v6027_v43 = vadd.f32 %v7368_v26, %v725_v18  ;;  %v3939_v44 = vunpack.c.l.bf16 %v4123_v13  ;;  %v5107_v26 = vld [vmem:[%s5511_s23 + $0xe0] sm:$0xff] }
 0x15a   : > { %v4762_v58 = vpop.eup %4761  ;;  %v605_v32 = vmax.f32 %v513_v7, 1e-24  ;;  %4348 = vmatprep.mubr.bf16.mxu0 %v1286_v23  ;;  %v604_v29 = vmax.f32 %v511_v63, 1e-24  ;;  %v1172_v17 = vadd.f32 %v7370_v11, %v724_v22  ;;  %v6031_v37 = vadd.f32 %v7371_v19, %v724_v22  ;;  %v4155_v63 = vld [vmem:[%s5518_s5 + $0x1b8] sm:$0xff]   ;;  %v7373_v19 = vld [vmem:[#allocation50_spill] sm:$0xff] }
 0x15b   : > { %7369 = vst [vmem:[#allocation38_spill] sm:$0xff] %v6027_v43  ;;  %v4764_v4 = vpop.eup %4763  ;;  %v727_v20 = vmul.f32 %v5106_v28, %v4762_v58  ;;  %v6036_v27 = vmul.f32 0.36055514, %v4064_v15  ;;  %v3940_v28 = vunpack.c.h.bf16 %v4123_v13  ;;  %v4067_v13 = vunpack.c.l.bf16 %v4155_v63 }
 0x15c   : > { %7372 = vst [vmem:[#allocation31_spill] sm:$0xff] %v6031_v37  ;;  %4773 = vrsqrt.f32 %v605_v32  ;;  %v1287_v18 = vpack.c.bf16 %v1173_v46, %v1172_v17  ;;  %v726_v7 = vmul.f32 %v5107_v26, %v4764_v4  ;;  %v7374_v32 = vld [vmem:[#allocation47_spill] sm:$0xff]  ;;  %v6051_v37 = vmul.f32 0.36055514, %v3939_v44 }
 0x15d   : > { %4775 = vrsqrt.f32 %v604_v29  ;;  %v517_v22 = vpop.xlane.xlu1 %516  ;;  %v515_v11 = vpop.xlane.xlu0 %514  ;;  %v1175_v1 = vadd.f32 %v7373_v19, %v727_v20  ;;  %v6044_v51 = vadd.f32 %v5793_v33, %v727_v20  ;;  %v5108_v29 = vld [vmem:[%s5511_s23 + $0xf8] sm:$0xff]  ;;  %v4068_v19 = vunpack.c.h.bf16 %v4155_v63  ;;  %v5109_v20 = vld [vmem:[%s5511_s23 + $0xf0] sm:$0xff] }
 0x15e   : > { %v4766_v15 = vpop.eup %4765  ;;  %v607_v46 = vmax.f32 %v517_v22, 1e-24  ;;  %v606_v58 = vmax.f32 %v515_v11, 1e-24  ;;  %v1174_v17 = vadd.f32 %v7374_v32, %v726_v7  ;;  %v6048_v4 = vadd.f32 %v5790_v62, %v726_v7  ;;  %v4124_v22 = vld [vmem:[%s5518_s5 + $0xc0] sm:$0xff]  }
 0x15f   : > { %v4768_v26 = vpop.eup %4767  ;;  %4349 = vmatmul.mubr.bf16.gmra.mrb[24].mxu0 %v1287_v18  ;;  %v729_v23 = vmul.f32 %v5108_v29, %v4766_v15  ;;  %v6058_v32 = vmul.f32 0.36055514, %v3940_v28  ;;  %v6068_v28 = vmul.f32 0.36055514, %v4067_v13 }
 0x160   : > { %4777 = vrsqrt.f32 %v607_v46  ;;  %v1288_v33 = vpack.c.bf16 %v1175_v1, %v1174_v17  ;;  %v728_v43 = vmul.f32 %v5109_v20, %v4768_v26  ;;  %v5110_v26 = vld [vmem:[%s5511_s23 + $0x108] sm:$0xff]  ;;  %v6070_v20 = vmul.f32 0.36055514, %v4068_v19 }
 0x161   : > { %4779 = vrsqrt.f32 %v606_v58  ;;  %v521_v62 = vpop.xlane.xlu1 %520  ;;  %v519_v7 = vpop.xlane.xlu0 %518  ;;  %v1177_v18 = vadd.f32 %v5798_v21, %v729_v23  ;;  %v6061_v44 = vadd.f32 %v5804_v0, %v729_v23  ;;  %v3943_v21 = vunpack.c.l.bf16 %v4124_v22  ;;  %v5111_v23 = vld [vmem:[%s5511_s23 + $0x100] sm:$0xff] }
 0x162   : > { %v4770_v63 = vpop.eup %4769  ;;  %v609_v1 = vmax.f32 %v521_v62, 1e-24  ;;  %4352 = vmatprep.mubr.bf16.mxu0 %v1288_v33  ;;  %v608_v15 = vmax.f32 %v519_v7, 1e-24  ;;  %v1176_v46 = vadd.f32 %v5796_v3, %v728_v43  ;;  %v6065_v17 = vadd.f32 %v5802_v45, %v728_v43  ;;  %v4156_v3 = vld [vmem:[%s5518_s5 + $0x1c0] sm:$0xff]  }
 0x163   : > { %v4772_v58 = vpop.eup %4771  ;;  %v731_v29 = vmul.f32 %v5110_v26, %v4770_v63  ;;  %v3944_v63 = vunpack.c.h.bf16 %v4124_v22  ;;  %v6085_v33 = vmul.f32 0.36055514, %v3943_v21  ;;  %v4072_v22 = vunpack.c.h.bf16 %v4156_v3 }
 0x164   : > { %7375 = vst [vmem:[#allocation35_spill] sm:$0xff] %v6065_v17  ;;  %4781 = vrsqrt.f32 %v609_v1  ;;  %v1289_v0 = vpack.c.bf16 %v1177_v18, %v1176_v46  ;;  %v730_v62 = vmul.f32 %v5111_v23, %v4772_v58  ;;  %v4125_v17 = vld [vmem:[%s5518_s5 + $0xc8] sm:$0xff]  }
 0x165   : > { %4783 = vrsqrt.f32 %v608_v15  ;;  %v525_v45 = vpop.xlane.xlu1 %524  ;;  %v523_v43 = vpop.xlane.xlu0 %522  ;;  %v1179_v7 = vadd.f32 %v5806_v30, %v731_v29  ;;  %v6078_v13 = vadd.f32 %v5812_v60, %v731_v29  ;;  %v5112_v15 = vld [vmem:[%s5511_s23 + $0x118] sm:$0xff]  ;;  %v4071_v30 = vunpack.c.l.bf16 %v4156_v3  ;;  %v5113_v29 = vld [vmem:[%s5511_s23 + $0x110] sm:$0xff] }
 0x166   : > { %v4774_v19 = vpop.eup %4773  ;;  %v611_v18 = vmax.f32 %v525_v45, 1e-24  ;;  %v610_v1 = vmax.f32 %v523_v43, 1e-24  ;;  %v1178_v46 = vadd.f32 %v5800_v57, %v730_v62  ;;  %v6082_v58 = vadd.f32 %v5810_v31, %v730_v62  ;;  %v4697_v57 = vld [vmem:[#allocation8] sm:$0xff]   ;;  %v4126_v45 = vld [vmem:[%s5518_s5 + $0xd0] sm:$0xff]  }
 0x167   : > { %v4776_v26 = vpop.eup %4775  ;;  %4353 = vmatmul.mubr.bf16.gmra.mrb[28].mxu0 %v1289_v0  ;;  %v733_v23 = vmul.f32 %v5112_v15, %v4774_v19  ;;  %v6092_v43 = vmul.f32 0.36055514, %v3944_v63  ;;  %4452 = vmatprep.subr.bf16.mxu1 %v4697_v57  ;;  %v3947_v63 = vunpack.c.l.bf16 %v4125_v17  ;;  %v6102_v15 = vmul.f32 0.36055514, %v4071_v30 }
 0x168   : > { %4785 = vrsqrt.f32 %v611_v18  ;;  %v1290_v60 = vpack.c.bf16 %v1179_v7, %v1178_v46  ;;  %v732_v11 = vmul.f32 %v5113_v29, %v4776_v26  ;;  %v5114_v26 = vld [vmem:[%s5511_s23 + $0x128] sm:$0xff]  ;;  %4453 = vmatpush3.bf16.msra.mxu1 %v4697_v57 }
 0x169   : > { %4787 = vrsqrt.f32 %v610_v1  ;;  %v529_v31 = vpop.xlane.xlu1 %528  ;;  %v527_v62 = vpop.xlane.xlu0 %526  ;;  %v1181_v0 = vadd.f32 %v5854_v34, %v733_v23  ;;  %v6095_v21 = vadd.f32 %v5866_v24, %v733_v23  ;;  %v6104_v24 = vmul.f32 0.36055514, %v4072_v22  ;;  %v4698_v57 = vld [vmem:[#allocation8 + $0x8] sm:$0xff]  }
 0x16a   : > { %v4778_v3 = vpop.eup %4777  ;;  %v613_v7 = vmax.f32 %v529_v31, 1e-24  ;;  %4356 = vmatprep.mubr.bf16.mxu0 %v1290_v60  ;;  %v612_v19 = vmax.f32 %v527_v62, 1e-24  ;;  %v1180_v18 = vadd.f32 %v5847_v5, %v732_v11  ;;  %v6099_v1 = vadd.f32 %v5864_v25, %v732_v11  ;;  %v5115_v60 = vld [vmem:[%s5511_s23 + $0x120] sm:$0xff]  ;;  %v4157_v31 = vld [vmem:[%s5518_s5 + $0x1c8] sm:$0xff]   ;;  %4454 = vmatprep.subr.bf16.mxu1 %v4698_v57 }
 0x16b   : > { %v4780_v46 = vpop.eup %4779  ;;  %v735_v34 = vmul.f32 %v5114_v26, %v4778_v3  ;;  %v3948_v3 = vunpack.c.h.bf16 %v4125_v17  ;;  %v5116_v26 = vld [vmem:[%s5511_s23 + $0x138] sm:$0xff]  ;;  %v4075_v17 = vunpack.c.l.bf16 %v4157_v31  ;;  %v5117_v5 = vld [vmem:[%s5511_s23 + $0x130] sm:$0xff] }
 0x16c   : > { %4789 = vrsqrt.f32 %v613_v7  ;;  %v1291_v23 = vpack.c.bf16 %v1181_v0, %v1180_v18  ;;  %v734_v29 = vmul.f32 %v5115_v60, %v4780_v46  ;;  %4455 = vmatpush3.bf16.msra.mxu1 %v4698_v57 }
 0x16d   : > { %4791 = vrsqrt.f32 %v612_v19  ;;  %v533_v25 = vpop.xlane.xlu1 %532  ;;  %v531_v11 = vpop.xlane.xlu0 %530  ;;  %v1183_v62 = vadd.f32 %v5888_v53, %v735_v34  ;;  %v6112_v30 = vadd.f32 %v5900_v38, %v735_v34  ;;  %v6119_v53 = vmul.f32 0.36055514, %v3947_v63 }
 0x16e   : > { %v4782_v22 = vpop.eup %4781  ;;  %v615_v0 = vmax.f32 %v533_v25, 1e-24  ;;  %v614_v7 = vmax.f32 %v531_v11, 1e-24  ;;  %v1182_v18 = vadd.f32 %v5881_v14, %v734_v29  ;;  %v6116_v46 = vadd.f32 %v5898_v16, %v734_v29  ;;  %v4699_v16 = vld [vmem:[#allocation8 + $0x10] sm:$0xff]   ;;  %v4127_v14 = vld [vmem:[%s5518_s5 + $0xd8] sm:$0xff]  }
 0x16f   : > { %v4784_v19 = vpop.eup %4783  ;;  %4357 = vmatmul.mubr.bf16.gmra.mrb[32].mxu0 %v1291_v23  ;;  %v737_v60 = vmul.f32 %v5116_v26, %v4782_v22  ;;  %v4076_v38 = vunpack.c.h.bf16 %v4157_v31  ;;  %v6126_v11 = vmul.f32 0.36055514, %v3948_v3  ;;  %4456 = vmatprep.subr.bf16.mxu1 %v4699_v16  ;;  %v3951_v3 = vunpack.c.l.bf16 %v4126_v45 }
 0x170   : > { %4793 = vrsqrt.f32 %v615_v0  ;;  %v1292_v34 = vpack.c.bf16 %v1183_v62, %v1182_v18  ;;  %v736_v25 = vmul.f32 %v5117_v5, %v4784_v19  ;;  %v5118_v18 = vld [vmem:[%s5511_s23 + $0x148] sm:$0xff]  ;;  %v6136_v19 = vmul.f32 0.36055514, %v4075_v17  ;;  %4457 = vmatpush3.bf16.msra.mxu1 %v4699_v16  ;;  %v4700_v17 = vld [vmem:[#allocation8 + $0x18] sm:$0xff]  }
 0x171   : > { %4795 = vrsqrt.f32 %v614_v7  ;;  %v537_v23 = vpop.xlane.xlu1 %536  ;;  %v535_v29 = vpop.xlane.xlu0 %534  ;;  %v1185_v63 = vadd.f32 %v5922_v54, %v737_v60  ;;  %v6129_v31 = vadd.f32 %v5934_v52, %v737_v60  ;;  %v6138_v52 = vmul.f32 0.36055514, %v4076_v38  ;;  %v5119_v60 = vld [vmem:[%s5511_s23 + $0x140] sm:$0xff]  ;;  %4458 = vmatprep.subr.bf16.mxu1 %v4700_v17 }
 0x172   : > { %v4786_v62 = vpop.eup %4785  ;;  %v617_v5 = vmax.f32 %v537_v23, 1e-24  ;;  %4360 = vmatprep.mubr.bf16.mxu0 %v1292_v34  ;;  %v616_v22 = vmax.f32 %v535_v29, 1e-24  ;;  %v1184_v57 = vadd.f32 %v5915_v36, %v736_v25  ;;  %v6133_v0 = vadd.f32 %v5932_v41, %v736_v25  ;;  %v4158_v23 = vld [vmem:[%s5518_s5 + $0x1d0] sm:$0xff]  }
 0x173   : > { %v4788_v7 = vpop.eup %4787  ;;  %v739_v54 = vmul.f32 %v5118_v18, %v4786_v62  ;;  %v3952_v62 = vunpack.c.h.bf16 %v4126_v45  ;;  %v5120_v18 = vld [vmem:[%s5511_s23 + $0x158] sm:$0xff]  ;;  %v4079_v45 = vunpack.c.l.bf16 %v4158_v23  ;;  %v5121_v36 = vld [vmem:[%s5511_s23 + $0x150] sm:$0xff] }
 0x174   : > { %4797 = vrsqrt.f32 %v617_v5  ;;  %v1293_v26 = vpack.c.bf16 %v1185_v63, %v1184_v57  ;;  %v738_v34 = vmul.f32 %v5119_v60, %v4788_v7  ;;  %4459 = vmatpush3.bf16.msra.mxu1 %v4700_v17 }
 0x175   : > { %4799 = vrsqrt.f32 %v616_v22  ;;  %v541_v41 = vpop.xlane.xlu1 %540  ;;  %v539_v25 = vpop.xlane.xlu0 %538  ;;  %v1187_v29 = vadd.f32 %v5956_v42, %v739_v54  ;;  %v6146_v38 = vadd.f32 %v5968_v59, %v739_v54  ;;  %v6153_v42 = vmul.f32 0.36055514, %v3951_v3 }
 0x176   : > { %v4790_v63 = vpop.eup %4789  ;;  %v619_v5 = vmax.f32 %v541_v41, 1e-24  ;;  %v618_v16 = vmax.f32 %v539_v25, 1e-24  ;;  %v1186_v57 = vadd.f32 %v5949_v10, %v738_v34  ;;  %v6150_v7 = vadd.f32 %v5966_v39, %v738_v34  ;;  %v4701_v39 = vld [vmem:[#allocation8 + $0x20] sm:$0xff]  }
 0x177   : > { %v4792_v22 = vpop.eup %4791  ;;  %4361 = vmatmul.mubr.bf16.gmra.mrb[36].mxu0 %v1293_v26  ;;  %v741_v60 = vmul.f32 %v5120_v18, %v4790_v63  ;;  %v4080_v59 = vunpack.c.h.bf16 %v4158_v23  ;;  %v6160_v25 = vmul.f32 0.36055514, %v3952_v62  ;;  %4460 = vmatprep.subr.bf16.mxu1 %v4701_v39  ;;  %v3955_v62 = vunpack.c.l.bf16 %v4127_v14  ;;  %v4128_v10 = vld [vmem:[%s5518_s5 + $0xe0] sm:$0xff]  }
 0x178   : > { %4801 = vrsqrt.f32 %v619_v5  ;;  %v1294_v54 = vpack.c.bf16 %v1187_v29, %v1186_v57  ;;  %v740_v41 = vmul.f32 %v5121_v36, %v4792_v22  ;;  %v5122_v57 = vld [vmem:[%s5511_s23 + $0x168] sm:$0xff]  ;;  %v6170_v22 = vmul.f32 0.36055514, %v4079_v45  ;;  %4461 = vmatpush3.bf16.msra.mxu1 %v4701_v39 }
 0x179   : > { %4803 = vrsqrt.f32 %v618_v16  ;;  %v545_v26 = vpop.xlane.xlu1 %544  ;;  %v543_v34 = vpop.xlane.xlu0 %542  ;;  %v1189_v3 = vadd.f32 %v5990_v35, %v741_v60  ;;  %v6163_v23 = vadd.f32 %v6002_v9, %v741_v60  ;;  %v6172_v9 = vmul.f32 0.36055514, %v4080_v59  ;;  %v5123_v60 = vld [vmem:[%s5511_s23 + $0x160] sm:$0xff]  ;;  %v4702_v45 = vld [vmem:[#allocation8 + $0x28] sm:$0xff]  }
 0x17a   : > { %v4794_v29 = vpop.eup %4793  ;;  %v621_v36 = vmax.f32 %v545_v26, 1e-24  ;;  %4364 = vmatprep.mubr.bf16.mxu0 %v1294_v54  ;;  %v620_v63 = vmax.f32 %v543_v34, 1e-24  ;;  %v1188_v17 = vadd.f32 %v5983_v49, %v740_v41  ;;  %v6167_v5 = vadd.f32 %v6000_v40, %v740_v41  ;;  %v4159_v26 = vld [vmem:[%s5518_s5 + $0x1d8] sm:$0xff]   ;;  %4462 = vmatprep.subr.bf16.mxu1 %v4702_v45  ;;  %v5125_v49 = vld [vmem:[%s5511_s23 + $0x170] sm:$0xff] }
 0x17b   : > { %v4796_v16 = vpop.eup %4795  ;;  %v743_v35 = vmul.f32 %v5122_v57, %v4794_v29  ;;  %v3956_v29 = vunpack.c.h.bf16 %v4127_v14  ;;  %v5124_v57 = vld [vmem:[%s5511_s23 + $0x178] sm:$0xff]  ;;  %v4083_v14 = vunpack.c.l.bf16 %v4159_v26 }
 0x17c   : > { %4805 = vrsqrt.f32 %v621_v36  ;;  %v1295_v18 = vpack.c.bf16 %v1189_v3, %v1188_v17  ;;  %v742_v54 = vmul.f32 %v5123_v60, %v4796_v16  ;;  %4463 = vmatpush3.bf16.msra.mxu1 %v4702_v45 }
 0x17d   : > { %4807 = vrsqrt.f32 %v620_v63  ;;  %v549_v40 = vpop.xlane.xlu1 %548  ;;  %v547_v41 = vpop.xlane.xlu0 %546  ;;  %v1191_v34 = vadd.f32 %v6024_v2, %v743_v35  ;;  %v6180_v59 = vadd.f32 %v6036_v27, %v743_v35  ;;  %v6187_v2 = vmul.f32 0.36055514, %v3955_v62 }
 0x17e   : > { %v4798_v3 = vpop.eup %4797  ;;  %v623_v36 = vmax.f32 %v549_v40, 1e-24  ;;  %v622_v39 = vmax.f32 %v547_v41, 1e-24  ;;  %v1190_v17 = vadd.f32 %v6017_v6, %v742_v54  ;;  %v6184_v16 = vadd.f32 %v6034_v56, %v742_v54  ;;  %v4703_v41 = vld [vmem:[#allocation8 + $0x30] sm:$0xff]   ;;  %v6225_v6 = vld [vmem:[%s5518_s5 + $0xe8] sm:$0xff]  }
 0x17f   : > { %v4800_v63 = vpop.eup %4799  ;;  %4365 = vmatmul.mubr.bf16.gmra.mrb[40].mxu0 %v1295_v18  ;;  %v745_v60 = vmul.f32 %v5124_v57, %v4798_v3  ;;  %v4084_v27 = vunpack.c.h.bf16 %v4159_v26  ;;  %v6194_v62 = vmul.f32 0.36055514, %v3956_v29  ;;  %v3959_v29 = vunpack.c.l.bf16 %v4128_v10  ;;  %4464 = vmatprep.subr.bf16.mxu1 %v4703_v41 }
 0x180   : > { %4809 = vrsqrt.f32 %v623_v36  ;;  %v1296_v35 = vpack.c.bf16 %v1191_v34, %v1190_v17  ;;  %v744_v40 = vmul.f32 %v5125_v49, %v4800_v63  ;;  %v5126_v17 = vld [vmem:[%s5511_s23 + $0x188] sm:$0xff]  ;;  %v6204_v63 = vmul.f32 0.36055514, %v4083_v14  ;;  %4465 = vmatpush3.bf16.msra.mxu1 %v4703_v41  ;;  %v4704_v14 = vld [vmem:[#allocation8 + $0x38] sm:$0xff]  }
 0x181   : > { %4811 = vrsqrt.f32 %v622_v39  ;;  %v553_v56 = vpop.xlane.xlu1 %552  ;;  %v551_v18 = vpop.xlane.xlu0 %550  ;;  %v1193_v54 = vadd.f32 %v6058_v32, %v745_v60  ;;  %v6197_v26 = vadd.f32 %v6070_v20, %v745_v60  ;;  %v6206_v20 = vmul.f32 0.36055514, %v4084_v27  ;;  %v5127_v60 = vld [vmem:[%s5511_s23 + $0x180] sm:$0xff]  ;;  %4466 = vmatprep.subr.bf16.mxu1 %v4704_v14 }
 0x182   : > { %v4802_v34 = vpop.eup %4801  ;;  %v625_v49 = vmax.f32 %v553_v56, 1e-24  ;;  %4368 = vmatprep.mubr.bf16.mxu0 %v1296_v35  ;;  %v624_v3 = vmax.f32 %v551_v18, 1e-24  ;;  %v1192_v36 = vadd.f32 %v6051_v37, %v744_v40  ;;  %v6201_v45 = vadd.f32 %v6068_v28, %v744_v40  ;;  %v4160_v28 = vld [vmem:[%s5518_s5 + $0x1e0] sm:$0xff]   ;;  %v5129_v37 = vld [vmem:[%s5511_s23 + $0x190] sm:$0xff] }
 0x183   : > { %v4804_v39 = vpop.eup %4803  ;;  %v747_v32 = vmul.f32 %v5126_v17, %v4802_v34  ;;  %v3960_v34 = vunpack.c.h.bf16 %v4128_v10  ;;  %v5128_v17 = vld [vmem:[%s5511_s23 + $0x198] sm:$0xff]  ;;  %v4087_v10 = vunpack.c.l.bf16 %v4160_v28 }
 0x184   : > { %4813 = vrsqrt.f32 %v625_v49  ;;  %v1297_v57 = vpack.c.bf16 %v1193_v54, %v1192_v36  ;;  %v746_v35 = vmul.f32 %v5127_v60, %v4804_v39  ;;  %4467 = vmatpush3.bf16.msra.mxu1 %v4704_v14 }
 0x185   : > { %4815 = vrsqrt.f32 %v624_v3  ;;  %v557_v40 = vpop.xlane.xlu1 %556  ;;  %v555_v56 = vpop.xlane.xlu0 %554  ;;  %v1195_v18 = vadd.f32 %v6092_v43, %v747_v32  ;;  %v6214_v27 = vadd.f32 %v6104_v24, %v747_v32  ;;  %v6221_v43 = vmul.f32 0.36055514, %v3959_v29 }
 0x186   : > { %v4806_v54 = vpop.eup %4805  ;;  %v627_v49 = vmax.f32 %v557_v40, 1e-24  ;;  %v626_v41 = vmax.f32 %v555_v56, 1e-24  ;;  %v1194_v36 = vadd.f32 %v6085_v33, %v746_v35  ;;  %v6218_v39 = vadd.f32 %v6102_v15, %v746_v35 }
 0x187   : > { %v4808_v3 = vpop.eup %4807  ;;  %4369 = vmatmul.mubr.bf16.gmra.mrb[44].mxu0 %v1297_v57  ;;  %v749_v60 = vmul.f32 %v5128_v17, %v4806_v54  ;;  %v4088_v24 = vunpack.c.h.bf16 %v4160_v28  ;;  %v6230_v35 = vmul.f32 0.36055514, %v3960_v34  ;;  %v3964_v34 = vunpack.c.h.bf16 %v6225_v6  ;;  %v5131_v17 = vld [vmem:[%s5511_s23 + $0x1a0] sm:$0xff] }
 0x188   : > { %4817 = vrsqrt.f32 %v627_v49  ;;  %v1298_v32 = vpack.c.bf16 %v1195_v18, %v1194_v36  ;;  %v748_v40 = vmul.f32 %v5129_v37, %v4808_v3  ;;  %v6242_v3 = vmul.f32 0.36055514, %v4087_v10 }
 0x189   : > { %4819 = vrsqrt.f32 %v626_v41  ;;  %v561_v15 = vpop.xlane.xlu1 %560  ;;  %v559_v57 = vpop.xlane.xlu0 %558  ;;  %v1197_v29 = vadd.f32 %v6126_v11, %v749_v60  ;;  %v6233_v28 = vadd.f32 %v6138_v52, %v749_v60  ;;  %v5130_v41 = vld [vmem:[%s5511_s23 + $0x1a8] sm:$0xff]  ;;  %v1139_v10 = vmul.f32 0.36055514, %v4088_v24 }
 0x18a   : > { %v4810_v56 = vpop.eup %4809  ;;  %v629_v37 = vmax.f32 %v561_v15, 1e-24  ;;  %4372 = vmatprep.mubr.bf16.mxu0 %v1298_v32  ;;  %v628_v18 = vmax.f32 %v559_v57, 1e-24  ;;  %v1196_v54 = vadd.f32 %v6119_v53, %v748_v40  ;;  %v6237_v14 = vadd.f32 %v6136_v19, %v748_v40  ;;  %v4161_v19 = vld [vmem:[%s5518_s5 + $0x1e8] sm:$0xff]  }
 0x18b   : > { %v4812_v49 = vpop.eup %4811  ;;  %v751_v36 = vmul.f32 %v5130_v41, %v4810_v56  ;;  %v4091_v33 = vunpack.c.l.bf16 %v4161_v19 }
 0x18c   : > { %4821 = vrsqrt.f32 %v629_v37  ;;  %v1299_v52 = vpack.c.bf16 %v1197_v29, %v1196_v54  ;;  %v750_v60 = vmul.f32 %v5131_v17, %v4812_v49  ;;  %v4130_v49 = vld [vmem:[%s5518_s5 + $0xf0] sm:$0xff]   ;;  %v5132_v17 = vld [vmem:[%s5511_s23 + $0x1b8] sm:$0xff] }
 0x18d   : > { %4823 = vrsqrt.f32 %v628_v18  ;;  %v565_v32 = vpop.xlane.xlu1 %564  ;;  %v563_v40 = vpop.xlane.xlu0 %562  ;;  %v1199_v15 = vadd.f32 %v6160_v25, %v751_v36  ;;  %v6250_v57 = vadd.f32 %v6172_v9, %v751_v36  ;;  %v1077_v25 = vmul.f32 0.36055514, %v3964_v34  ;;  %v5133_v36 = vld [vmem:[%s5511_s23 + $0x1b0] sm:$0xff] }
 0x18e   : > { %v4814_v56 = vpop.eup %4813  ;;  %v631_v37 = vmax.f32 %v565_v32, 1e-24  ;;  %v630_v29 = vmax.f32 %v563_v40, 1e-24  ;;  %v1198_v54 = vadd.f32 %v6153_v42, %v750_v60  ;;  %v6255_v41 = vadd.f32 %v6170_v22, %v750_v60  ;;  %v4162_v42 = vld [vmem:[%s5518_s5 + $0x1f0] sm:$0xff]  }
 0x18f   : > { %v4816_v18 = vpop.eup %4815  ;;  %4373 = vmatmul.mubr.bf16.gmra.mrb[48].mxu0 %v1299_v52  ;;  %v753_v53 = vmul.f32 %v5132_v17, %v4814_v56  ;;  %v4092_v9 = vunpack.c.h.bf16 %v4161_v19  ;;  %v3967_v52 = vunpack.c.l.bf16 %v4130_v49  ;;  %v4095_v32 = vunpack.c.l.bf16 %v4162_v42 }
 0x190   : > { %4825 = vrsqrt.f32 %v631_v37  ;;  %v1300_v24 = vpack.c.bf16 %v1199_v15, %v1198_v54  ;;  %v752_v11 = vmul.f32 %v5133_v36, %v4816_v18  ;;  %v5134_v18 = vld [vmem:[%s5511_s23 + $0x1c8] sm:$0xff]  ;;  %v3968_v36 = vunpack.c.h.bf16 %v4130_v49 }
 0x191   : > { %4827 = vrsqrt.f32 %v630_v29  ;;  %v569_v40 = vpop.xlane.xlu1 %568  ;;  %v567_v22 = vpop.xlane.xlu0 %566  ;;  %v1201_v60 = vadd.f32 %v6194_v62, %v753_v53  ;;  %v6264_v34 = vadd.f32 %v6206_v20, %v753_v53  ;;  %v1141_v62 = vmul.f32 0.36055514, %v4092_v9  ;;  %v5135_v53 = vld [vmem:[%s5511_s23 + $0x1c0] sm:$0xff] }
 0x192   : > { %v4818_v19 = vpop.eup %4817  ;;  %v633_v56 = vmax.f32 %v569_v40, 1e-24  ;;  %4376 = vmatprep.mubr.bf16.mxu0 %v1300_v24  ;;  %v632_v15 = vmax.f32 %v567_v22, 1e-24  ;;  %v1200_v37 = vadd.f32 %v6187_v2, %v752_v11  ;;  %v6268_v54 = vadd.f32 %v6204_v63, %v752_v11  ;;  %v4131_v63 = vld [vmem:[%s5518_s5 + $0xf8] sm:$0xff]  }
 0x193   : > { %7376 = vst [vmem:[#allocation37_spill] sm:$0xff] %v6264_v34  ;;  %v4820_v29 = vpop.eup %4819  ;;  %v755_v17 = vmul.f32 %v5134_v18, %v4818_v19  ;;  %v4096_v22 = vunpack.c.h.bf16 %v4162_v42  ;;  %v7378_v19 = vunpack.c.l.bf16 %v6225_v6  ;;  %v5137_v42 = vld [vmem:[%s5511_s23 + $0x1d0] sm:$0xff] }
 0x194   : > { %7377 = vst [vmem:[#allocation40_spill] sm:$0xff] %v6268_v54  ;;  %4829 = vrsqrt.f32 %v633_v56  ;;  %v1301_v20 = vpack.c.bf16 %v1201_v60, %v1200_v37  ;;  %v754_v40 = vmul.f32 %v5135_v53, %v4820_v29  ;;  %v1140_v37 = vmul.f32 0.36055514, %v4091_v33  ;;  %v4163_v29 = vld [vmem:[%s5518_s5 + $0x1f8] sm:$0xff]  }
 0x195   : > { %4831 = vrsqrt.f32 %v632_v15  ;;  %v1203_v2 = vadd.f32 %v6230_v35, %v755_v17  ;;  %v6276_v11 = vadd.f32 %v1139_v10, %v755_v17  ;;  %v1076_v60 = vmul.f32 0.36055514, %v7378_v19  ;;  %v5136_v15 = vld [vmem:[%s5511_s23 + $0x1d8] sm:$0xff] }
 0x196   : > { %v4822_v49 = vpop.eup %4821  ;;  %v1202_v9 = vadd.f32 %v6221_v43, %v754_v40  ;;  %v6282_v56 = vadd.f32 %v6242_v3, %v754_v40  ;;  %v1078_v53 = vmul.f32 0.36055514, %v3967_v52  ;;  %v1079_v10 = vmul.f32 0.36055514, %v3968_v36 }
 0x197   : > { %v4824_v18 = vpop.eup %4823  ;;  %4377 = vmatmul.mubr.bf16.gmra.mrb[52].mxu0 %v1301_v20  ;;  %v757_v35 = vmul.f32 %v5136_v15, %v4822_v49  ;;  %v1142_v17 = vmul.f32 0.36055514, %v4095_v32  ;;  %v3972_v43 = vunpack.c.h.bf16 %v4131_v63  ;;  %v1143_v33 = vmul.f32 0.36055514, %v4096_v22 }
 0x198   : > { %v1302_v24 = vpack.c.bf16 %v1203_v2, %v1202_v9  ;;  %v756_v54 = vmul.f32 %v5137_v42, %v4824_v18  ;;  %v1334_v6 = vpack.c.bf16 %v6276_v11, %v6282_v56  ;;  %v4100_v19 = vunpack.c.h.bf16 %v4163_v29  ;;  %v5138_v9 = vld [vmem:[%s5511_s23 + $0x1e8] sm:$0xff]  ;;  %v5139_v42 = vld [vmem:[%s5511_s23 + $0x1e0] sm:$0xff] }
 0x199   : > { %v1205_v3 = vadd.f32 %v1077_v25, %v757_v35  ;;  %v6289_v40 = vadd.f32 %v1141_v62, %v757_v35  ;;  %v3971_v52 = vunpack.c.l.bf16 %v4131_v63  ;;  %v4099_v32 = vunpack.c.l.bf16 %v4163_v29 }
 0x19a   : > { %v4826_v20 = vpop.eup %4825  ;;  %4380 = vmatprep.mubr.bf16.mxu0 %v1302_v24  ;;  %v1204_v49 = vadd.f32 %v1076_v60, %v756_v54  ;;  %v6291_v36 = vadd.f32 %v1140_v37, %v756_v54  ;;  %v1081_v22 = vmul.f32 0.36055514, %v3972_v43  ;;  %v1145_v24 = vmul.f32 0.36055514, %v4100_v19 }
 0x19b   : > { %v4828_v2 = vpop.eup %4827  ;;  %v759_v18 = vmul.f32 %v5138_v9, %v4826_v20  ;;  %v1080_v60 = vmul.f32 0.36055514, %v3971_v52  ;;  %v1144_v29 = vmul.f32 0.36055514, %v4099_v32  ;;  %v5141_v9 = vld [vmem:[%s5511_s23 + $0x1f0] sm:$0xff]  ;;  %v7379_v52 = vpack.c.bf16 %v5829_v55, %v5822_v48  ;;  %v7390_v55 = vld [vmem:[#allocation56_spill] sm:$0xff] }
 0x19c   : > { %v1303_v15 = vpack.c.bf16 %v1205_v3, %v1204_v49  ;;  %v758_v34 = vmul.f32 %v5139_v42, %v4828_v2  ;;  %v1335_v25 = vpack.c.bf16 %v6289_v40, %v6291_v36  ;;  %v5140_v3 = vld [vmem:[%s5511_s23 + $0x1f8] sm:$0xff]  ;;  %v7380_v32 = vpack.c.bf16 %v5825_v47, %v5818_v50 }
 0x19d   : > { %v1207_v62 = vadd.f32 %v1079_v10, %v759_v18  ;;  %v6297_v35 = vadd.f32 %v1143_v33, %v759_v18  ;;  %v7381_v18 = vpack.c.bf16 %v5840_v8, %v5844_v61  ;;  %v7393_v47 = vld [vmem:[#allocation24_spill] sm:$0xff]  ;;  %v7396_v61 = vld [vmem:[#allocation23_spill] sm:$0xff] }
 0x19e   : > { %v4830_v63 = vpop.eup %4829  ;;  %v1206_v54 = vadd.f32 %v1078_v53, %v758_v34  ;;  %v6299_v37 = vadd.f32 %v1142_v17, %v758_v34 }
 0x19f   : > { %v4832_v20 = vpop.eup %4831  ;;  %4381 = vmatmul.mubr.bf16.gmra.mrb[56].mxu0 %v1303_v15  ;;  %v761_v49 = vmul.f32 %v5140_v3, %v4830_v63  ;;  %v7382_v15 = vld [vmem:[#allocation51_spill] sm:$0xff]  ;;  %v7397_v3 = vld [vmem:[#allocation26_spill] sm:$0xff] }
 0x1a0   : > { %v1304_v2 = vpack.c.bf16 %v1207_v62, %v1206_v54  ;;  %v760_v42 = vmul.f32 %v5141_v9, %v4832_v20  ;;  %v1336_v10 = vpack.c.bf16 %v6297_v35, %v6299_v37  ;;  %v7383_v62 = vpack.c.bf16 %v5857_v12, %v7382_v15  ;;  %v7387_v54 = vld [vmem:[#allocation54_spill] sm:$0xff] }
 0x1a1   : > { %v1209_v43 = vadd.f32 %v1081_v22, %v761_v49  ;;  %v6305_v33 = vadd.f32 %v1145_v24, %v761_v49  ;;  %v7384_v22 = vld [vmem:[#allocation52_spill] sm:$0xff]  ;;  %v7385_v24 = vld [vmem:[#allocation53_spill] sm:$0xff]  ;;  %v7394_v20 = vld [vmem:[#allocation22_spill] sm:$0xff]  ;;  %v7398_v12 = vpack.c.bf16 %v7396_v61, %v7397_v3 }
 0x1a2   : > { %4384 = vmatprep.mubr.bf16.mxu0 %v1304_v2  ;;  %v1208_v19 = vadd.f32 %v1080_v60, %v760_v42  ;;  %v6307_v53 = vadd.f32 %v1144_v29, %v760_v42  ;;  %v7386_v63 = vpack.c.bf16 %v7384_v22, %v7385_v24  ;;  %v7388_v60 = vld [vmem:[#allocation55_spill] sm:$0xff]  ;;  %v7391_v29 = vld [vmem:[#allocation21_spill] sm:$0xff]  ;;  %v7395_v8 = vpack.c.bf16 %v7393_v47, %v7394_v20  ;;  %v7402_v42 = vld [vmem:[#allocation28_spill] sm:$0xff] }
 0x1a3   : > { %v7389_v48 = vpack.c.bf16 %v7387_v54, %v7388_v60  ;;  %v7392_v50 = vpack.c.bf16 %v7390_v55, %v7391_v29  ;;  %v7399_v49 = vld [vmem:[#allocation29_spill] sm:$0xff]  ;;  %v7409_v15 = vld [vmem:[#allocation34_spill] sm:$0xff]  ;;  %v7412_v24 = vld [vmem:[#allocation31_spill] sm:$0xff]  ;;  %v7414_v54 = vpack.c.bf16 %v6044_v51, %v6048_v4  ;;  %v7417_v55 = vpack.c.bf16 %v6078_v13, %v6082_v58 }
 0x1a4   : > { %v1305_v34 = vpack.c.bf16 %v1209_v43, %v1208_v19  ;;  %v1337_v17 = vpack.c.bf16 %v6305_v33, %v6307_v53  ;;  %v7400_v2 = vld [vmem:[#allocation25_spill] sm:$0xff]  ;;  %v7403_v43 = vld [vmem:[#allocation30_spill] sm:$0xff]  ;;  %v7415_v60 = vld [vmem:[#allocation35_spill] sm:$0xff]  ;;  %v7418_v29 = vpack.c.bf16 %v6095_v21, %v6099_v1  ;;  %v7420_v51 = vpack.c.bf16 %v6129_v31, %v6133_v0 }
 0x1a5   : > { %v7401_v9 = vpack.c.bf16 %v7399_v49, %v7400_v2  ;;  %v7404_v19 = vpack.c.bf16 %v7402_v42, %v7403_v43  ;;  %v7411_v22 = vld [vmem:[#allocation38_spill] sm:$0xff]  ;;  %v7421_v4 = vpack.c.bf16 %v6146_v38, %v6150_v7  ;;  %v7423_v13 = vpack.c.bf16 %v6180_v59, %v6184_v16 }
 0x1a6   : > { %v7424_v38 = vpack.c.bf16 %v6197_v26, %v6201_v45  ;;  %v7425_v7 = vpack.c.bf16 %v6214_v27, %v6218_v39  ;;  %v7426_v26 = vpack.c.bf16 %v6233_v28, %v6237_v14  ;;  %v7427_v27 = vpack.c.bf16 %v6250_v57, %v6255_v41 }
 0x1a7   : > { %4385 = vmatmul.mubr.bf16.gmra.mrb[60].mxu0 %v1305_v34  ;;  %v7405_v34 = vld [vmem:[#allocation33_spill] sm:$0xff] }
 0x1a8   : > { %4388 = vmatprep.mubr.bf16.mxu0 %v7379_v52  ;;  %v7406_v52 = vld [vmem:[#allocation27_spill] sm:$0xff] }
 0x1af   : > { %4389 = vmatmul.mubr.bf16.gmra.mrb[64].mxu0 %v7380_v32  ;;  %v7407_v32 = vpack.c.bf16 %v7405_v34, %v7406_v52 }
 0x1b0   : > { %4392 = vmatprep.mubr.bf16.mxu0 %v7381_v18  ;;  %v7408_v18 = vld [vmem:[#allocation32_spill] sm:$0xff] }
 0x1b7   : > { %4393 = vmatmul.mubr.bf16.gmra.mrb[68].mxu0 %v7383_v62  ;;  %v7410_v62 = vpack.c.bf16 %v7408_v18, %v7409_v15  ;;  %v7428_v15 = vld [vmem:[#allocation37_spill] sm:$0xff] }
 0x1b8   : > { %4396 = vmatprep.mubr.bf16.mxu0 %v7386_v63  ;;  %v7413_v63 = vpack.c.bf16 %v7411_v22, %v7412_v24 }
 0x1bf   : > { %4397 = vmatmul.mubr.bf16.gmra.mrb[72].mxu0 %v7389_v48  ;;  %v7416_v48 = vpack.c.bf16 %v6061_v44, %v7415_v60  ;;  %v7422_v44 = vpack.c.bf16 %v6163_v23, %v6167_v5 }
 0x1c0   : > { %4400 = vmatprep.mubr.bf16.mxu0 %v7392_v50  ;;  %v7419_v50 = vpack.c.bf16 %v6112_v30, %v6116_v46 }
 0x1c7   : > { %4401 = vmatmul.mubr.bf16.gmra.mrb[76].mxu0 %v7395_v8 }
 0x1c8   : > { %4404 = vmatprep.mubr.bf16.mxu0 %v7398_v12 }
 0x1cf   : > { %4405 = vmatmul.mubr.bf16.gmra.mrb[80].mxu0 %v7401_v9 }
 0x1d0   : > { %4408 = vmatprep.mubr.bf16.mxu0 %v7404_v19 }
 0x1d7   : > { %4409 = vmatmul.mubr.bf16.gmra.mrb[84].mxu0 %v7407_v32 }
 0x1d8   : > { %4412 = vmatprep.mubr.bf16.mxu0 %v7410_v62  ;;  %v7429_v62 = vld [vmem:[#allocation40_spill] sm:$0xff] }
 0x1d9   : > { %v7430_v28 = vpack.c.bf16 %v7428_v15, %v7429_v62 }
 0x1df   : > { %4413 = vmatmul.mubr.bf16.gmra.mrb[88].mxu0 %v7413_v63 }
 0x1e0   : > { %4416 = vmatprep.mubr.bf16.mxu0 %v7414_v54 }
 0x1e7   : > { %4417 = vmatmul.mubr.bf16.gmra.mrb[92].mxu0 %v7416_v48 }
 0x1e8   : > { %4420 = vmatprep.mubr.bf16.mxu0 %v7417_v55 }
 0x1ef   : > { %4421 = vmatmul.mubr.bf16.gmra.mrb[96].mxu0 %v7418_v29 }
 0x1f0   : > { %4424 = vmatprep.mubr.bf16.mxu0 %v7419_v50 }
 0x1f7   : > { %4425 = vmatmul.mubr.bf16.gmra.mrb[100].mxu0 %v7420_v51 }
 0x1f8   : > { %4428 = vmatprep.mubr.bf16.mxu0 %v7421_v4 }
 0x1ff   : > { %4429 = vmatmul.mubr.bf16.gmra.mrb[104].mxu0 %v7422_v44 }
 0x200   : > { %4432 = vmatprep.mubr.bf16.mxu0 %v7423_v13 }
 0x202   : > { %v4326_v58 = vpop.f32.mrb[0].mxu0 }
 0x203   : > { %v1436_v21 = vpop.f32.mrb[1].mxu0  ;;  %v1949_v30 = vmax.f32 %v4326_v58, 0.0 }
 0x204   : > { %v4327_v1 = vpop.f32.mrb[2].mxu0  ;;  %v1947_v31 = vmax.f32 %v1436_v21, 0.0 }
 0x205   : > { %v1950_v46 = vmax.f32 %v4327_v1, 0.0  ;;  %v1439_v47 = vpop.f32.mrb[3].mxu0 }
 0x206   : > { %v1948_v0 = vmax.f32 %v1439_v47, 0.0 }
 0x207   : > { %v2076_v20 = vpack.c.bf16 %v1950_v46, %v1949_v30  ;;  %4433 = vmatmul.mubr.bf16.gmra.mrb[108].mxu0 %v7424_v38 }
 0x208   : > { %4436 = vmatprep.mubr.bf16.mxu0 %v7425_v7  ;;  %v2075_v23 = vpack.c.bf16 %v1948_v0, %v1947_v31 }
 0x20a   : > { %v4330_v5 = vpop.f32.mrb[4].mxu0  ;;  %4468 = vmatprep.mubr.bf16.mxu1 %v2075_v23 }
 0x20b   : > { %v1452_v59 = vpop.f32.mrb[5].mxu0  ;;  %4469 = vmatmul.mubr.bf16.vlgmr.msra.gmra.mrb[0].mxu1 %v2076_v20  ;;  %v1953_v8 = vmax.f32 %v4330_v5, 0.0 }
 0x20c   : > { %v4331_v16 = vpop.f32.mrb[6].mxu0  ;;  %v1951_v12 = vmax.f32 %v1452_v59, 0.0 }
 0x20d   : > { %v1954_v61 = vmax.f32 %v4331_v16, 0.0  ;;  %v1455_v3 = vpop.f32.mrb[7].mxu0 }
 0x20e   : > { %v1952_v49 = vmax.f32 %v1455_v3, 0.0 }
 0x20f   : > { %v2078_v2 = vpack.c.bf16 %v1954_v61, %v1953_v8  ;;  %4437 = vmatmul.mubr.bf16.gmra.mrb[112].mxu0 %v7426_v26 }
 0x210   : > { %v2077_v45 = vpack.c.bf16 %v1952_v49, %v1951_v12  ;;  %4440 = vmatprep.mubr.bf16.mxu0 %v7427_v27 }
 0x212   : > { %v4334_v39 = vpop.f32.mrb[8].mxu0  ;;  %4472 = vmatprep.mubr.bf16.mxu1 %v2077_v45 }
 0x213   : > { %v1468_v9 = vpop.f32.mrb[9].mxu0  ;;  %4473 = vmatmul.mubr.bf16.gmra.mrb[4].mxu1 %v2078_v2  ;;  %v1957_v43 = vmax.f32 %v4334_v39, 0.0 }
 0x214   : > { %v4335_v42 = vpop.f32.mrb[10].mxu0  ;;  %v1955_v52 = vmax.f32 %v1468_v9, 0.0 }
 0x215   : > { %v1958_v19 = vmax.f32 %v4335_v42, 0.0  ;;  %v1471_v34 = vpop.f32.mrb[11].mxu0 }
 0x216   : > { %v1956_v32 = vmax.f32 %v1471_v34, 0.0 }
 0x217   : > { %v2080_v18 = vpack.c.bf16 %v1958_v19, %v1957_v43  ;;  %4441 = vmatmul.mubr.bf16.gmra.mrb[116].mxu0 %v7430_v28 }
 0x218   : > { %v2079_v14 = vpack.c.bf16 %v1956_v32, %v1955_v52  ;;  %4444 = vmatprep.mubr.bf16.mxu0 %v1334_v6 }
 0x21a   : > { %v4338_v57 = vpop.f32.mrb[12].mxu0  ;;  %4476 = vmatprep.mubr.bf16.mxu1 %v2079_v14 }
 0x21b   : > { %v1484_v41 = vpop.f32.mrb[13].mxu0  ;;  %4477 = vmatmul.mubr.bf16.gmra.mrb[8].mxu1 %v2080_v18  ;;  %v1961_v24 = vmax.f32 %v4338_v57, 0.0 }
 0x21c   : > { %v4339_v22 = vpop.f32.mrb[14].mxu0  ;;  %v1959_v60 = vmax.f32 %v1484_v41, 0.0 }
 0x21d   : > { %v1962_v63 = vmax.f32 %v4339_v22, 0.0  ;;  %v1487_v54 = vpop.f32.mrb[15].mxu0 }
 0x21e   : > { %v1960_v48 = vmax.f32 %v1487_v54, 0.0 }
 0x21f   : > { %v2082_v55 = vpack.c.bf16 %v1962_v63, %v1961_v24  ;;  %4445 = vmatmul.mubr.bf16.gmra.mrb[120].mxu0 %v1335_v25 }
 0x220   : > { %v2081_v29 = vpack.c.bf16 %v1960_v48, %v1959_v60  ;;  %4448 = vmatprep.mubr.bf16.mxu0 %v1336_v10 }
 0x222   : > { %v4342_v11 = vpop.f32.mrb[16].mxu0  ;;  %4480 = vmatprep.mubr.bf16.mxu1 %v2081_v29 }
 0x223   : > { %v1500_v56 = vpop.f32.mrb[17].mxu0  ;;  %4481 = vmatmul.mubr.bf16.gmra.mrb[12].mxu1 %v2082_v55  ;;  %v1965_v50 = vmax.f32 %v4342_v11, 0.0 }
 0x224   : > { %v4343_v6 = vpop.f32.mrb[18].mxu0  ;;  %v1963_v44 = vmax.f32 %v1500_v56, 0.0 }
 0x225   : > { %v1966_v51 = vmax.f32 %v4343_v6, 0.0  ;;  %v1503_v4 = vpop.f32.mrb[19].mxu0 }
 0x226   : > { %v1964_v13 = vmax.f32 %v1503_v4, 0.0 }
 0x227   : > { %v2084_v58 = vpack.c.bf16 %v1966_v51, %v1965_v50  ;;  %4449 = vmatmul.mubr.bf16.gmra.mrb[124].mxu0 %v1337_v17 }
 0x228   : > { %v2083_v40 = vpack.c.bf16 %v1964_v13, %v1963_v44 }
 0x22a   : > { %v4346_v36 = vpop.f32.mrb[20].mxu0  ;;  %4484 = vmatprep.mubr.bf16.mxu1 %v2083_v40 }
 0x22b   : > { %v1516_v25 = vpop.f32.mrb[21].mxu0  ;;  %4485 = vmatmul.mubr.bf16.gmra.mrb[16].mxu1 %v2084_v58  ;;  %v1969_v37 = vmax.f32 %v4346_v36, 0.0 }
 0x22c   : > { %v4347_v35 = vpop.f32.mrb[22].mxu0  ;;  %v1967_v1 = vmax.f32 %v1516_v25, 0.0 }
 0x22d   : > { %v1970_v10 = vmax.f32 %v4347_v35, 0.0  ;;  %v1519_v21 = vpop.f32.mrb[23].mxu0 }
 0x22e   : > { %v1968_v30 = vmax.f32 %v1519_v21, 0.0 }
 0x22f   : > { %v2086_v46 = vpack.c.bf16 %v1970_v10, %v1969_v37 }
 0x230   : > { %v2085_v47 = vpack.c.bf16 %v1968_v30, %v1967_v1 }
 0x232   : > { %v4350_v31 = vpop.f32.mrb[24].mxu0  ;;  %4488 = vmatprep.mubr.bf16.mxu1 %v2085_v47 }
 0x233   : > { %v1532_v0 = vpop.f32.mrb[25].mxu0  ;;  %4489 = vmatmul.mubr.bf16.gmra.mrb[20].mxu1 %v2086_v46  ;;  %v1973_v33 = vmax.f32 %v4350_v31, 0.0 }
 0x234   : > { %v4351_v20 = vpop.f32.mrb[26].mxu0  ;;  %v1971_v38 = vmax.f32 %v1532_v0, 0.0 }
 0x235   : > { %v1974_v53 = vmax.f32 %v4351_v20, 0.0  ;;  %v1535_v17 = vpop.f32.mrb[27].mxu0 }
 0x236   : > { %v1972_v7 = vmax.f32 %v1535_v17, 0.0 }
 0x237   : > { %v2088_v23 = vpack.c.bf16 %v1974_v53, %v1973_v33 }
 0x238   : > { %v2087_v5 = vpack.c.bf16 %v1972_v7, %v1971_v38 }
 0x23a   : > { %v4354_v59 = vpop.f32.mrb[28].mxu0  ;;  %4492 = vmatprep.mubr.bf16.mxu1 %v2087_v5 }
 0x23b   : > { %v1548_v16 = vpop.f32.mrb[29].mxu0  ;;  %4493 = vmatmul.mubr.bf16.gmra.mrb[24].mxu1 %v2088_v23  ;;  %v1977_v61 = vmax.f32 %v4354_v59, 0.0 }
 0x23c   : > { %v4355_v8 = vpop.f32.mrb[30].mxu0  ;;  %v1975_v49 = vmax.f32 %v1548_v16, 0.0 }
 0x23d   : > { %v1978_v3 = vmax.f32 %v4355_v8, 0.0  ;;  %v1551_v12 = vpop.f32.mrb[31].mxu0 }
 0x23e   : > { %v1976_v2 = vmax.f32 %v1551_v12, 0.0 }
 0x23f   : > { %v2090_v26 = vpack.c.bf16 %v1978_v3, %v1977_v61 }
 0x240   : > { %v2089_v45 = vpack.c.bf16 %v1976_v2, %v1975_v49 }
 0x242   : > { %v4358_v27 = vpop.f32.mrb[32].mxu0  ;;  %4496 = vmatprep.mubr.bf16.mxu1 %v2089_v45 }
 0x243   : > { %v1564_v39 = vpop.f32.mrb[33].mxu0  ;;  %4497 = vmatmul.mubr.bf16.gmra.mrb[28].mxu1 %v2090_v26  ;;  %v1981_v42 = vmax.f32 %v4358_v27, 0.0 }
 0x244   : > { %v4359_v9 = vpop.f32.mrb[34].mxu0  ;;  %v1979_v34 = vmax.f32 %v1564_v39, 0.0 }
 0x245   : > { %v1982_v43 = vmax.f32 %v4359_v9, 0.0  ;;  %v1567_v19 = vpop.f32.mrb[35].mxu0 }
 0x246   : > { %v1980_v52 = vmax.f32 %v1567_v19, 0.0 }
 0x247   : > { %v2092_v32 = vpack.c.bf16 %v1982_v43, %v1981_v42 }
 0x248   : > { %v2091_v18 = vpack.c.bf16 %v1980_v52, %v1979_v34 }
 0x24a   : > { %v4362_v15 = vpop.f32.mrb[36].mxu0  ;;  %4500 = vmatprep.mubr.bf16.mxu1 %v2091_v18 }
 0x24b   : > { %v1580_v62 = vpop.f32.mrb[37].mxu0  ;;  %4501 = vmatmul.mubr.bf16.gmra.mrb[32].mxu1 %v2092_v32  ;;  %v1985_v14 = vmax.f32 %v4362_v15, 0.0 }
 0x24c   : > { %v4363_v28 = vpop.f32.mrb[38].mxu0  ;;  %v1983_v22 = vmax.f32 %v1580_v62, 0.0 }
 0x24d   : > { %v1986_v57 = vmax.f32 %v4363_v28, 0.0  ;;  %v1583_v41 = vpop.f32.mrb[39].mxu0 }
 0x24e   : > { %v1984_v24 = vmax.f32 %v1583_v41, 0.0 }
 0x24f   : > { %v2094_v63 = vpack.c.bf16 %v1986_v57, %v1985_v14 }
 0x250   : > { %v2093_v54 = vpack.c.bf16 %v1984_v24, %v1983_v22 }
 0x252   : > { %v4366_v60 = vpop.f32.mrb[40].mxu0  ;;  %4504 = vmatprep.mubr.bf16.mxu1 %v2093_v54 }
 0x253   : > { %v1596_v48 = vpop.f32.mrb[41].mxu0  ;;  %4505 = vmatmul.mubr.bf16.gmra.mrb[36].mxu1 %v2094_v63  ;;  %v1989_v29 = vmax.f32 %v4366_v60, 0.0 }
 0x254   : > { %v4367_v55 = vpop.f32.mrb[42].mxu0  ;;  %v1987_v6 = vmax.f32 %v1596_v48, 0.0 }
 0x255   : > { %v1990_v11 = vmax.f32 %v4367_v55, 0.0  ;;  %v1599_v56 = vpop.f32.mrb[43].mxu0 }
 0x256   : > { %v1988_v50 = vmax.f32 %v1599_v56, 0.0 }
 0x257   : > { %v2096_v51 = vpack.c.bf16 %v1990_v11, %v1989_v29 }
 0x258   : > { %v2095_v4 = vpack.c.bf16 %v1988_v50, %v1987_v6 }
 0x25a   : > { %v4370_v44 = vpop.f32.mrb[44].mxu0  ;;  %4508 = vmatprep.mubr.bf16.mxu1 %v2095_v4 }
 0x25b   : > { %v1612_v13 = vpop.f32.mrb[45].mxu0  ;;  %4509 = vmatmul.mubr.bf16.gmra.mrb[40].mxu1 %v2096_v51  ;;  %v1993_v40 = vmax.f32 %v4370_v44, 0.0 }
 0x25c   : > { %v4371_v58 = vpop.f32.mrb[46].mxu0  ;;  %v1991_v35 = vmax.f32 %v1612_v13, 0.0 }
 0x25d   : > { %v1994_v36 = vmax.f32 %v4371_v58, 0.0  ;;  %v1615_v25 = vpop.f32.mrb[47].mxu0 }
 0x25e   : > { %v1992_v37 = vmax.f32 %v1615_v25, 0.0 }
 0x25f   : > { %v2098_v10 = vpack.c.bf16 %v1994_v36, %v1993_v40 }
 0x260   : > { %v2097_v21 = vpack.c.bf16 %v1992_v37, %v1991_v35 }
 0x262   : > { %v4374_v1 = vpop.f32.mrb[48].mxu0  ;;  %4512 = vmatprep.mubr.bf16.mxu1 %v2097_v21 }
 0x263   : > { %v1628_v30 = vpop.f32.mrb[49].mxu0  ;;  %4513 = vmatmul.mubr.bf16.gmra.mrb[44].mxu1 %v2098_v10  ;;  %v1997_v47 = vmax.f32 %v4374_v1, 0.0 }
 0x264   : > { %v4375_v46 = vpop.f32.mrb[50].mxu0  ;;  %v1995_v20 = vmax.f32 %v1628_v30, 0.0 }
 0x265   : > { %v1998_v31 = vmax.f32 %v4375_v46, 0.0  ;;  %v1631_v0 = vpop.f32.mrb[51].mxu0 }
 0x266   : > { %v1996_v33 = vmax.f32 %v1631_v0, 0.0 }
 0x267   : > { %v2100_v53 = vpack.c.bf16 %v1998_v31, %v1997_v47 }
 0x268   : > { %v2099_v17 = vpack.c.bf16 %v1996_v33, %v1995_v20 }
 0x26a   : > { %v4378_v38 = vpop.f32.mrb[52].mxu0  ;;  %4516 = vmatprep.mubr.bf16.mxu1 %v2099_v17 }
 0x26b   : > { %v1644_v7 = vpop.f32.mrb[53].mxu0  ;;  %4517 = vmatmul.mubr.bf16.gmra.mrb[48].mxu1 %v2100_v53  ;;  %v2001_v5 = vmax.f32 %v4378_v38, 0.0 }
 0x26c   : > { %v4379_v23 = vpop.f32.mrb[54].mxu0  ;;  %v1999_v8 = vmax.f32 %v1644_v7, 0.0 }
 0x26d   : > { %v2002_v59 = vmax.f32 %v4379_v23, 0.0  ;;  %v1647_v16 = vpop.f32.mrb[55].mxu0 }
 0x26e   : > { %v2000_v61 = vmax.f32 %v1647_v16, 0.0 }
 0x26f   : > { %v2102_v3 = vpack.c.bf16 %v2002_v59, %v2001_v5 }
 0x270   : > { %v2101_v12 = vpack.c.bf16 %v2000_v61, %v1999_v8 }
 0x272   : > { %v4382_v49 = vpop.f32.mrb[56].mxu0  ;;  %4520 = vmatprep.mubr.bf16.mxu1 %v2101_v12 }
 0x273   : > { %v1660_v2 = vpop.f32.mrb[57].mxu0  ;;  %4521 = vmatmul.mubr.bf16.gmra.mrb[52].mxu1 %v2102_v3  ;;  %v2005_v45 = vmax.f32 %v4382_v49, 0.0 }
 0x274   : > { %v4383_v26 = vpop.f32.mrb[58].mxu0  ;;  %v2003_v9 = vmax.f32 %v1660_v2, 0.0 }
 0x275   : > { %v2006_v27 = vmax.f32 %v4383_v26, 0.0  ;;  %v1663_v39 = vpop.f32.mrb[59].mxu0 }
 0x276   : > { %v2004_v42 = vmax.f32 %v1663_v39, 0.0 }
 0x277   : > { %v2104_v43 = vpack.c.bf16 %v2006_v27, %v2005_v45 }
 0x278   : > { %v2103_v19 = vpack.c.bf16 %v2004_v42, %v2003_v9 }
 0x27a   : > { %v4386_v34 = vpop.f32.mrb[60].mxu0  ;;  %4524 = vmatprep.mubr.bf16.mxu1 %v2103_v19 }
 0x27b   : > { %v1676_v52 = vpop.f32.mrb[61].mxu0  ;;  %4525 = vmatmul.mubr.bf16.gmra.mrb[56].mxu1 %v2104_v43  ;;  %v2009_v18 = vmax.f32 %v4386_v34, 0.0 }
 0x27c   : > { %v4387_v32 = vpop.f32.mrb[62].mxu0  ;;  %v2007_v28 = vmax.f32 %v1676_v52, 0.0 }
 0x27d   : > { %v2010_v15 = vmax.f32 %v4387_v32, 0.0  ;;  %v1679_v62 = vpop.f32.mrb[63].mxu0 }
 0x27e   : > { %v2008_v14 = vmax.f32 %v1679_v62, 0.0 }
 0x27f   : > { %v2106_v57 = vpack.c.bf16 %v2010_v15, %v2009_v18 }
 0x280   : > { %v2105_v41 = vpack.c.bf16 %v2008_v14, %v2007_v28 }
 0x282   : > { %v4390_v22 = vpop.f32.mrb[64].mxu0  ;;  %4528 = vmatprep.mubr.bf16.mxu1 %v2105_v41 }
 0x283   : > { %v1692_v24 = vpop.f32.mrb[65].mxu0  ;;  %4529 = vmatmul.mubr.bf16.gmra.mrb[60].mxu1 %v2106_v57  ;;  %v2013_v54 = vmax.f32 %v4390_v22, 0.0 }
 0x284   : > { %v4391_v63 = vpop.f32.mrb[66].mxu0  ;;  %v2011_v55 = vmax.f32 %v1692_v24, 0.0 }
 0x285   : > { %v2014_v60 = vmax.f32 %v4391_v63, 0.0  ;;  %v1695_v48 = vpop.f32.mrb[67].mxu0 }
 0x286   : > { %v2012_v29 = vmax.f32 %v1695_v48, 0.0 }
 0x287   : > { %v2108_v11 = vpack.c.bf16 %v2014_v60, %v2013_v54 }
 0x288   : > { %v2107_v56 = vpack.c.bf16 %v2012_v29, %v2011_v55 }
 0x28a   : > { %v4394_v6 = vpop.f32.mrb[68].mxu0  ;;  %4532 = vmatprep.mubr.bf16.mxu1 %v2107_v56 }
 0x28b   : > { %v1708_v50 = vpop.f32.mrb[69].mxu0  ;;  %4533 = vmatmul.mubr.bf16.gmra.mrb[64].mxu1 %v2108_v11  ;;  %v2017_v4 = vmax.f32 %v4394_v6, 0.0 }
 0x28c   : > { %v4395_v51 = vpop.f32.mrb[70].mxu0  ;;  %v2015_v58 = vmax.f32 %v1708_v50, 0.0 }
 0x28d   : > { %v2018_v44 = vmax.f32 %v4395_v51, 0.0  ;;  %v1711_v13 = vpop.f32.mrb[71].mxu0 }
 0x28e   : > { %v2016_v40 = vmax.f32 %v1711_v13, 0.0 }
 0x28f   : > { %v2110_v36 = vpack.c.bf16 %v2018_v44, %v2017_v4 }
 0x290   : > { %v2109_v25 = vpack.c.bf16 %v2016_v40, %v2015_v58 }
 0x292   : > { %v4398_v35 = vpop.f32.mrb[72].mxu0  ;;  %4536 = vmatprep.mubr.bf16.mxu1 %v2109_v25 }
 0x293   : > { %v1724_v37 = vpop.f32.mrb[73].mxu0  ;;  %4537 = vmatmul.mubr.bf16.gmra.mrb[68].mxu1 %v2110_v36  ;;  %v2021_v21 = vmax.f32 %v4398_v35, 0.0 }
 0x294   : > { %v4399_v10 = vpop.f32.mrb[74].mxu0  ;;  %v2019_v46 = vmax.f32 %v1724_v37, 0.0 }
 0x295   : > { %v2022_v1 = vmax.f32 %v4399_v10, 0.0  ;;  %v1727_v30 = vpop.f32.mrb[75].mxu0 }
 0x296   : > { %v2020_v47 = vmax.f32 %v1727_v30, 0.0 }
 0x297   : > { %v2112_v31 = vpack.c.bf16 %v2022_v1, %v2021_v21 }
 0x298   : > { %v2111_v0 = vpack.c.bf16 %v2020_v47, %v2019_v46 }
 0x29a   : > { %v4402_v20 = vpop.f32.mrb[76].mxu0  ;;  %4540 = vmatprep.mubr.bf16.mxu1 %v2111_v0 }
 0x29b   : > { %v1740_v33 = vpop.f32.mrb[77].mxu0  ;;  %4541 = vmatmul.mubr.bf16.gmra.mrb[72].mxu1 %v2112_v31  ;;  %v2025_v17 = vmax.f32 %v4402_v20, 0.0 }
 0x29c   : > { %v4403_v53 = vpop.f32.mrb[78].mxu0  ;;  %v2023_v23 = vmax.f32 %v1740_v33, 0.0 }
 0x29d   : > { %v2026_v38 = vmax.f32 %v4403_v53, 0.0  ;;  %v1743_v7 = vpop.f32.mrb[79].mxu0 }
 0x29e   : > { %v2024_v5 = vmax.f32 %v1743_v7, 0.0 }
 0x29f   : > { %v2114_v59 = vpack.c.bf16 %v2026_v38, %v2025_v17 }
 0x2a0   : > { %v2113_v16 = vpack.c.bf16 %v2024_v5, %v2023_v23 }
 0x2a2   : > { %v4406_v8 = vpop.f32.mrb[80].mxu0  ;;  %4544 = vmatprep.mubr.bf16.mxu1 %v2113_v16 }
 0x2a3   : > { %v1756_v61 = vpop.f32.mrb[81].mxu0  ;;  %4545 = vmatmul.mubr.bf16.gmra.mrb[76].mxu1 %v2114_v59  ;;  %v2029_v12 = vmax.f32 %v4406_v8, 0.0 }
 0x2a4   : > { %v4407_v3 = vpop.f32.mrb[82].mxu0  ;;  %v2027_v26 = vmax.f32 %v1756_v61, 0.0 }
 0x2a5   : > { %v2030_v49 = vmax.f32 %v4407_v3, 0.0  ;;  %v1759_v2 = vpop.f32.mrb[83].mxu0 }
 0x2a6   : > { %v2028_v45 = vmax.f32 %v1759_v2, 0.0 }
 0x2a7   : > { %v2116_v27 = vpack.c.bf16 %v2030_v49, %v2029_v12 }
 0x2a8   : > { %v2115_v39 = vpack.c.bf16 %v2028_v45, %v2027_v26 }
 0x2aa   : > { %v4410_v9 = vpop.f32.mrb[84].mxu0  ;;  %4548 = vmatprep.mubr.bf16.mxu1 %v2115_v39 }
 0x2ab   : > { %v1772_v42 = vpop.f32.mrb[85].mxu0  ;;  %4549 = vmatmul.mubr.bf16.gmra.mrb[80].mxu1 %v2116_v27  ;;  %v2033_v19 = vmax.f32 %v4410_v9, 0.0 }
 0x2ac   : > { %v4411_v43 = vpop.f32.mrb[86].mxu0  ;;  %v2031_v32 = vmax.f32 %v1772_v42, 0.0 }
 0x2ad   : > { %v2034_v34 = vmax.f32 %v4411_v43, 0.0  ;;  %v1775_v52 = vpop.f32.mrb[87].mxu0 }
 0x2ae   : > { %v2032_v18 = vmax.f32 %v1775_v52, 0.0 }
 0x2af   : > { %v2118_v15 = vpack.c.bf16 %v2034_v34, %v2033_v19 }
 0x2b0   : > { %v2117_v62 = vpack.c.bf16 %v2032_v18, %v2031_v32 }
 0x2b2   : > { %v4414_v28 = vpop.f32.mrb[88].mxu0  ;;  %4552 = vmatprep.mubr.bf16.mxu1 %v2117_v62 }
 0x2b3   : > { %v1788_v14 = vpop.f32.mrb[89].mxu0  ;;  %4553 = vmatmul.mubr.bf16.gmra.mrb[84].mxu1 %v2118_v15  ;;  %v2037_v41 = vmax.f32 %v4414_v28, 0.0 }
 0x2b4   : > { %v4415_v57 = vpop.f32.mrb[90].mxu0  ;;  %v2035_v63 = vmax.f32 %v1788_v14, 0.0 }
 0x2b5   : > { %v2038_v22 = vmax.f32 %v4415_v57, 0.0  ;;  %v1791_v24 = vpop.f32.mrb[91].mxu0 }
 0x2b6   : > { %v2036_v54 = vmax.f32 %v1791_v24, 0.0 }
 0x2b7   : > { %v2120_v60 = vpack.c.bf16 %v2038_v22, %v2037_v41 }
 0x2b8   : > { %v2119_v48 = vpack.c.bf16 %v2036_v54, %v2035_v63 }
 0x2ba   : > { %v4418_v55 = vpop.f32.mrb[92].mxu0  ;;  %4556 = vmatprep.mubr.bf16.mxu1 %v2119_v48 }
 0x2bb   : > { %v1804_v29 = vpop.f32.mrb[93].mxu0  ;;  %4557 = vmatmul.mubr.bf16.gmra.mrb[88].mxu1 %v2120_v60  ;;  %v2041_v56 = vmax.f32 %v4418_v55, 0.0 }
 0x2bc   : > { %v4419_v11 = vpop.f32.mrb[94].mxu0  ;;  %v2039_v51 = vmax.f32 %v1804_v29, 0.0 }
 0x2bd   : > { %v2042_v6 = vmax.f32 %v4419_v11, 0.0  ;;  %v1807_v50 = vpop.f32.mrb[95].mxu0 }
 0x2be   : > { %v2040_v4 = vmax.f32 %v1807_v50, 0.0 }
 0x2bf   : > { %v2122_v44 = vpack.c.bf16 %v2042_v6, %v2041_v56 }
 0x2c0   : > { %v2121_v13 = vpack.c.bf16 %v2040_v4, %v2039_v51 }
 0x2c2   : > { %v4422_v58 = vpop.f32.mrb[96].mxu0  ;;  %4560 = vmatprep.mubr.bf16.mxu1 %v2121_v13 }
 0x2c3   : > { %v1820_v40 = vpop.f32.mrb[97].mxu0  ;;  %4561 = vmatmul.mubr.bf16.gmra.mrb[92].mxu1 %v2122_v44  ;;  %v2045_v25 = vmax.f32 %v4422_v58, 0.0 }
 0x2c4   : > { %v4423_v36 = vpop.f32.mrb[98].mxu0  ;;  %v2043_v10 = vmax.f32 %v1820_v40, 0.0 }
 0x2c5   : > { %v2046_v35 = vmax.f32 %v4423_v36, 0.0  ;;  %v1823_v37 = vpop.f32.mrb[99].mxu0 }
 0x2c6   : > { %v2044_v21 = vmax.f32 %v1823_v37, 0.0 }
 0x2c7   : > { %v2124_v1 = vpack.c.bf16 %v2046_v35, %v2045_v25 }
 0x2c8   : > { %v2123_v30 = vpack.c.bf16 %v2044_v21, %v2043_v10 }
 0x2ca   : > { %v4426_v46 = vpop.f32.mrb[100].mxu0  ;;  %4564 = vmatprep.mubr.bf16.mxu1 %v2123_v30 }
 0x2cb   : > { %v1836_v47 = vpop.f32.mrb[101].mxu0  ;;  %4565 = vmatmul.mubr.bf16.gmra.mrb[96].mxu1 %v2124_v1  ;;  %v2049_v0 = vmax.f32 %v4426_v46, 0.0 }
 0x2cc   : > { %v4427_v31 = vpop.f32.mrb[102].mxu0  ;;  %v2047_v53 = vmax.f32 %v1836_v47, 0.0 }
 0x2cd   : > { %v2050_v20 = vmax.f32 %v4427_v31, 0.0  ;;  %v1839_v33 = vpop.f32.mrb[103].mxu0 }
 0x2ce   : > { %v2048_v17 = vmax.f32 %v1839_v33, 0.0 }
 0x2cf   : > { %v2126_v38 = vpack.c.bf16 %v2050_v20, %v2049_v0 }
 0x2d0   : > { %v2125_v7 = vpack.c.bf16 %v2048_v17, %v2047_v53 }
 0x2d2   : > { %v4430_v23 = vpop.f32.mrb[104].mxu0  ;;  %4568 = vmatprep.mubr.bf16.mxu1 %v2125_v7 }
 0x2d3   : > { %v1852_v5 = vpop.f32.mrb[105].mxu0  ;;  %4569 = vmatmul.mubr.bf16.gmra.mrb[100].mxu1 %v2126_v38  ;;  %v2053_v16 = vmax.f32 %v4430_v23, 0.0 }
 0x2d4   : > { %v4431_v59 = vpop.f32.mrb[106].mxu0  ;;  %v2051_v3 = vmax.f32 %v1852_v5, 0.0 }
 0x2d5   : > { %v2054_v8 = vmax.f32 %v4431_v59, 0.0  ;;  %v1855_v61 = vpop.f32.mrb[107].mxu0 }
 0x2d6   : > { %v2052_v12 = vmax.f32 %v1855_v61, 0.0 }
 0x2d7   : > { %v2128_v49 = vpack.c.bf16 %v2054_v8, %v2053_v16 }
 0x2d8   : > { %v2127_v2 = vpack.c.bf16 %v2052_v12, %v2051_v3 }
 0x2da   : > { %v4434_v26 = vpop.f32.mrb[108].mxu0  ;;  %4572 = vmatprep.mubr.bf16.mxu1 %v2127_v2 }
 0x2db   : > { %v1868_v45 = vpop.f32.mrb[109].mxu0  ;;  %4573 = vmatmul.mubr.bf16.gmra.mrb[104].mxu1 %v2128_v49  ;;  %v2057_v39 = vmax.f32 %v4434_v26, 0.0 }
 0x2dc   : > { %v4435_v27 = vpop.f32.mrb[110].mxu0  ;;  %v2055_v43 = vmax.f32 %v1868_v45, 0.0 }
 0x2dd   : > { %v2058_v9 = vmax.f32 %v4435_v27, 0.0  ;;  %v1871_v42 = vpop.f32.mrb[111].mxu0 }
 0x2de   : > { %v2056_v19 = vmax.f32 %v1871_v42, 0.0  ;;  %v6407_v34 = vpop.f32.mrb[0].mxu1 }
 0x2df   : > { %v2130_v52 = vpack.c.bf16 %v2058_v9, %v2057_v39  ;;  %v6409_v32 = vpop.f32.mrb[1].mxu1  ;;  %v2750_v18 = vmul.f32 %v6407_v34, %v6407_v34 }
 0x2e0   : > { %v2129_v15 = vpack.c.bf16 %v2056_v19, %v2055_v43  ;;  %v6413_v62 = vpop.f32.mrb[2].mxu1  ;;  %v2748_v22 = vmul.f32 %v6409_v32, %v6409_v32 }
 0x2e1   : > { %2880 = vadd.xlane.f32.xlu0 %v2750_v18  ;;  %v6415_v28 = vpop.f32.mrb[3].mxu1  ;;  %v2751_v14 = vmul.f32 %v6413_v62, %v6413_v62 }
 0x2e2   : > { %v4438_v57 = vpop.f32.mrb[112].mxu0  ;;  %4576 = vmatprep.mubr.bf16.mxu1 %v2129_v15  ;;  %v2749_v48 = vmul.f32 %v6415_v28, %v6415_v28 }
 0x2e3   : > { %2882 = vadd.xlane.f32.xlu1 %v2751_v14  ;;  %v1884_v41 = vpop.f32.mrb[113].mxu0  ;;  %4577 = vmatmul.mubr.bf16.gmra.mrb[108].mxu1 %v2130_v52  ;;  %v2061_v63 = vmax.f32 %v4438_v57, 0.0 }
 0x2e4   : > { %v4439_v24 = vpop.f32.mrb[114].mxu0  ;;  %v2059_v55 = vmax.f32 %v1884_v41, 0.0 }
 0x2e5   : > { %v2062_v54 = vmax.f32 %v4439_v24, 0.0  ;;  %2876 = vadd.xlane.f32.xlu0 %v2748_v22  ;;  %v1887_v60 = vpop.f32.mrb[115].mxu0 }
 0x2e6   : > { %v2060_v29 = vmax.f32 %v1887_v60, 0.0  ;;  %v6423_v11 = vpop.f32.mrb[4].mxu1 }
 0x2e7   : > { %v2132_v56 = vpack.c.bf16 %v2062_v54, %v2061_v63  ;;  %2878 = vadd.xlane.f32.xlu1 %v2749_v48  ;;  %v6425_v6 = vpop.f32.mrb[5].mxu1  ;;  %v2754_v50 = vmul.f32 %v6423_v11, %v6423_v11 }
 0x2e8   : > { %v2131_v51 = vpack.c.bf16 %v2060_v29, %v2059_v55  ;;  %v6429_v4 = vpop.f32.mrb[6].mxu1  ;;  %v2752_v36 = vmul.f32 %v6425_v6, %v6425_v6 }
 0x2e9   : > { %2888 = vadd.xlane.f32.xlu0 %v2754_v50  ;;  %v6431_v44 = vpop.f32.mrb[7].mxu1  ;;  %v2755_v13 = vmul.f32 %v6429_v4, %v6429_v4 }
 0x2ea   : > { %v4442_v58 = vpop.f32.mrb[116].mxu0  ;;  %4580 = vmatprep.mubr.bf16.mxu1 %v2131_v51  ;;  %v2753_v21 = vmul.f32 %v6431_v44, %v6431_v44 }
 0x2eb   : > { %2890 = vadd.xlane.f32.xlu1 %v2755_v13  ;;  %v1900_v40 = vpop.f32.mrb[117].mxu0  ;;  %4581 = vmatmul.mubr.bf16.gmra.mrb[112].mxu1 %v2132_v56  ;;  %v2065_v35 = vmax.f32 %v4442_v58, 0.0 }
 0x2ec   : > { %v4443_v25 = vpop.f32.mrb[118].mxu0  ;;  %v2063_v1 = vmax.f32 %v1900_v40, 0.0 }
 0x2ed   : > { %v2066_v37 = vmax.f32 %v4443_v25, 0.0  ;;  %2884 = vadd.xlane.f32.xlu0 %v2752_v36  ;;  %v1903_v10 = vpop.f32.mrb[119].mxu0 }
 0x2ee   : > { %v2064_v30 = vmax.f32 %v1903_v10, 0.0  ;;  %v6439_v46 = vpop.f32.mrb[8].mxu1 }
 0x2ef   : > { %v2134_v47 = vpack.c.bf16 %v2066_v37, %v2065_v35  ;;  %2886 = vadd.xlane.f32.xlu1 %v2753_v21  ;;  %v6441_v31 = vpop.f32.mrb[9].mxu1  ;;  %v2758_v0 = vmul.f32 %v6439_v46, %v6439_v46 }
 0x2f0   : > { %v2133_v20 = vpack.c.bf16 %v2064_v30, %v2063_v1  ;;  %v6445_v33 = vpop.f32.mrb[10].mxu1  ;;  %v2756_v23 = vmul.f32 %v6441_v31, %v6441_v31 }
 0x2f1   : > { %2896 = vadd.xlane.f32.xlu0 %v2758_v0  ;;  %v6447_v53 = vpop.f32.mrb[11].mxu1  ;;  %v2759_v17 = vmul.f32 %v6445_v33, %v6445_v33 }
 0x2f2   : > { %v4446_v38 = vpop.f32.mrb[120].mxu0  ;;  %4584 = vmatprep.mubr.bf16.mxu1 %v2133_v20  ;;  %v2757_v61 = vmul.f32 %v6447_v53, %v6447_v53 }
 0x2f3   : > { %2898 = vadd.xlane.f32.xlu1 %v2759_v17  ;;  %v1916_v7 = vpop.f32.mrb[121].mxu0  ;;  %4585 = vmatmul.mubr.bf16.gmra.mrb[116].mxu1 %v2134_v47  ;;  %v2069_v59 = vmax.f32 %v4446_v38, 0.0 }
 0x2f4   : > { %v4447_v5 = vpop.f32.mrb[122].mxu0  ;;  %v2067_v3 = vmax.f32 %v1916_v7, 0.0 }
 0x2f5   : > { %v2070_v16 = vmax.f32 %v4447_v5, 0.0  ;;  %2892 = vadd.xlane.f32.xlu0 %v2756_v23  ;;  %v1919_v8 = vpop.f32.mrb[123].mxu0 }
 0x2f6   : > { %v2068_v12 = vmax.f32 %v1919_v8, 0.0  ;;  %v6455_v49 = vpop.f32.mrb[12].mxu1 }
 0x2f7   : > { %v2136_v2 = vpack.c.bf16 %v2070_v16, %v2069_v59  ;;  %2894 = vadd.xlane.f32.xlu1 %v2757_v61  ;;  %v6457_v26 = vpop.f32.mrb[13].mxu1  ;;  %v2762_v45 = vmul.f32 %v6455_v49, %v6455_v49 }
 0x2f8   : > { %v2135_v27 = vpack.c.bf16 %v2068_v12, %v2067_v3  ;;  %v6461_v39 = vpop.f32.mrb[14].mxu1  ;;  %v2760_v52 = vmul.f32 %v6457_v26, %v6457_v26 }
 0x2f9   : > { %2904 = vadd.xlane.f32.xlu0 %v2762_v45  ;;  %v6463_v9 = vpop.f32.mrb[15].mxu1  ;;  %v2763_v42 = vmul.f32 %v6461_v39, %v6461_v39 }
 0x2fa   : > { %v4450_v43 = vpop.f32.mrb[124].mxu0  ;;  %4588 = vmatprep.mubr.bf16.mxu1 %v2135_v27  ;;  %v2761_v41 = vmul.f32 %v6463_v9, %v6463_v9 }
 0x2fb   : > { %2906 = vadd.xlane.f32.xlu1 %v2763_v42  ;;  %v1932_v19 = vpop.f32.mrb[125].mxu0  ;;  %4589 = vmatmul.mubr.bf16.gmra.mrb[120].mxu1 %v2136_v2  ;;  %v2073_v15 = vmax.f32 %v4450_v43, 0.0 }
 0x2fc   : > { %v4451_v18 = vpop.f32.mrb[126].mxu0  ;;  %v2071_v22 = vmax.f32 %v1932_v19, 0.0 }
 0x2fd   : > { %v2074_v14 = vmax.f32 %v4451_v18, 0.0  ;;  %2900 = vadd.xlane.f32.xlu0 %v2760_v52  ;;  %v1935_v57 = vpop.f32.mrb[127].mxu0 }
 0x2fe   : > { %v2072_v24 = vmax.f32 %v1935_v57, 0.0  ;;  %v6471_v63 = vpop.f32.mrb[16].mxu1 }
 0x2ff   : > { %v2138_v54 = vpack.c.bf16 %v2074_v14, %v2073_v15  ;;  %2902 = vadd.xlane.f32.xlu1 %v2761_v41  ;;  %v6473_v60 = vpop.f32.mrb[17].mxu1  ;;  %v2766_v48 = vmul.f32 %v6471_v63, %v6471_v63 }
 0x300   : > { %v2137_v55 = vpack.c.bf16 %v2072_v24, %v2071_v22  ;;  %v6477_v29 = vpop.f32.mrb[18].mxu1  ;;  %v2764_v51 = vmul.f32 %v6473_v60, %v6473_v60 }
 0x301   : > { %2912 = vadd.xlane.f32.xlu0 %v2766_v48  ;;  %v6479_v56 = vpop.f32.mrb[19].mxu1  ;;  %v2767_v50 = vmul.f32 %v6477_v29, %v6477_v29 }
 0x302   : > { %4592 = vmatprep.mubr.bf16.mxu1 %v2137_v55  ;;  %v2765_v13 = vmul.f32 %v6479_v56, %v6479_v56 }
 0x303   : > { %2914 = vadd.xlane.f32.xlu1 %v2767_v50  ;;  %4593 = vmatmul.mubr.bf16.gmra.mrb[124].mxu1 %v2138_v54 }
 0x305   : > { %2908 = vadd.xlane.f32.xlu0 %v2764_v51 }
 0x306   : > { %v6487_v58 = vpop.f32.mrb[20].mxu1 }
 0x307   : > { %2910 = vadd.xlane.f32.xlu1 %v2765_v13  ;;  %v6489_v40 = vpop.f32.mrb[21].mxu1  ;;  %v2770_v36 = vmul.f32 %v6487_v58, %v6487_v58 }
 0x308   : > { %v6493_v25 = vpop.f32.mrb[22].mxu1  ;;  %v2768_v10 = vmul.f32 %v6489_v40, %v6489_v40 }
 0x309   : > { %2920 = vadd.xlane.f32.xlu0 %v2770_v36  ;;  %v6495_v35 = vpop.f32.mrb[23].mxu1  ;;  %v2771_v37 = vmul.f32 %v6493_v25, %v6493_v25 }
 0x30a   : > { %v2769_v21 = vmul.f32 %v6495_v35, %v6495_v35 }
 0x30b   : > { %2922 = vadd.xlane.f32.xlu1 %v2771_v37 }
 0x30d   : > { %2916 = vadd.xlane.f32.xlu0 %v2768_v10 }
 0x30e   : > { %v6503_v1 = vpop.f32.mrb[24].mxu1 }
 0x30f   : > { %2918 = vadd.xlane.f32.xlu1 %v2769_v21  ;;  %v6505_v30 = vpop.f32.mrb[25].mxu1  ;;  %v2774_v47 = vmul.f32 %v6503_v1, %v6503_v1 }
 0x310   : > { %v6509_v0 = vpop.f32.mrb[26].mxu1  ;;  %v2772_v38 = vmul.f32 %v6505_v30, %v6505_v30 }
 0x311   : > { %2928 = vadd.xlane.f32.xlu0 %v2774_v47  ;;  %v6511_v20 = vpop.f32.mrb[27].mxu1  ;;  %v2775_v17 = vmul.f32 %v6509_v0, %v6509_v0 }
 0x312   : > { %v2773_v7 = vmul.f32 %v6511_v20, %v6511_v20 }
 0x313   : > { %2930 = vadd.xlane.f32.xlu1 %v2775_v17 }
 0x315   : > { %2924 = vadd.xlane.f32.xlu0 %v2772_v38 }
 0x316   : > { %v6519_v23 = vpop.f32.mrb[28].mxu1 }
 0x317   : > { %2926 = vadd.xlane.f32.xlu1 %v2773_v7  ;;  %v6521_v5 = vpop.f32.mrb[29].mxu1  ;;  %v2778_v59 = vmul.f32 %v6519_v23, %v6519_v23 }
 0x318   : > { %v6525_v16 = vpop.f32.mrb[30].mxu1  ;;  %v2776_v3 = vmul.f32 %v6521_v5, %v6521_v5 }
 0x319   : > { %2936 = vadd.xlane.f32.xlu0 %v2778_v59  ;;  %v6527_v8 = vpop.f32.mrb[31].mxu1  ;;  %v2779_v61 = vmul.f32 %v6525_v16, %v6525_v16 }
 0x31a   : > { %v2777_v12 = vmul.f32 %v6527_v8, %v6527_v8 }
 0x31b   : > { %2938 = vadd.xlane.f32.xlu1 %v2779_v61 }
 0x31d   : > { %2932 = vadd.xlane.f32.xlu0 %v2776_v3 }
 0x31e   : > { %v6535_v2 = vpop.f32.mrb[32].mxu1 }
 0x31f   : > { %2934 = vadd.xlane.f32.xlu1 %v2777_v12  ;;  %v6537_v45 = vpop.f32.mrb[33].mxu1  ;;  %v2782_v27 = vmul.f32 %v6535_v2, %v6535_v2 }
 0x320   : > { %v6541_v42 = vpop.f32.mrb[34].mxu1  ;;  %v2780_v52 = vmul.f32 %v6537_v45, %v6537_v45 }
 0x321   : > { %2944 = vadd.xlane.f32.xlu0 %v2782_v27  ;;  %v6543_v43 = vpop.f32.mrb[35].mxu1  ;;  %v2783_v19 = vmul.f32 %v6541_v42, %v6541_v42 }
 0x322   : > { %v2781_v18 = vmul.f32 %v6543_v43, %v6543_v43 }
 0x323   : > { %2946 = vadd.xlane.f32.xlu1 %v2783_v19 }
 0x325   : > { %2940 = vadd.xlane.f32.xlu0 %v2780_v52 }
 0x326   : > { %v6551_v15 = vpop.f32.mrb[36].mxu1 }
 0x327   : > { %v2786_v14 = vmul.f32 %v6551_v15, %v6551_v15  ;;  %2942 = vadd.xlane.f32.xlu1 %v2781_v18  ;;  %v6555_v57 = vpop.f32.mrb[37].mxu1 }
 0x328   : > { %v6557_v41 = vpop.f32.mrb[38].mxu1  ;;  %v2784_v54 = vmul.f32 %v6555_v57, %v6555_v57 }
 0x329   : > { %v2787_v22 = vmul.f32 %v6557_v41, %v6557_v41  ;;  %2952 = vadd.xlane.f32.xlu0 %v2786_v14  ;;  %v6561_v24 = vpop.f32.mrb[39].mxu1 }
 0x32a   : > { %v2785_v48 = vmul.f32 %v6561_v24, %v6561_v24 }
 0x32b   : > { %2954 = vadd.xlane.f32.xlu1 %v2787_v22 }
 0x32d   : > { %2948 = vadd.xlane.f32.xlu0 %v2784_v54 }
 0x32e   : > { %v6567_v55 = vpop.f32.mrb[40].mxu1 }
 0x32f   : > { %v2790_v50 = vmul.f32 %v6567_v55, %v6567_v55  ;;  %2950 = vadd.xlane.f32.xlu1 %v2785_v48  ;;  %v6571_v51 = vpop.f32.mrb[41].mxu1 }
 0x330   : > { %v6573_v13 = vpop.f32.mrb[42].mxu1  ;;  %v2788_v10 = vmul.f32 %v6571_v51, %v6571_v51 }
 0x331   : > { %v2791_v36 = vmul.f32 %v6573_v13, %v6573_v13  ;;  %2960 = vadd.xlane.f32.xlu0 %v2790_v50  ;;  %v6577_v37 = vpop.f32.mrb[43].mxu1 }
 0x332   : > { %v2789_v21 = vmul.f32 %v6577_v37, %v6577_v37 }
 0x333   : > { %2962 = vadd.xlane.f32.xlu1 %v2791_v36 }
 0x335   : > { %2956 = vadd.xlane.f32.xlu0 %v2788_v10 }
 0x336   : > { %v6583_v47 = vpop.f32.mrb[44].mxu1 }
 0x337   : > { %v2794_v17 = vmul.f32 %v6583_v47, %v6583_v47  ;;  %2958 = vadd.xlane.f32.xlu1 %v2789_v21  ;;  %v6587_v38 = vpop.f32.mrb[45].mxu1 }
 0x338   : > { %v6589_v7 = vpop.f32.mrb[46].mxu1  ;;  %v2792_v3 = vmul.f32 %v6587_v38, %v6587_v38 }
 0x339   : > { %v2795_v59 = vmul.f32 %v6589_v7, %v6589_v7  ;;  %2968 = vadd.xlane.f32.xlu0 %v2794_v17  ;;  %v6593_v61 = vpop.f32.mrb[47].mxu1 }
 0x33a   : > { %v2793_v12 = vmul.f32 %v6593_v61, %v6593_v61 }
 0x33b   : > { %2970 = vadd.xlane.f32.xlu1 %v2795_v59 }
 0x33d   : > { %2964 = vadd.xlane.f32.xlu0 %v2792_v3 }
 0x33e   : > { %v6599_v27 = vpop.f32.mrb[48].mxu1 }
 0x33f   : > { %v2798_v19 = vmul.f32 %v6599_v27, %v6599_v27  ;;  %2966 = vadd.xlane.f32.xlu1 %v2793_v12  ;;  %v6603_v52 = vpop.f32.mrb[49].mxu1 }
 0x340   : > { %7431 = vst [vmem:[#allocation36_spill] sm:$0xff] %v6603_v52  ;;  %v6605_v18 = vpop.f32.mrb[50].mxu1  ;;  %v2796_v54 = vmul.f32 %v6603_v52, %v6603_v52 }
 0x341   : > { %7432 = vst [vmem:[#allocation39_spill] sm:$0xff] %v6605_v18  ;;  %v2799_v14 = vmul.f32 %v6605_v18, %v6605_v18  ;;  %2976 = vadd.xlane.f32.xlu0 %v2798_v19  ;;  %v6609_v22 = vpop.f32.mrb[51].mxu1 }
 0x342   : > { %7433 = vst [vmem:[#allocation42_spill] sm:$0xff] %v6609_v22  ;;  %v2797_v48 = vmul.f32 %v6609_v22, %v6609_v22 }
 0x343   : > { %2978 = vadd.xlane.f32.xlu1 %v2799_v14 }
 0x345   : > { %2972 = vadd.xlane.f32.xlu0 %v2796_v54 }
 0x346   : > { %v6615_v50 = vpop.f32.mrb[52].mxu1 }
 0x347   : > { %7434 = vst [vmem:[#allocation44_spill] sm:$0xff] %v6615_v50  ;;  %v2802_v36 = vmul.f32 %v6615_v50, %v6615_v50  ;;  %2974 = vadd.xlane.f32.xlu1 %v2797_v48  ;;  %v6619_v10 = vpop.f32.mrb[53].mxu1 }
 0x348   : > { %7435 = vst [vmem:[#allocation41_spill] sm:$0xff] %v6619_v10  ;;  %v6621_v21 = vpop.f32.mrb[54].mxu1  ;;  %v2800_v3 = vmul.f32 %v6619_v10, %v6619_v10 }
 0x349   : > { %7436 = vst [vmem:[#allocation43_spill] sm:$0xff] %v6621_v21  ;;  %v2803_v17 = vmul.f32 %v6621_v21, %v6621_v21  ;;  %2984 = vadd.xlane.f32.xlu0 %v2802_v36  ;;  %v6625_v59 = vpop.f32.mrb[55].mxu1 }
 0x34a   : > { %7437 = vst [vmem:[#allocation46_spill] sm:$0xff] %v6625_v59  ;;  %v2801_v12 = vmul.f32 %v6625_v59, %v6625_v59 }
 0x34b   : > { %2986 = vadd.xlane.f32.xlu1 %v2803_v17 }
 0x34d   : > { %2980 = vadd.xlane.f32.xlu0 %v2800_v3 }
 0x34e   : > { %v6631_v19 = vpop.f32.mrb[56].mxu1 }
 0x34f   : > { %7438 = vst [vmem:[#allocation49_spill] sm:$0xff] %v6631_v19  ;;  %v2806_v14 = vmul.f32 %v6631_v19, %v6631_v19  ;;  %2982 = vadd.xlane.f32.xlu1 %v2801_v12  ;;  %v6635_v54 = vpop.f32.mrb[57].mxu1 }
 0x350   : > { %7439 = vst [vmem:[#allocation45_spill] sm:$0xff] %v6635_v54  ;;  %v6637_v48 = vpop.f32.mrb[58].mxu1  ;;  %v2804_v17 = vmul.f32 %v6635_v54, %v6635_v54 }
 0x351   : > { %7440 = vst [vmem:[#allocation48_spill] sm:$0xff] %v6637_v48  ;;  %v2807_v36 = vmul.f32 %v6637_v48, %v6637_v48  ;;  %2992 = vadd.xlane.f32.xlu0 %v2806_v14  ;;  %v6641_v10 = vpop.f32.mrb[59].mxu1 }
 0x352   : > { %7441 = vst [vmem:[#allocation50_spill] sm:$0xff] %v6641_v10  ;;  %v2805_v3 = vmul.f32 %v6641_v10, %v6641_v10 }
 0x353   : > { %2994 = vadd.xlane.f32.xlu1 %v2807_v36 }
 0x355   : > { %2988 = vadd.xlane.f32.xlu0 %v2804_v17 }
 0x356   : > { %v6647_v19 = vpop.f32.mrb[60].mxu1 }
 0x357   : > { %7442 = vst [vmem:[#allocation47_spill] sm:$0xff] %v6647_v19  ;;  %v2810_v12 = vmul.f32 %v6647_v19, %v6647_v19  ;;  %2990 = vadd.xlane.f32.xlu1 %v2805_v3  ;;  %v6651_v59 = vpop.f32.mrb[61].mxu1 }
 0x358   : > { %7443 = vst [vmem:[#allocation51_spill] sm:$0xff] %v6651_v59  ;;  %v6653_v48 = vpop.f32.mrb[62].mxu1  ;;  %v2808_v36 = vmul.f32 %v6651_v59, %v6651_v59 }
 0x359   : > { %7444 = vst [vmem:[#allocation52_spill] sm:$0xff] %v6653_v48  ;;  %v2811_v14 = vmul.f32 %v6653_v48, %v6653_v48  ;;  %3000 = vadd.xlane.f32.xlu0 %v2810_v12  ;;  %v6657_v54 = vpop.f32.mrb[63].mxu1 }
 0x35a   : > { %7445 = vst [vmem:[#allocation53_spill] sm:$0xff] %v6657_v54  ;;  %v2809_v17 = vmul.f32 %v6657_v54, %v6657_v54 }
 0x35b   : > { %3002 = vadd.xlane.f32.xlu1 %v2811_v14 }
 0x35d   : > { %2996 = vadd.xlane.f32.xlu0 %v2808_v36 }
 0x35e   : > { %v6663_v19 = vpop.f32.mrb[64].mxu1 }
 0x35f   : > { %7446 = vst [vmem:[#allocation54_spill] sm:$0xff] %v6663_v19  ;;  %v2814_v3 = vmul.f32 %v6663_v19, %v6663_v19  ;;  %2998 = vadd.xlane.f32.xlu1 %v2809_v17  ;;  %v6667_v10 = vpop.f32.mrb[65].mxu1 }
 0x360   : > { %7447 = vst [vmem:[#allocation55_spill] sm:$0xff] %v6667_v10  ;;  %v6669_v48 = vpop.f32.mrb[66].mxu1  ;;  %v2812_v14 = vmul.f32 %v6667_v10, %v6667_v10 }
 0x361   : > { %7448 = vst [vmem:[#allocation56_spill] sm:$0xff] %v6669_v48  ;;  %v2815_v12 = vmul.f32 %v6669_v48, %v6669_v48  ;;  %3008 = vadd.xlane.f32.xlu0 %v2814_v3  ;;  %v6673_v59 = vpop.f32.mrb[67].mxu1 }
 0x362   : > { %7449 = vst [vmem:[#allocation21_spill] sm:$0xff] %v6673_v59  ;;  %v2813_v36 = vmul.f32 %v6673_v59, %v6673_v59 }
 0x363   : > { %3010 = vadd.xlane.f32.xlu1 %v2815_v12 }
 0x365   : > { %3004 = vadd.xlane.f32.xlu0 %v2812_v14 }
 0x366   : > { %v6679_v19 = vpop.f32.mrb[68].mxu1 }
 0x367   : > { %7450 = vst [vmem:[#allocation24_spill] sm:$0xff] %v6679_v19  ;;  %v2818_v17 = vmul.f32 %v6679_v19, %v6679_v19  ;;  %3006 = vadd.xlane.f32.xlu1 %v2813_v36  ;;  %v6683_v54 = vpop.f32.mrb[69].mxu1 }
 0x368   : > { %7451 = vst [vmem:[#allocation22_spill] sm:$0xff] %v6683_v54  ;;  %v6685_v48 = vpop.f32.mrb[70].mxu1  ;;  %v2816_v12 = vmul.f32 %v6683_v54, %v6683_v54 }
 0x369   : > { %7452 = vst [vmem:[#allocation23_spill] sm:$0xff] %v6685_v48  ;;  %v2819_v3 = vmul.f32 %v6685_v48, %v6685_v48  ;;  %3016 = vadd.xlane.f32.xlu0 %v2818_v17  ;;  %v6689_v10 = vpop.f32.mrb[71].mxu1 }
 0x36a   : > { %7453 = vst [vmem:[#allocation26_spill] sm:$0xff] %v6689_v10  ;;  %v2817_v14 = vmul.f32 %v6689_v10, %v6689_v10 }
 0x36b   : > { %3018 = vadd.xlane.f32.xlu1 %v2819_v3 }
 0x36d   : > { %3012 = vadd.xlane.f32.xlu0 %v2816_v12 }
 0x36e   : > { %v6695_v19 = vpop.f32.mrb[72].mxu1  ;;  %v2881_v36 = vpop.xlane.xlu0 %2880 }
 0x36f   : > { %7454 = vst [vmem:[#allocation29_spill] sm:$0xff] %v6695_v19  ;;  %v2822_v59 = vmul.f32 %v6695_v19, %v6695_v19  ;;  %v3134_v21 = vmax.f32 %v2881_v36, 1e-24  ;;  %3014 = vadd.xlane.f32.xlu1 %v2817_v14  ;;  %v6699_v48 = vpop.f32.mrb[73].mxu1 }
 0x370   : > { %7455 = vst [vmem:[#allocation25_spill] sm:$0xff] %v6699_v48  ;;  %v2883_v17 = vpop.xlane.xlu1 %2882  ;;  %v6701_v50 = vpop.f32.mrb[74].mxu1  ;;  %v2820_v22 = vmul.f32 %v6699_v48, %v6699_v48 }
 0x371   : > { %7456 = vst [vmem:[#allocation28_spill] sm:$0xff] %v6701_v50  ;;  %4833 = vrsqrt.f32 %v3134_v21  ;;  %v3135_v54 = vmax.f32 %v2883_v17, 1e-24  ;;  %v2823_v3 = vmul.f32 %v6701_v50, %v6701_v50  ;;  %3024 = vadd.xlane.f32.xlu0 %v2822_v59  ;;  %v6705_v12 = vpop.f32.mrb[75].mxu1 }
 0x372   : > { %7457 = vst [vmem:[#allocation30_spill] sm:$0xff] %v6705_v12  ;;  %v2877_v10 = vpop.xlane.xlu0 %2876  ;;  %v2821_v19 = vmul.f32 %v6705_v12, %v6705_v12 }
 0x373   : > { %4835 = vrsqrt.f32 %v3135_v54  ;;  %v3132_v14 = vmax.f32 %v2877_v10, 1e-24  ;;  %3026 = vadd.xlane.f32.xlu1 %v2823_v3 }
 0x374   : > { %v2879_v36 = vpop.xlane.xlu1 %2878 }
 0x375   : > { %4837 = vrsqrt.f32 %v3132_v14  ;;  %v3133_v21 = vmax.f32 %v2879_v36, 1e-24  ;;  %3020 = vadd.xlane.f32.xlu0 %v2820_v22 }
 0x376   : > { %v6711_v17 = vpop.f32.mrb[76].mxu1  ;;  %v2889_v59 = vpop.xlane.xlu0 %2888 }
 0x377   : > { %7458 = vst [vmem:[#allocation33_spill] sm:$0xff] %v6711_v17  ;;  %4839 = vrsqrt.f32 %v3133_v21  ;;  %v2826_v50 = vmul.f32 %v6711_v17, %v6711_v17  ;;  %v3138_v52 = vmax.f32 %v2889_v59, 1e-24  ;;  %3022 = vadd.xlane.f32.xlu1 %v2821_v19  ;;  %v6715_v48 = vpop.f32.mrb[77].mxu1 }
 0x378   : > { %v2891_v10 = vpop.xlane.xlu1 %2890  ;;  %v6718_v54 = vpop.f32.mrb[78].mxu1  ;;  %v2824_v59 = vmul.f32 %v6715_v48, %v6715_v48 }
 0x379   : > { %4841 = vrsqrt.f32 %v3138_v52  ;;  %v3139_v3 = vmax.f32 %v2891_v10, 1e-24  ;;  %v2827_v22 = vmul.f32 %v6718_v54, %v6718_v54  ;;  %3032 = vadd.xlane.f32.xlu0 %v2826_v50  ;;  %v6722_v14 = vpop.f32.mrb[79].mxu1 }
 0x37a   : > { %7459 = vst [vmem:[#allocation27_spill] sm:$0xff] %v6722_v14  ;;  %v2885_v36 = vpop.xlane.xlu0 %2884  ;;  %v2825_v52 = vmul.f32 %v6722_v14, %v6722_v14 }
 0x37b   : > { %v4834_v21 = vpop.eup %4833  ;;  %4843 = vrsqrt.f32 %v3139_v3  ;;  %v3136_v19 = vmax.f32 %v2885_v36, 1e-24  ;;  %3034 = vadd.xlane.f32.xlu1 %v2827_v22 }
 0x37c   : > { %v3390_v17 = vmul.f32 %v4834_v21, %v6407_v34  ;;  %v2887_v12 = vpop.xlane.xlu1 %2886 }
 0x37d   : > { %v4836_v18 = vpop.eup %4835  ;;  %4845 = vrsqrt.f32 %v3136_v19  ;;  %v3137_v10 = vmax.f32 %v2887_v12, 1e-24  ;;  %3028 = vadd.xlane.f32.xlu0 %v2824_v59 }
 0x37e   : > { %3518 = vst [vmem:[%s6729_s10 + $0x10] sm:$0xff] %v3390_v17  ;;  %v3391_v50 = vmul.f32 %v4836_v18, %v6413_v62  ;;  %v6733_v3 = vpop.f32.mrb[80].mxu1  ;;  %v2897_v22 = vpop.xlane.xlu0 %2896 }
 0x37f   : > { %v4838_v36 = vpop.eup %4837  ;;  %4847 = vrsqrt.f32 %v3137_v10  ;;  %v2830_v34 = vmul.f32 %v6733_v3, %v6733_v3  ;;  %v3142_v21 = vmax.f32 %v2897_v22, 1e-24  ;;  %3030 = vadd.xlane.f32.xlu1 %v2825_v52  ;;  %v6737_v12 = vpop.f32.mrb[81].mxu1 }
 0x380   : > { %3519 = vst [vmem:[%s6729_s10 + $0x18] sm:$0xff] %v3391_v50  ;;  %v3388_v59 = vmul.f32 %v4838_v36, %v6409_v32  ;;  %v2899_v19 = vpop.xlane.xlu1 %2898  ;;  %v6741_v17 = vpop.f32.mrb[82].mxu1  ;;  %v2828_v32 = vmul.f32 %v6737_v12, %v6737_v12 }
 0x381   : > { %7460 = vst [vmem:[#allocation32_spill] sm:$0xff] %v6741_v17  ;;  %v4840_v62 = vpop.eup %4839  ;;  %4849 = vrsqrt.f32 %v3142_v21  ;;  %v3143_v18 = vmax.f32 %v2899_v19, 1e-24  ;;  %v2831_v10 = vmul.f32 %v6741_v17, %v6741_v17  ;;  %3040 = vadd.xlane.f32.xlu0 %v2830_v34  ;;  %v6745_v14 = vpop.f32.mrb[83].mxu1 }
 0x382   : > { %3516 = vst [vmem:[%s6729_s10] sm:$0xff] %v3388_v59  ;;  %v3389_v52 = vmul.f32 %v4840_v62, %v6415_v28  ;;  %v2893_v50 = vpop.xlane.xlu0 %2892  ;;  %v2829_v59 = vmul.f32 %v6745_v14, %v6745_v14 }
 0x383   : > { %v4842_v22 = vpop.eup %4841  ;;  %4851 = vrsqrt.f32 %v3143_v18  ;;  %v3140_v36 = vmax.f32 %v2893_v50, 1e-24  ;;  %3042 = vadd.xlane.f32.xlu1 %v2831_v10 }
 0x384   : > { %3517 = vst [vmem:[%s6729_s10 + $0x8] sm:$0xff] %v3389_v52  ;;  %v3394_v21 = vmul.f32 %v4842_v22, %v6423_v11  ;;  %v2895_v19 = vpop.xlane.xlu1 %2894 }
 0x385   : > { %v4844_v34 = vpop.eup %4843  ;;  %4853 = vrsqrt.f32 %v3140_v36  ;;  %v3141_v17 = vmax.f32 %v2895_v19, 1e-24  ;;  %3036 = vadd.xlane.f32.xlu0 %v2828_v32 }
 0x386   : > { %3522 = vst [vmem:[%s6729_s10 + $0x30] sm:$0xff] %v3394_v21  ;;  %v3395_v28 = vmul.f32 %v4844_v34, %v6429_v4  ;;  %v6757_v62 = vpop.f32.mrb[84].mxu1  ;;  %v2905_v18 = vpop.xlane.xlu0 %2904 }
 0x387   : > { %v4846_v50 = vpop.eup %4845  ;;  %4855 = vrsqrt.f32 %v3141_v17  ;;  %v2834_v11 = vmul.f32 %v6757_v62, %v6757_v62  ;;  %v3146_v10 = vmax.f32 %v2905_v18, 1e-24  ;;  %3038 = vadd.xlane.f32.xlu1 %v2829_v59  ;;  %v6761_v52 = vpop.f32.mrb[85].mxu1 }
 0x388   : > { %3523 = vst [vmem:[%s6729_s10 + $0x38] sm:$0xff] %v3395_v28  ;;  %v3392_v22 = vmul.f32 %v4846_v50, %v6425_v6  ;;  %v2907_v32 = vpop.xlane.xlu1 %2906  ;;  %v6765_v36 = vpop.f32.mrb[86].mxu1  ;;  %v2832_v6 = vmul.f32 %v6761_v52, %v6761_v52 }
 0x389   : > { %v4848_v4 = vpop.eup %4847  ;;  %4857 = vrsqrt.f32 %v3146_v10  ;;  %v3147_v21 = vmax.f32 %v2907_v32, 1e-24  ;;  %v2835_v17 = vmul.f32 %v6765_v36, %v6765_v36  ;;  %3048 = vadd.xlane.f32.xlu0 %v2834_v11  ;;  %v6769_v19 = vpop.f32.mrb[87].mxu1 }
 0x38a   : > { %3520 = vst [vmem:[%s6729_s10 + $0x20] sm:$0xff] %v3392_v22  ;;  %v3393_v34 = vmul.f32 %v4848_v4, %v6431_v44  ;;  %v2901_v59 = vpop.xlane.xlu0 %2900  ;;  %v2833_v22 = vmul.f32 %v6769_v19, %v6769_v19 }
 0x38b   : > { %v4850_v28 = vpop.eup %4849  ;;  %4859 = vrsqrt.f32 %v3147_v21  ;;  %v3144_v18 = vmax.f32 %v2901_v59, 1e-24  ;;  %3050 = vadd.xlane.f32.xlu1 %v2835_v17 }
 0x38c   : > { %3521 = vst [vmem:[%s6729_s10 + $0x28] sm:$0xff] %v3393_v34  ;;  %v3398_v50 = vmul.f32 %v4850_v28, %v6439_v46  ;;  %v2903_v10 = vpop.xlane.xlu1 %2902 }
 0x38d   : > { %v4852_v11 = vpop.eup %4851  ;;  %4861 = vrsqrt.f32 %v3144_v18  ;;  %v3145_v32 = vmax.f32 %v2903_v10, 1e-24  ;;  %3044 = vadd.xlane.f32.xlu0 %v2832_v6 }
 0x38e   : > { %3526 = vst [vmem:[%s6729_s10 + $0x50] sm:$0xff] %v3398_v50  ;;  %v3399_v44 = vmul.f32 %v4852_v11, %v6445_v33  ;;  %v6781_v4 = vpop.f32.mrb[88].mxu1  ;;  %v2913_v21 = vpop.xlane.xlu0 %2912 }
 0x38f   : > { %v4854_v59 = vpop.eup %4853  ;;  %4863 = vrsqrt.f32 %v3145_v32  ;;  %v2838_v46 = vmul.f32 %v6781_v4, %v6781_v4  ;;  %v3150_v17 = vmax.f32 %v2913_v21, 1e-24  ;;  %3046 = vadd.xlane.f32.xlu1 %v2833_v22  ;;  %v6785_v34 = vpop.f32.mrb[89].mxu1 }
 0x390   : > { %3527 = vst [vmem:[%s6729_s10 + $0x58] sm:$0xff] %v3399_v44  ;;  %v3396_v28 = vmul.f32 %v4854_v59, %v6441_v31  ;;  %v2915_v6 = vpop.xlane.xlu1 %2914  ;;  %v6789_v18 = vpop.f32.mrb[90].mxu1  ;;  %v2836_v31 = vmul.f32 %v6785_v34, %v6785_v34 }
 0x391   : > { %v4856_v33 = vpop.eup %4855  ;;  %4865 = vrsqrt.f32 %v3150_v17  ;;  %v3151_v50 = vmax.f32 %v2915_v6, 1e-24  ;;  %v2839_v10 = vmul.f32 %v6789_v18, %v6789_v18  ;;  %3056 = vadd.xlane.f32.xlu0 %v2838_v46  ;;  %v6793_v11 = vpop.f32.mrb[91].mxu1 }
 0x392   : > { %3524 = vst [vmem:[%s6729_s10 + $0x40] sm:$0xff] %v3396_v28  ;;  %v3397_v22 = vmul.f32 %v4856_v33, %v6447_v53  ;;  %v2909_v32 = vpop.xlane.xlu0 %2908  ;;  %v2837_v28 = vmul.f32 %v6793_v11, %v6793_v11 }
 0x393   : > { %v4858_v44 = vpop.eup %4857  ;;  %4867 = vrsqrt.f32 %v3151_v50  ;;  %v3148_v21 = vmax.f32 %v2909_v32, 1e-24  ;;  %3058 = vadd.xlane.f32.xlu1 %v2839_v10 }
 0x394   : > { %3525 = vst [vmem:[%s6729_s10 + $0x48] sm:$0xff] %v3397_v22  ;;  %v3402_v59 = vmul.f32 %v4858_v44, %v6455_v49  ;;  %v2911_v17 = vpop.xlane.xlu1 %2910 }
 0x395   : > { %v4860_v46 = vpop.eup %4859  ;;  %4869 = vrsqrt.f32 %v3148_v21  ;;  %v3149_v6 = vmax.f32 %v2911_v17, 1e-24  ;;  %3052 = vadd.xlane.f32.xlu0 %v2836_v31 }
 0x396   : > { %3530 = vst [vmem:[%s6729_s10 + $0x70] sm:$0xff] %v3402_v59  ;;  %v3403_v53 = vmul.f32 %v4860_v46, %v6461_v39  ;;  %v6805_v33 = vpop.f32.mrb[92].mxu1  ;;  %v2921_v50 = vpop.xlane.xlu0 %2920 }
 0x397   : > { %v4862_v32 = vpop.eup %4861  ;;  %4871 = vrsqrt.f32 %v3149_v6  ;;  %v2842_v49 = vmul.f32 %v6805_v33, %v6805_v33  ;;  %v3154_v10 = vmax.f32 %v2921_v50, 1e-24  ;;  %3054 = vadd.xlane.f32.xlu1 %v2837_v28  ;;  %v6809_v22 = vpop.f32.mrb[93].mxu1 }
 0x398   : > { %3531 = vst [vmem:[%s6729_s10 + $0x78] sm:$0xff] %v3403_v53  ;;  %v3400_v44 = vmul.f32 %v4862_v32, %v6457_v26  ;;  %v2923_v31 = vpop.xlane.xlu1 %2922  ;;  %v6813_v21 = vpop.f32.mrb[94].mxu1  ;;  %v2840_v26 = vmul.f32 %v6809_v22, %v6809_v22 }
 0x399   : > { %v4864_v39 = vpop.eup %4863  ;;  %4873 = vrsqrt.f32 %v3154_v10  ;;  %v3155_v59 = vmax.f32 %v2923_v31, 1e-24  ;;  %v2843_v17 = vmul.f32 %v6813_v21, %v6813_v21  ;;  %3064 = vadd.xlane.f32.xlu0 %v2842_v49  ;;  %v6817_v46 = vpop.f32.mrb[95].mxu1 }
 0x39a   : > { %3528 = vst [vmem:[%s6729_s10 + $0x60] sm:$0xff] %v3400_v44  ;;  %v3401_v28 = vmul.f32 %v4864_v39, %v6463_v9  ;;  %v2917_v6 = vpop.xlane.xlu0 %2916  ;;  %v2841_v44 = vmul.f32 %v6817_v46, %v6817_v46 }
 0x39b   : > { %v4866_v53 = vpop.eup %4865  ;;  %4875 = vrsqrt.f32 %v3155_v59  ;;  %v3152_v50 = vmax.f32 %v2917_v6, 1e-24  ;;  %3066 = vadd.xlane.f32.xlu1 %v2843_v17 }
 0x39c   : > { %3529 = vst [vmem:[%s6729_s10 + $0x68] sm:$0xff] %v3401_v28  ;;  %v3406_v32 = vmul.f32 %v4866_v53, %v6471_v63  ;;  %v2919_v10 = vpop.xlane.xlu1 %2918 }
 0x39d   : > { %v4868_v49 = vpop.eup %4867  ;;  %4877 = vrsqrt.f32 %v3152_v50  ;;  %v3153_v31 = vmax.f32 %v2919_v10, 1e-24  ;;  %3060 = vadd.xlane.f32.xlu0 %v2840_v26 }
 0x39e   : > { %3534 = vst [vmem:[%s6729_s10 + $0x90] sm:$0xff] %v3406_v32  ;;  %v3407_v9 = vmul.f32 %v4868_v49, %v6477_v29  ;;  %v6829_v39 = vpop.f32.mrb[96].mxu1  ;;  %v2929_v59 = vpop.xlane.xlu0 %2928 }
 0x39f   : > { %v4870_v6 = vpop.eup %4869  ;;  %4879 = vrsqrt.f32 %v3153_v31  ;;  %v2846_v63 = vmul.f32 %v6829_v39, %v6829_v39  ;;  %v3158_v17 = vmax.f32 %v2929_v59, 1e-24  ;;  %3062 = vadd.xlane.f32.xlu1 %v2841_v44  ;;  %v6833_v28 = vpop.f32.mrb[97].mxu1 }
 0x3a0   : > { %3535 = vst [vmem:[%s6729_s10 + $0x98] sm:$0xff] %v3407_v9  ;;  %v3404_v53 = vmul.f32 %v4870_v6, %v6473_v60  ;;  %v2931_v26 = vpop.xlane.xlu1 %2930  ;;  %v6837_v50 = vpop.f32.mrb[98].mxu1  ;;  %v2844_v60 = vmul.f32 %v6833_v28, %v6833_v28 }
 0x3a1   : > { %v4872_v29 = vpop.eup %4871  ;;  %4881 = vrsqrt.f32 %v3158_v17  ;;  %v3159_v32 = vmax.f32 %v2931_v26, 1e-24  ;;  %v2847_v10 = vmul.f32 %v6837_v50, %v6837_v50  ;;  %3072 = vadd.xlane.f32.xlu0 %v2846_v63  ;;  %v6841_v49 = vpop.f32.mrb[99].mxu1 }
 0x3a2   : > { %3532 = vst [vmem:[%s6729_s10 + $0x80] sm:$0xff] %v3404_v53  ;;  %v3405_v44 = vmul.f32 %v4872_v29, %v6479_v56  ;;  %v2925_v31 = vpop.xlane.xlu0 %2924  ;;  %v2845_v53 = vmul.f32 %v6841_v49, %v6841_v49 }
 0x3a3   : > { %v4874_v9 = vpop.eup %4873  ;;  %4883 = vrsqrt.f32 %v3159_v32  ;;  %v3156_v59 = vmax.f32 %v2925_v31, 1e-24  ;;  %3074 = vadd.xlane.f32.xlu1 %v2847_v10 }
 0x3a4   : > { %3533 = vst [vmem:[%s6729_s10 + $0x88] sm:$0xff] %v3405_v44  ;;  %v3410_v6 = vmul.f32 %v4874_v9, %v6487_v58  ;;  %v2927_v17 = vpop.xlane.xlu1 %2926 }
 0x3a5   : > { %v4876_v63 = vpop.eup %4875  ;;  %4885 = vrsqrt.f32 %v3156_v59  ;;  %v3157_v26 = vmax.f32 %v2927_v17, 1e-24  ;;  %3068 = vadd.xlane.f32.xlu0 %v2844_v60 }
 0x3a6   : > { %3538 = vst [vmem:[%s6729_s10 + $0xb0] sm:$0xff] %v3410_v6  ;;  %v3411_v56 = vmul.f32 %v4876_v63, %v6493_v25  ;;  %v6853_v29 = vpop.f32.mrb[100].mxu1  ;;  %v2937_v32 = vpop.xlane.xlu0 %2936 }
 0x3a7   : > { %v4878_v31 = vpop.eup %4877  ;;  %4887 = vrsqrt.f32 %v3157_v26  ;;  %v2850_v58 = vmul.f32 %v6853_v29, %v6853_v29  ;;  %v3162_v10 = vmax.f32 %v2937_v32, 1e-24  ;;  %3070 = vadd.xlane.f32.xlu1 %v2845_v53  ;;  %v6857_v44 = vpop.f32.mrb[101].mxu1 }
 0x3a8   : > { %3539 = vst [vmem:[%s6729_s10 + $0xb8] sm:$0xff] %v3411_v56  ;;  %v3408_v9 = vmul.f32 %v4878_v31, %v6489_v40  ;;  %v2939_v60 = vpop.xlane.xlu1 %2938  ;;  %v6861_v59 = vpop.f32.mrb[102].mxu1  ;;  %v2848_v40 = vmul.f32 %v6857_v44, %v6857_v44 }
 0x3a9   : > { %v4880_v25 = vpop.eup %4879  ;;  %4889 = vrsqrt.f32 %v3162_v10  ;;  %v3163_v6 = vmax.f32 %v2939_v60, 1e-24  ;;  %v2851_v17 = vmul.f32 %v6861_v59, %v6861_v59  ;;  %v6865_v63 = vpop.f32.mrb[103].mxu1  ;;  %3080 = vadd.xlane.f32.xlu0 %v2850_v58 }
 0x3aa   : > { %3536 = vst [vmem:[%s6729_s10 + $0xa0] sm:$0xff] %v3408_v9  ;;  %v3409_v53 = vmul.f32 %v4880_v25, %v6495_v35  ;;  %v2933_v26 = vpop.xlane.xlu0 %2932  ;;  %v2849_v58 = vmul.f32 %v6865_v63, %v6865_v63 }
 0x3ab   : > { %v4882_v56 = vpop.eup %4881  ;;  %4891 = vrsqrt.f32 %v3163_v6  ;;  %v3160_v32 = vmax.f32 %v2933_v26, 1e-24  ;;  %3082 = vadd.xlane.f32.xlu1 %v2851_v17 }
 0x3ac   : > { %3537 = vst [vmem:[%s6729_s10 + $0xa8] sm:$0xff] %v3409_v53  ;;  %v3414_v31 = vmul.f32 %v4882_v56, %v6503_v1  ;;  %v2935_v10 = vpop.xlane.xlu1 %2934 }
 0x3ad   : > { %v4884_v60 = vpop.eup %4883  ;;  %4893 = vrsqrt.f32 %v3160_v32  ;;  %v3161_v9 = vmax.f32 %v2935_v10, 1e-24  ;;  %3076 = vadd.xlane.f32.xlu0 %v2848_v40 }
 0x3ae   : > { %3542 = vst [vmem:[%s6729_s10 + $0xd0] sm:$0xff] %v3414_v31  ;;  %v3415_v35 = vmul.f32 %v4884_v60, %v6509_v0  ;;  %v6877_v25 = vpop.f32.mrb[104].mxu1  ;;  %v2945_v6 = vpop.xlane.xlu0 %2944 }
 0x3af   : > { %v4886_v26 = vpop.eup %4885  ;;  %4895 = vrsqrt.f32 %v3161_v9  ;;  %v2854_v1 = vmul.f32 %v6877_v25, %v6877_v25  ;;  %v3166_v17 = vmax.f32 %v2945_v6, 1e-24  ;;  %3078 = vadd.xlane.f32.xlu1 %v2849_v58  ;;  %v6881_v53 = vpop.f32.mrb[105].mxu1 }
 0x3b0   : > { %3543 = vst [vmem:[%s6729_s10 + $0xd8] sm:$0xff] %v3415_v35  ;;  %v3412_v56 = vmul.f32 %v4886_v26, %v6505_v30  ;;  %v2947_v40 = vpop.xlane.xlu1 %2946  ;;  %v6885_v32 = vpop.f32.mrb[106].mxu1  ;;  %v2852_v30 = vmul.f32 %v6881_v53, %v6881_v53 }
 0x3b1   : > { %v4888_v0 = vpop.eup %4887  ;;  %4897 = vrsqrt.f32 %v3166_v17  ;;  %v3167_v31 = vmax.f32 %v2947_v40, 1e-24  ;;  %v2855_v10 = vmul.f32 %v6885_v32, %v6885_v32  ;;  %v6889_v60 = vpop.f32.mrb[107].mxu1  ;;  %3088 = vadd.xlane.f32.xlu0 %v2854_v1 }
 0x3b2   : > { %3540 = vst [vmem:[%s6729_s10 + $0xc0] sm:$0xff] %v3412_v56  ;;  %v3413_v58 = vmul.f32 %v4888_v0, %v6511_v20  ;;  %v2941_v9 = vpop.xlane.xlu0 %2940  ;;  %v2853_v1 = vmul.f32 %v6889_v60, %v6889_v60 }
 0x3b3   : > { %v4890_v35 = vpop.eup %4889  ;;  %4899 = vrsqrt.f32 %v3167_v31  ;;  %v3164_v6 = vmax.f32 %v2941_v9, 1e-24  ;;  %3090 = vadd.xlane.f32.xlu1 %v2855_v10 }
 0x3b4   : > { %3541 = vst [vmem:[%s6729_s10 + $0xc8] sm:$0xff] %v3413_v58  ;;  %v3418_v26 = vmul.f32 %v4890_v35, %v6519_v23  ;;  %v2943_v17 = vpop.xlane.xlu1 %2942 }
 0x3b5   : > { %v4892_v40 = vpop.eup %4891  ;;  %4901 = vrsqrt.f32 %v3164_v6  ;;  %v3165_v56 = vmax.f32 %v2943_v17, 1e-24  ;;  %3084 = vadd.xlane.f32.xlu0 %v2852_v30 }
 0x3b6   : > { %3546 = vst [vmem:[%s6729_s10 + $0xf0] sm:$0xff] %v3418_v26  ;;  %v3419_v20 = vmul.f32 %v4892_v40, %v6525_v16  ;;  %v6901_v0 = vpop.f32.mrb[108].mxu1  ;;  %v2953_v31 = vpop.xlane.xlu0 %2952 }
 0x3b7   : > { %v4894_v9 = vpop.eup %4893  ;;  %4903 = vrsqrt.f32 %v3165_v56  ;;  %v2858_v23 = vmul.f32 %v6901_v0, %v6901_v0  ;;  %v3170_v10 = vmax.f32 %v2953_v31, 1e-24  ;;  %3086 = vadd.xlane.f32.xlu1 %v2853_v1  ;;  %v6905_v58 = vpop.f32.mrb[109].mxu1 }
 0x3b8   : > { %3547 = vst [vmem:[%s6729_s10 + $0xf8] sm:$0xff] %v3419_v20  ;;  %v3416_v35 = vmul.f32 %v4894_v9, %v6521_v5  ;;  %v2955_v30 = vpop.xlane.xlu1 %2954  ;;  %v6909_v6 = vpop.f32.mrb[110].mxu1  ;;  %v2856_v5 = vmul.f32 %v6905_v58, %v6905_v58 }
 0x3b9   : > { %v4896_v16 = vpop.eup %4895  ;;  %4905 = vrsqrt.f32 %v3170_v10  ;;  %v3171_v26 = vmax.f32 %v2955_v30, 1e-24  ;;  %v2859_v17 = vmul.f32 %v6909_v6, %v6909_v6  ;;  %v6913_v40 = vpop.f32.mrb[111].mxu1  ;;  %3096 = vadd.xlane.f32.xlu0 %v2858_v23 }
 0x3ba   : > { %3544 = vst [vmem:[%s6729_s10 + $0xe0] sm:$0xff] %v3416_v35  ;;  %v3417_v1 = vmul.f32 %v4896_v16, %v6527_v8  ;;  %v2949_v56 = vpop.xlane.xlu0 %2948  ;;  %v2857_v23 = vmul.f32 %v6913_v40, %v6913_v40 }
 0x3bb   : > { %v4898_v20 = vpop.eup %4897  ;;  %4907 = vrsqrt.f32 %v3171_v26  ;;  %v3168_v31 = vmax.f32 %v2949_v56, 1e-24  ;;  %3098 = vadd.xlane.f32.xlu1 %v2859_v17 }
 0x3bc   : > { %3545 = vst [vmem:[%s6729_s10 + $0xe8] sm:$0xff] %v3417_v1  ;;  %v3422_v9 = vmul.f32 %v4898_v20, %v6535_v2  ;;  %v2951_v10 = vpop.xlane.xlu1 %2950 }
 0x3bd   : > { %v4900_v30 = vpop.eup %4899  ;;  %4909 = vrsqrt.f32 %v3168_v31  ;;  %v3169_v35 = vmax.f32 %v2951_v10, 1e-24  ;;  %3092 = vadd.xlane.f32.xlu0 %v2856_v5 }
 0x3be   : > { %3550 = vst [vmem:[%s6729_s10 + $0x110] sm:$0xff] %v3422_v9  ;;  %v3423_v8 = vmul.f32 %v4900_v30, %v6541_v42  ;;  %v6925_v16 = vpop.f32.mrb[112].mxu1  ;;  %v2961_v26 = vpop.xlane.xlu0 %2960 }
 0x3bf   : > { %v4902_v56 = vpop.eup %4901  ;;  %4911 = vrsqrt.f32 %v3169_v35  ;;  %v2862_v2 = vmul.f32 %v6925_v16, %v6925_v16  ;;  %v3174_v17 = vmax.f32 %v2961_v26, 1e-24  ;;  %3094 = vadd.xlane.f32.xlu1 %v2857_v23  ;;  %v6929_v1 = vpop.f32.mrb[113].mxu1 }
 0x3c0   : > { %3551 = vst [vmem:[%s6729_s10 + $0x118] sm:$0xff] %v3423_v8  ;;  %v3420_v20 = vmul.f32 %v4902_v56, %v6537_v45  ;;  %v2963_v5 = vpop.xlane.xlu1 %2962  ;;  %v6933_v31 = vpop.f32.mrb[114].mxu1  ;;  %v2860_v45 = vmul.f32 %v6929_v1, %v6929_v1 }
 0x3c1   : > { %v4904_v42 = vpop.eup %4903  ;;  %4913 = vrsqrt.f32 %v3174_v17  ;;  %v3175_v9 = vmax.f32 %v2963_v5, 1e-24  ;;  %v2863_v10 = vmul.f32 %v6933_v31, %v6933_v31  ;;  %v6937_v30 = vpop.f32.mrb[115].mxu1  ;;  %3104 = vadd.xlane.f32.xlu0 %v2862_v2 }
 0x3c2   : > { %3548 = vst [vmem:[%s6729_s10 + $0x100] sm:$0xff] %v3420_v20  ;;  %v3421_v23 = vmul.f32 %v4904_v42, %v6543_v43  ;;  %v2957_v35 = vpop.xlane.xlu0 %2956  ;;  %v2861_v2 = vmul.f32 %v6937_v30, %v6937_v30 }
 0x3c3   : > { %v4906_v8 = vpop.eup %4905  ;;  %4915 = vrsqrt.f32 %v3175_v9  ;;  %v3172_v26 = vmax.f32 %v2957_v35, 1e-24  ;;  %3106 = vadd.xlane.f32.xlu1 %v2863_v10 }
 0x3c4   : > { %3549 = vst [vmem:[%s6729_s10 + $0x108] sm:$0xff] %v3421_v23  ;;  %v3426_v56 = vmul.f32 %v4906_v8, %v6551_v15  ;;  %v2959_v17 = vpop.xlane.xlu1 %2958 }
 0x3c5   : > { %v4908_v5 = vpop.eup %4907  ;;  %4917 = vrsqrt.f32 %v3172_v26  ;;  %v3173_v20 = vmax.f32 %v2959_v17, 1e-24  ;;  %3100 = vadd.xlane.f32.xlu0 %v2860_v45 }
 0x3c6   : > { %3554 = vst [vmem:[%s6729_s10 + $0x130] sm:$0xff] %v3426_v56  ;;  %v3427_v43 = vmul.f32 %v4908_v5, %v6557_v41  ;;  %v6949_v42 = vpop.f32.mrb[116].mxu1  ;;  %v2969_v9 = vpop.xlane.xlu0 %2968 }
 0x3c7   : > { %v4910_v35 = vpop.eup %4909  ;;  %4919 = vrsqrt.f32 %v3173_v20  ;;  %v2866_v15 = vmul.f32 %v6949_v42, %v6949_v42  ;;  %v3178_v10 = vmax.f32 %v2969_v9, 1e-24  ;;  %3102 = vadd.xlane.f32.xlu1 %v2861_v2  ;;  %v6953_v23 = vpop.f32.mrb[117].mxu1 }
 0x3c8   : > { %3555 = vst [vmem:[%s6729_s10 + $0x138] sm:$0xff] %v3427_v43  ;;  %v3424_v8 = vmul.f32 %v4910_v35, %v6555_v57  ;;  %v2971_v45 = vpop.xlane.xlu1 %2970  ;;  %v6957_v26 = vpop.f32.mrb[118].mxu1  ;;  %v2864_v57 = vmul.f32 %v6953_v23, %v6953_v23 }
 0x3c9   : > { %v4912_v41 = vpop.eup %4911  ;;  %4921 = vrsqrt.f32 %v3178_v10  ;;  %v3179_v56 = vmax.f32 %v2971_v45, 1e-24  ;;  %v2867_v17 = vmul.f32 %v6957_v26, %v6957_v26  ;;  %v6961_v5 = vpop.f32.mrb[119].mxu1  ;;  %3112 = vadd.xlane.f32.xlu0 %v2866_v15 }
 0x3ca   : > { %3552 = vst [vmem:[%s6729_s10 + $0x120] sm:$0xff] %v3424_v8  ;;  %v3425_v2 = vmul.f32 %v4912_v41, %v6561_v24  ;;  %v2965_v20 = vpop.xlane.xlu0 %2964  ;;  %v2865_v15 = vmul.f32 %v6961_v5, %v6961_v5 }
 0x3cb   : > { %v4914_v43 = vpop.eup %4913  ;;  %4923 = vrsqrt.f32 %v3179_v56  ;;  %v3176_v9 = vmax.f32 %v2965_v20, 1e-24  ;;  %3114 = vadd.xlane.f32.xlu1 %v2867_v17 }
 0x3cc   : > { %3553 = vst [vmem:[%s6729_s10 + $0x128] sm:$0xff] %v3425_v2  ;;  %v3430_v35 = vmul.f32 %v4914_v43, %v6567_v55  ;;  %v2967_v10 = vpop.xlane.xlu1 %2966 }
 0x3cd   : > { %v4916_v45 = vpop.eup %4915  ;;  %4925 = vrsqrt.f32 %v3176_v9  ;;  %v3177_v8 = vmax.f32 %v2967_v10, 1e-24  ;;  %3108 = vadd.xlane.f32.xlu0 %v2864_v57 }
 0x3ce   : > { %3558 = vst [vmem:[%s6729_s10 + $0x150] sm:$0xff] %v3430_v35  ;;  %v3431_v24 = vmul.f32 %v4916_v45, %v6573_v13  ;;  %v6973_v41 = vpop.f32.mrb[120].mxu1  ;;  %v2977_v56 = vpop.xlane.xlu0 %2976 }
 0x3cf   : > { %v4918_v20 = vpop.eup %4917  ;;  %4927 = vrsqrt.f32 %v3177_v8  ;;  %v2870_v55 = vmul.f32 %v6973_v41, %v6973_v41  ;;  %v3182_v17 = vmax.f32 %v2977_v56, 1e-24  ;;  %3110 = vadd.xlane.f32.xlu1 %v2865_v15  ;;  %v6977_v2 = vpop.f32.mrb[121].mxu1 }
 0x3d0   : > { %3559 = vst [vmem:[%s6729_s10 + $0x158] sm:$0xff] %v3431_v24  ;;  %v3428_v43 = vmul.f32 %v4918_v20, %v6571_v51  ;;  %v2979_v57 = vpop.xlane.xlu1 %2978  ;;  %v6981_v9 = vpop.f32.mrb[122].mxu1  ;;  %v2868_v51 = vmul.f32 %v6977_v2, %v6977_v2 }
 0x3d1   : > { %v4920_v13 = vpop.eup %4919  ;;  %4929 = vrsqrt.f32 %v3182_v17  ;;  %v3183_v35 = vmax.f32 %v2979_v57, 1e-24  ;;  %v2871_v10 = vmul.f32 %v6981_v9, %v6981_v9  ;;  %v6985_v45 = vpop.f32.mrb[123].mxu1  ;;  %3120 = vadd.xlane.f32.xlu0 %v2870_v55 }
 0x3d2   : > { %3556 = vst [vmem:[%s6729_s10 + $0x140] sm:$0xff] %v3428_v43  ;;  %v3429_v15 = vmul.f32 %v4920_v13, %v6577_v37  ;;  %v2973_v8 = vpop.xlane.xlu0 %2972  ;;  %v2869_v55 = vmul.f32 %v6985_v45, %v6985_v45 }
 0x3d3   : > { %v4922_v24 = vpop.eup %4921  ;;  %4931 = vrsqrt.f32 %v3183_v35  ;;  %v3180_v56 = vmax.f32 %v2973_v8, 1e-24  ;;  %3122 = vadd.xlane.f32.xlu1 %v2871_v10 }
 0x3d4   : > { %3557 = vst [vmem:[%s6729_s10 + $0x148] sm:$0xff] %v3429_v15  ;;  %v3434_v20 = vmul.f32 %v4922_v24, %v6583_v47  ;;  %v2975_v17 = vpop.xlane.xlu1 %2974 }
 0x3d5   : > { %v4924_v57 = vpop.eup %4923  ;;  %4933 = vrsqrt.f32 %v3180_v56  ;;  %v3181_v43 = vmax.f32 %v2975_v17, 1e-24  ;;  %3116 = vadd.xlane.f32.xlu0 %v2868_v51 }
 0x3d6   : > { %3562 = vst [vmem:[%s6729_s10 + $0x170] sm:$0xff] %v3434_v20  ;;  %v3435_v37 = vmul.f32 %v4924_v57, %v6589_v7  ;;  %v6997_v13 = vpop.f32.mrb[124].mxu1  ;;  %v2985_v35 = vpop.xlane.xlu0 %2984 }
 0x3d7   : > { %v4926_v10 = vpop.eup %4925  ;;  %4935 = vrsqrt.f32 %v3181_v43  ;;  %v3186_v15 = vmax.f32 %v2985_v35, 1e-24  ;;  %3118 = vadd.xlane.f32.xlu1 %v2869_v55  ;;  %v6999_v47 = vpop.f32.mrb[125].mxu1 }
 0x3d8   : > { %3563 = vst [vmem:[%s6729_s10 + $0x178] sm:$0xff] %v3435_v37  ;;  %v3432_v8 = vmul.f32 %v4926_v10, %v6587_v38  ;;  %v2872_v24 = vmul.f32 %v6999_v47, %v6999_v47  ;;  %v2987_v51 = vpop.xlane.xlu1 %2986  ;;  %v7005_v56 = vpop.f32.mrb[126].mxu1  ;;  %v2874_v10 = vmul.f32 %v6997_v13, %v6997_v13 }
 0x3d9   : > { %7461 = vst [vmem:[#allocation34_spill] sm:$0xff] %v7005_v56  ;;  %v4928_v7 = vpop.eup %4927  ;;  %4937 = vrsqrt.f32 %v3186_v15  ;;  %v3187_v20 = vmax.f32 %v2987_v51, 1e-24  ;;  %v7007_v17 = vpop.f32.mrb[127].mxu1  ;;  %v7462_v51 = vld [vmem:[#allocation39_spill] sm:$0xff] }
 0x3da   : > { %3560 = vst [vmem:[%s6729_s10 + $0x160] sm:$0xff] %v3432_v8  ;;  %v3433_v57 = vmul.f32 %v4928_v7, %v6593_v61  ;;  %v2873_v55 = vmul.f32 %v7007_v17, %v7007_v17  ;;  %3124 = vadd.xlane.f32.xlu0 %v2872_v24  ;;  %v2981_v38 = vpop.xlane.xlu0 %2980  ;;  %v2875_v7 = vmul.f32 %v7005_v56, %v7005_v56 }
 0x3db   : > { %v4930_v43 = vpop.eup %4929  ;;  %4939 = vrsqrt.f32 %v3187_v20  ;;  %v3184_v37 = vmax.f32 %v2981_v38, 1e-24  ;;  %v7463_v38 = vld [vmem:[#allocation36_spill] sm:$0xff] }
 0x3dc   : > { %3561 = vst [vmem:[%s6729_s10 + $0x168] sm:$0xff] %v3433_v57  ;;  %v3438_v35 = vmul.f32 %v4930_v43, %v6599_v27  ;;  %v2983_v15 = vpop.xlane.xlu1 %2982  ;;  %3126 = vadd.xlane.f32.xlu1 %v2873_v55 }
 0x3dd   : > { %v4932_v8 = vpop.eup %4931  ;;  %4941 = vrsqrt.f32 %v3184_v37  ;;  %v3185_v61 = vmax.f32 %v2983_v15, 1e-24  ;;  %v7464_v15 = vld [vmem:[#allocation42_spill] sm:$0xff] }
 0x3de   : > { %3566 = vst [vmem:[%s6729_s10 + $0x190] sm:$0xff] %v3438_v35  ;;  %v3439_v24 = vmul.f32 %v4932_v8, %v7462_v51  ;;  %3128 = vadd.xlane.f32.xlu0 %v2874_v10  ;;  %v2993_v20 = vpop.xlane.xlu0 %2992 }
 0x3df   : > { %v4934_v57 = vpop.eup %4933  ;;  %4943 = vrsqrt.f32 %v3185_v61  ;;  %v3190_v27 = vmax.f32 %v2993_v20, 1e-24  ;;  %v7465_v61 = vld [vmem:[#allocation44_spill] sm:$0xff] }
 0x3e0   : > { %3567 = vst [vmem:[%s6729_s10 + $0x198] sm:$0xff] %v3439_v24  ;;  %v3436_v43 = vmul.f32 %v4934_v57, %v7463_v38  ;;  %v2995_v55 = vpop.xlane.xlu1 %2994  ;;  %3130 = vadd.xlane.f32.xlu1 %v2875_v7  ;;  %v7466_v38 = vld [vmem:[#allocation43_spill] sm:$0xff] }
 0x3e1   : > { %v4936_v37 = vpop.eup %4935  ;;  %4945 = vrsqrt.f32 %v3190_v27  ;;  %v3191_v35 = vmax.f32 %v2995_v55, 1e-24 }
 0x3e2   : > { %3564 = vst [vmem:[%s6729_s10 + $0x180] sm:$0xff] %v3436_v43  ;;  %v3437_v8 = vmul.f32 %v4936_v37, %v7464_v15  ;;  %v2989_v51 = vpop.xlane.xlu0 %2988  ;;  %v7467_v15 = vld [vmem:[#allocation41_spill] sm:$0xff] }
 0x3e3   : > { %v4938_v10 = vpop.eup %4937  ;;  %4947 = vrsqrt.f32 %v3191_v35  ;;  %v3188_v56 = vmax.f32 %v2989_v51, 1e-24 }
 0x3e4   : > { %3565 = vst [vmem:[%s6729_s10 + $0x188] sm:$0xff] %v3437_v8  ;;  %v3442_v20 = vmul.f32 %v4938_v10, %v7465_v61  ;;  %v2991_v24 = vpop.xlane.xlu1 %2990  ;;  %v7468_v61 = vld [vmem:[#allocation46_spill] sm:$0xff] }
 0x3e5   : > { %v4940_v57 = vpop.eup %4939  ;;  %4949 = vrsqrt.f32 %v3188_v56  ;;  %v3189_v7 = vmax.f32 %v2991_v24, 1e-24 }
 0x3e6   : > { %3570 = vst [vmem:[%s6729_s10 + $0x1b0] sm:$0xff] %v3442_v20  ;;  %v3443_v27 = vmul.f32 %v4940_v57, %v7466_v38  ;;  %v3001_v55 = vpop.xlane.xlu0 %3000  ;;  %v7469_v38 = vld [vmem:[#allocation49_spill] sm:$0xff] }
 0x3e7   : > { %v4942_v43 = vpop.eup %4941  ;;  %4951 = vrsqrt.f32 %v3189_v7  ;;  %v3194_v37 = vmax.f32 %v3001_v55, 1e-24 }
 0x3e8   : > { %3571 = vst [vmem:[%s6729_s10 + $0x1b8] sm:$0xff] %v3443_v27  ;;  %v3440_v35 = vmul.f32 %v4942_v43, %v7467_v15  ;;  %v3003_v51 = vpop.xlane.xlu1 %3002  ;;  %v7470_v15 = vld [vmem:[#allocation48_spill] sm:$0xff] }
 0x3e9   : > { %v4944_v8 = vpop.eup %4943  ;;  %4953 = vrsqrt.f32 %v3194_v37  ;;  %v3195_v10 = vmax.f32 %v3003_v51, 1e-24 }
 0x3ea   : > { %3568 = vst [vmem:[%s6729_s10 + $0x1a0] sm:$0xff] %v3440_v35  ;;  %v3441_v56 = vmul.f32 %v4944_v8, %v7468_v61  ;;  %v2997_v24 = vpop.xlane.xlu0 %2996  ;;  %v7471_v61 = vld [vmem:[#allocation45_spill] sm:$0xff] }
 0x3eb   : > { %v4946_v20 = vpop.eup %4945  ;;  %4955 = vrsqrt.f32 %v3195_v10  ;;  %v3192_v57 = vmax.f32 %v2997_v24, 1e-24 }
 0x3ec   : > { %3569 = vst [vmem:[%s6729_s10 + $0x1a8] sm:$0xff] %v3441_v56  ;;  %v3446_v7 = vmul.f32 %v4946_v20, %v7469_v38  ;;  %v2999_v55 = vpop.xlane.xlu1 %2998  ;;  %v7472_v38 = vld [vmem:[#allocation50_spill] sm:$0xff] }
 0x3ed   : > { %v4948_v27 = vpop.eup %4947  ;;  %4957 = vrsqrt.f32 %v3192_v57  ;;  %v3193_v43 = vmax.f32 %v2999_v55, 1e-24 }
 0x3ee   : > { %3574 = vst [vmem:[%s6729_s10 + $0x1d0] sm:$0xff] %v3446_v7  ;;  %v3447_v37 = vmul.f32 %v4948_v27, %v7470_v15  ;;  %v3009_v51 = vpop.xlane.xlu0 %3008  ;;  %v7473_v15 = vld [vmem:[#allocation47_spill] sm:$0xff] }
 0x3ef   : > { %v4950_v35 = vpop.eup %4949  ;;  %4959 = vrsqrt.f32 %v3193_v43  ;;  %v3198_v8 = vmax.f32 %v3009_v51, 1e-24 }
 0x3f0   : > { %3575 = vst [vmem:[%s6729_s10 + $0x1d8] sm:$0xff] %v3447_v37  ;;  %v3444_v10 = vmul.f32 %v4950_v35, %v7471_v61  ;;  %v3011_v24 = vpop.xlane.xlu1 %3010  ;;  %v7474_v61 = vld [vmem:[#allocation52_spill] sm:$0xff] }
 0x3f1   : > { %v4952_v56 = vpop.eup %4951  ;;  %4961 = vrsqrt.f32 %v3198_v8  ;;  %v3199_v20 = vmax.f32 %v3011_v24, 1e-24 }
 0x3f2   : > { %3572 = vst [vmem:[%s6729_s10 + $0x1c0] sm:$0xff] %v3444_v10  ;;  %v3445_v57 = vmul.f32 %v4952_v56, %v7472_v38  ;;  %v3005_v55 = vpop.xlane.xlu0 %3004  ;;  %v7475_v38 = vld [vmem:[#allocation51_spill] sm:$0xff] }
 0x3f3   : > { %v4954_v7 = vpop.eup %4953  ;;  %4963 = vrsqrt.f32 %v3199_v20  ;;  %v3196_v27 = vmax.f32 %v3005_v55, 1e-24 }
 0x3f4   : > { %3573 = vst [vmem:[%s6729_s10 + $0x1c8] sm:$0xff] %v3445_v57  ;;  %v3450_v43 = vmul.f32 %v4954_v7, %v7473_v15  ;;  %v3007_v51 = vpop.xlane.xlu1 %3006  ;;  %v7476_v15 = vld [vmem:[#allocation53_spill] sm:$0xff] }
 0x3f5   : > { %v4956_v37 = vpop.eup %4955  ;;  %4965 = vrsqrt.f32 %v3196_v27  ;;  %v3197_v35 = vmax.f32 %v3007_v51, 1e-24 }
 0x3f6   : > { %3578 = vst [vmem:[%s6729_s10 + $0x1f0] sm:$0xff] %v3450_v43  ;;  %v3451_v8 = vmul.f32 %v4956_v37, %v7474_v61  ;;  %v3017_v24 = vpop.xlane.xlu0 %3016  ;;  %v7477_v61 = vld [vmem:[#allocation54_spill] sm:$0xff] }
 0x3f7   : > { %v4958_v10 = vpop.eup %4957  ;;  %4967 = vrsqrt.f32 %v3197_v35  ;;  %v3202_v56 = vmax.f32 %v3017_v24, 1e-24 }
 0x3f8   : > { %3579 = vst [vmem:[%s6729_s10 + $0x1f8] sm:$0xff] %v3451_v8  ;;  %v3448_v20 = vmul.f32 %v4958_v10, %v7475_v38  ;;  %v3019_v55 = vpop.xlane.xlu1 %3018  ;;  %v7478_v38 = vld [vmem:[#allocation56_spill] sm:$0xff] }
 0x3f9   : > { %v4960_v57 = vpop.eup %4959  ;;  %4969 = vrsqrt.f32 %v3202_v56  ;;  %v3203_v7 = vmax.f32 %v3019_v55, 1e-24 }
 0x3fa   : > { %3576 = vst [vmem:[%s6729_s10 + $0x1e0] sm:$0xff] %v3448_v20  ;;  %v3449_v27 = vmul.f32 %v4960_v57, %v7476_v15  ;;  %v3013_v51 = vpop.xlane.xlu0 %3012  ;;  %v7479_v15 = vld [vmem:[#allocation55_spill] sm:$0xff] }
 0x3fb   : > { %v4962_v43 = vpop.eup %4961  ;;  %4971 = vrsqrt.f32 %v3203_v7  ;;  %v3200_v37 = vmax.f32 %v3013_v51, 1e-24 }
 0x3fc   : > { %3577 = vst [vmem:[%s6729_s10 + $0x1e8] sm:$0xff] %v3449_v27  ;;  %v3454_v35 = vmul.f32 %v4962_v43, %v7477_v61  ;;  %v3015_v24 = vpop.xlane.xlu1 %3014  ;;  %v7480_v61 = vld [vmem:[#allocation21_spill] sm:$0xff] }
 0x3fd   : > { %v4964_v8 = vpop.eup %4963  ;;  %4973 = vrsqrt.f32 %v3200_v37  ;;  %v3201_v10 = vmax.f32 %v3015_v24, 1e-24 }
 0x3fe   : > { %3582 = vst [vmem:[%s6729_s10 + $0x210] sm:$0xff] %v3454_v35  ;;  %v3455_v56 = vmul.f32 %v4964_v8, %v7478_v38  ;;  %v3025_v55 = vpop.xlane.xlu0 %3024  ;;  %v7481_v38 = vld [vmem:[#allocation24_spill] sm:$0xff] }
 0x3ff   : > { %v4966_v20 = vpop.eup %4965  ;;  %4975 = vrsqrt.f32 %v3201_v10  ;;  %v3206_v57 = vmax.f32 %v3025_v55, 1e-24 }
 0x400   : > { %3583 = vst [vmem:[%s6729_s10 + $0x218] sm:$0xff] %v3455_v56  ;;  %v3452_v7 = vmul.f32 %v4966_v20, %v7479_v15  ;;  %v3027_v51 = vpop.xlane.xlu1 %3026  ;;  %v7482_v15 = vld [vmem:[#allocation23_spill] sm:$0xff] }
 0x401   : > { %v4968_v27 = vpop.eup %4967  ;;  %4977 = vrsqrt.f32 %v3206_v57  ;;  %v3207_v43 = vmax.f32 %v3027_v51, 1e-24 }
 0x402   : > { %3580 = vst [vmem:[%s6729_s10 + $0x200] sm:$0xff] %v3452_v7  ;;  %v3453_v37 = vmul.f32 %v4968_v27, %v7480_v61  ;;  %v3021_v24 = vpop.xlane.xlu0 %3020  ;;  %v7483_v61 = vld [vmem:[#allocation22_spill] sm:$0xff] }
 0x403   : > { %v4970_v35 = vpop.eup %4969  ;;  %4979 = vrsqrt.f32 %v3207_v43  ;;  %v3204_v8 = vmax.f32 %v3021_v24, 1e-24 }
 0x404   : > { %3581 = vst [vmem:[%s6729_s10 + $0x208] sm:$0xff] %v3453_v37  ;;  %v3458_v10 = vmul.f32 %v4970_v35, %v7481_v38  ;;  %v3023_v55 = vpop.xlane.xlu1 %3022  ;;  %v7484_v38 = vld [vmem:[#allocation26_spill] sm:$0xff] }
 0x405   : > { %v4972_v56 = vpop.eup %4971  ;;  %4981 = vrsqrt.f32 %v3204_v8  ;;  %v3205_v20 = vmax.f32 %v3023_v55, 1e-24 }
 0x406   : > { %3586 = vst [vmem:[%s6729_s10 + $0x230] sm:$0xff] %v3458_v10  ;;  %v3459_v57 = vmul.f32 %v4972_v56, %v7482_v15  ;;  %v3033_v51 = vpop.xlane.xlu0 %3032  ;;  %v7485_v15 = vld [vmem:[#allocation29_spill] sm:$0xff] }
 0x407   : > { %v4974_v7 = vpop.eup %4973  ;;  %4983 = vrsqrt.f32 %v3205_v20  ;;  %v3210_v27 = vmax.f32 %v3033_v51, 1e-24 }
 0x408   : > { %3587 = vst [vmem:[%s6729_s10 + $0x238] sm:$0xff] %v3459_v57  ;;  %v3456_v43 = vmul.f32 %v4974_v7, %v7483_v61  ;;  %v3035_v24 = vpop.xlane.xlu1 %3034  ;;  %v7486_v61 = vld [vmem:[#allocation28_spill] sm:$0xff] }
 0x409   : > { %v4976_v37 = vpop.eup %4975  ;;  %4985 = vrsqrt.f32 %v3210_v27  ;;  %v3211_v35 = vmax.f32 %v3035_v24, 1e-24 }
 0x40a   : > { %3584 = vst [vmem:[%s6729_s10 + $0x220] sm:$0xff] %v3456_v43  ;;  %v3457_v8 = vmul.f32 %v4976_v37, %v7484_v38  ;;  %v3029_v55 = vpop.xlane.xlu0 %3028  ;;  %v7487_v38 = vld [vmem:[#allocation25_spill] sm:$0xff] }
 0x40b   : > { %v4978_v10 = vpop.eup %4977  ;;  %4987 = vrsqrt.f32 %v3211_v35  ;;  %v3208_v56 = vmax.f32 %v3029_v55, 1e-24 }
 0x40c   : > { %3585 = vst [vmem:[%s6729_s10 + $0x228] sm:$0xff] %v3457_v8  ;;  %v3462_v20 = vmul.f32 %v4978_v10, %v7485_v15  ;;  %v3031_v51 = vpop.xlane.xlu1 %3030  ;;  %v7488_v15 = vld [vmem:[#allocation30_spill] sm:$0xff] }
 0x40d   : > { %v4980_v57 = vpop.eup %4979  ;;  %4989 = vrsqrt.f32 %v3208_v56  ;;  %v3209_v7 = vmax.f32 %v3031_v51, 1e-24 }
 0x40e   : > { %3590 = vst [vmem:[%s6729_s10 + $0x250] sm:$0xff] %v3462_v20  ;;  %v3463_v27 = vmul.f32 %v4980_v57, %v7486_v61  ;;  %v3041_v24 = vpop.xlane.xlu0 %3040  ;;  %v7489_v61 = vld [vmem:[#allocation33_spill] sm:$0xff] }
 0x40f   : > { %v4982_v43 = vpop.eup %4981  ;;  %4991 = vrsqrt.f32 %v3209_v7  ;;  %v3214_v37 = vmax.f32 %v3041_v24, 1e-24 }
 0x410   : > { %3591 = vst [vmem:[%s6729_s10 + $0x258] sm:$0xff] %v3463_v27  ;;  %v3460_v35 = vmul.f32 %v4982_v43, %v7487_v38  ;;  %v3043_v55 = vpop.xlane.xlu1 %3042 }
 0x411   : > { %v4984_v8 = vpop.eup %4983  ;;  %4993 = vrsqrt.f32 %v3214_v37  ;;  %v3215_v10 = vmax.f32 %v3043_v55, 1e-24 }
 0x412   : > { %3588 = vst [vmem:[%s6729_s10 + $0x240] sm:$0xff] %v3460_v35  ;;  %v3461_v56 = vmul.f32 %v4984_v8, %v7488_v15  ;;  %v3037_v51 = vpop.xlane.xlu0 %3036 }
 0x413   : > { %v4986_v20 = vpop.eup %4985  ;;  %4995 = vrsqrt.f32 %v3215_v10  ;;  %v3212_v57 = vmax.f32 %v3037_v51, 1e-24  ;;  %v7490_v51 = vld [vmem:[#allocation27_spill] sm:$0xff] }
 0x414   : > { %3589 = vst [vmem:[%s6729_s10 + $0x248] sm:$0xff] %v3461_v56  ;;  %v3466_v7 = vmul.f32 %v4986_v20, %v7489_v61  ;;  %v3039_v24 = vpop.xlane.xlu1 %3038 }
 0x415   : > { %v4988_v27 = vpop.eup %4987  ;;  %4997 = vrsqrt.f32 %v3212_v57  ;;  %v3213_v43 = vmax.f32 %v3039_v24, 1e-24 }
 0x416   : > { %3594 = vst [vmem:[%s6729_s10 + $0x270] sm:$0xff] %v3466_v7  ;;  %v3467_v37 = vmul.f32 %v4988_v27, %v6718_v54  ;;  %v3049_v38 = vpop.xlane.xlu0 %3048 }
 0x417   : > { %v4990_v35 = vpop.eup %4989  ;;  %4999 = vrsqrt.f32 %v3213_v43  ;;  %v3218_v55 = vmax.f32 %v3049_v38, 1e-24  ;;  %v7491_v43 = vld [vmem:[#allocation32_spill] sm:$0xff] }
 0x418   : > { %3595 = vst [vmem:[%s6729_s10 + $0x278] sm:$0xff] %v3467_v37  ;;  %v3464_v8 = vmul.f32 %v4990_v35, %v6715_v48  ;;  %v3051_v10 = vpop.xlane.xlu1 %3050 }
 0x419   : > { %v4992_v15 = vpop.eup %4991  ;;  %5001 = vrsqrt.f32 %v3218_v55  ;;  %v3219_v56 = vmax.f32 %v3051_v10, 1e-24 }
 0x41a   : > { %3592 = vst [vmem:[%s6729_s10 + $0x260] sm:$0xff] %v3464_v8  ;;  %v3465_v20 = vmul.f32 %v4992_v15, %v7490_v51  ;;  %v3045_v57 = vpop.xlane.xlu0 %3044 }
 0x41b   : > { %v4994_v61 = vpop.eup %4993  ;;  %5003 = vrsqrt.f32 %v3219_v56  ;;  %v3216_v54 = vmax.f32 %v3045_v57, 1e-24 }
 0x41c   : > { %3593 = vst [vmem:[%s6729_s10 + $0x268] sm:$0xff] %v3465_v20  ;;  %v3470_v7 = vmul.f32 %v4994_v61, %v6733_v3  ;;  %v3047_v24 = vpop.xlane.xlu1 %3046 }
 0x41d   : > { %v4996_v27 = vpop.eup %4995  ;;  %5005 = vrsqrt.f32 %v3216_v54  ;;  %v3217_v48 = vmax.f32 %v3047_v24, 1e-24 }
 0x41e   : > { %3598 = vst [vmem:[%s6729_s10 + $0x290] sm:$0xff] %v3470_v7  ;;  %v3471_v37 = vmul.f32 %v4996_v27, %v7491_v43  ;;  %v3057_v38 = vpop.xlane.xlu0 %3056 }
 0x41f   : > { %v4998_v35 = vpop.eup %4997  ;;  %5007 = vrsqrt.f32 %v3217_v48  ;;  %v3222_v55 = vmax.f32 %v3057_v38, 1e-24 }
 0x420   : > { %3599 = vst [vmem:[%s6729_s10 + $0x298] sm:$0xff] %v3471_v37  ;;  %v3468_v8 = vmul.f32 %v4998_v35, %v6737_v12  ;;  %v3059_v10 = vpop.xlane.xlu1 %3058 }
 0x421   : > { %v5000_v15 = vpop.eup %4999  ;;  %5009 = vrsqrt.f32 %v3222_v55  ;;  %v3223_v3 = vmax.f32 %v3059_v10, 1e-24 }
 0x422   : > { %3596 = vst [vmem:[%s6729_s10 + $0x280] sm:$0xff] %v3468_v8  ;;  %v3469_v56 = vmul.f32 %v5000_v15, %v6745_v14  ;;  %v3053_v51 = vpop.xlane.xlu0 %3052 }
 0x423   : > { %v5002_v20 = vpop.eup %5001  ;;  %5011 = vrsqrt.f32 %v3223_v3  ;;  %v3220_v57 = vmax.f32 %v3053_v51, 1e-24 }
 0x424   : > { %3597 = vst [vmem:[%s6729_s10 + $0x288] sm:$0xff] %v3469_v56  ;;  %v3474_v61 = vmul.f32 %v5002_v20, %v6757_v62  ;;  %v3055_v54 = vpop.xlane.xlu1 %3054 }
 0x425   : > { %v5004_v7 = vpop.eup %5003  ;;  %5013 = vrsqrt.f32 %v3220_v57  ;;  %v3221_v12 = vmax.f32 %v3055_v54, 1e-24 }
 0x426   : > { %3602 = vst [vmem:[%s6729_s10 + $0x2b0] sm:$0xff] %v3474_v61  ;;  %v3475_v24 = vmul.f32 %v5004_v7, %v6765_v36  ;;  %v3065_v27 = vpop.xlane.xlu0 %3064 }
 0x427   : > { %v5006_v48 = vpop.eup %5005  ;;  %5015 = vrsqrt.f32 %v3221_v12  ;;  %v3226_v14 = vmax.f32 %v3065_v27, 1e-24 }
 0x428   : > { %3603 = vst [vmem:[%s6729_s10 + $0x2b8] sm:$0xff] %v3475_v24  ;;  %v3472_v43 = vmul.f32 %v5006_v48, %v6761_v52  ;;  %v3067_v37 = vpop.xlane.xlu1 %3066 }
 0x429   : > { %v5008_v38 = vpop.eup %5007  ;;  %5017 = vrsqrt.f32 %v3226_v14  ;;  %v3227_v62 = vmax.f32 %v3067_v37, 1e-24 }
 0x42a   : > { %3600 = vst [vmem:[%s6729_s10 + $0x2a0] sm:$0xff] %v3472_v43  ;;  %v3473_v35 = vmul.f32 %v5008_v38, %v6769_v19  ;;  %v3061_v55 = vpop.xlane.xlu0 %3060 }
 0x42b   : > { %v5010_v8 = vpop.eup %5009  ;;  %5019 = vrsqrt.f32 %v3227_v62  ;;  %v3224_v36 = vmax.f32 %v3061_v55, 1e-24 }
 0x42c   : > { %3601 = vst [vmem:[%s6729_s10 + $0x2a8] sm:$0xff] %v3473_v35  ;;  %v3478_v10 = vmul.f32 %v5010_v8, %v6781_v4  ;;  %v3063_v15 = vpop.xlane.xlu1 %3062 }
 0x42d   : > { %v5012_v3 = vpop.eup %5011  ;;  %5021 = vrsqrt.f32 %v3224_v36  ;;  %v3225_v52 = vmax.f32 %v3063_v15, 1e-24 }
 0x42e   : > { %3606 = vst [vmem:[%s6729_s10 + $0x2d0] sm:$0xff] %v3478_v10  ;;  %v3479_v56 = vmul.f32 %v5012_v3, %v6789_v18  ;;  %v3073_v51 = vpop.xlane.xlu0 %3072 }
 0x42f   : > { %v5014_v20 = vpop.eup %5013  ;;  %5023 = vrsqrt.f32 %v3225_v52  ;;  %v3230_v19 = vmax.f32 %v3073_v51, 1e-24 }
 0x430   : > { %3607 = vst [vmem:[%s6729_s10 + $0x2d8] sm:$0xff] %v3479_v56  ;;  %v3476_v57 = vmul.f32 %v5014_v20, %v6785_v34  ;;  %v3075_v61 = vpop.xlane.xlu1 %3074 }
 0x431   : > { %v5016_v54 = vpop.eup %5015  ;;  %5025 = vrsqrt.f32 %v3230_v19  ;;  %v3231_v4 = vmax.f32 %v3075_v61, 1e-24 }
 0x432   : > { %3604 = vst [vmem:[%s6729_s10 + $0x2c0] sm:$0xff] %v3476_v57  ;;  %v3477_v7 = vmul.f32 %v5016_v54, %v6793_v11  ;;  %v3069_v12 = vpop.xlane.xlu0 %3068 }
 0x433   : > { %v5018_v24 = vpop.eup %5017  ;;  %5027 = vrsqrt.f32 %v3231_v4  ;;  %v3228_v18 = vmax.f32 %v3069_v12, 1e-24 }
 0x434   : > { %3605 = vst [vmem:[%s6729_s10 + $0x2c8] sm:$0xff] %v3477_v7  ;;  %v3482_v27 = vmul.f32 %v5018_v24, %v6805_v33  ;;  %v3071_v48 = vpop.xlane.xlu1 %3070 }
 0x435   : > { %v5020_v14 = vpop.eup %5019  ;;  %5029 = vrsqrt.f32 %v3228_v18  ;;  %v3229_v34 = vmax.f32 %v3071_v48, 1e-24 }
 0x436   : > { %3610 = vst [vmem:[%s6729_s10 + $0x2f0] sm:$0xff] %v3482_v27  ;;  %v3483_v43 = vmul.f32 %v5020_v14, %v6813_v21  ;;  %v3081_v37 = vpop.xlane.xlu0 %3080 }
 0x437   : > { %v5022_v38 = vpop.eup %5021  ;;  %5031 = vrsqrt.f32 %v3229_v34  ;;  %v3234_v11 = vmax.f32 %v3081_v37, 1e-24 }
 0x438   : > { %3611 = vst [vmem:[%s6729_s10 + $0x2f8] sm:$0xff] %v3483_v43  ;;  %v3480_v62 = vmul.f32 %v5022_v38, %v6809_v22  ;;  %v3083_v35 = vpop.xlane.xlu1 %3082 }
 0x439   : > { %v5024_v55 = vpop.eup %5023  ;;  %5033 = vrsqrt.f32 %v3234_v11  ;;  %v3235_v33 = vmax.f32 %v3083_v35, 1e-24 }
 0x43a   : > { %3608 = vst [vmem:[%s6729_s10 + $0x2e0] sm:$0xff] %v3480_v62  ;;  %v3481_v8 = vmul.f32 %v5024_v55, %v6817_v46  ;;  %v3077_v36 = vpop.xlane.xlu0 %3076 }
 0x43b   : > { %v5026_v10 = vpop.eup %5025  ;;  %5035 = vrsqrt.f32 %v3235_v33  ;;  %v3232_v21 = vmax.f32 %v3077_v36, 1e-24 }
 0x43c   : > { %3609 = vst [vmem:[%s6729_s10 + $0x2e8] sm:$0xff] %v3481_v8  ;;  %v3486_v15 = vmul.f32 %v5026_v10, %v6829_v39  ;;  %v3079_v3 = vpop.xlane.xlu1 %3078 }
 0x43d   : > { %v5028_v52 = vpop.eup %5027  ;;  %5037 = vrsqrt.f32 %v3232_v21  ;;  %v3233_v22 = vmax.f32 %v3079_v3, 1e-24 }
 0x43e   : > { %3614 = vst [vmem:[%s6729_s10 + $0x310] sm:$0xff] %v3486_v15  ;;  %v3487_v56 = vmul.f32 %v5028_v52, %v6837_v50  ;;  %v3089_v51 = vpop.xlane.xlu0 %3088 }
 0x43f   : > { %v5030_v20 = vpop.eup %5029  ;;  %5039 = vrsqrt.f32 %v3233_v22  ;;  %v3238_v46 = vmax.f32 %v3089_v51, 1e-24 }
 0x440   : > { %3615 = vst [vmem:[%s6729_s10 + $0x318] sm:$0xff] %v3487_v56  ;;  %v3484_v19 = vmul.f32 %v5030_v20, %v6833_v28  ;;  %v3091_v57 = vpop.xlane.xlu1 %3090 }
 0x441   : > { %v5032_v61 = vpop.eup %5031  ;;  %5041 = vrsqrt.f32 %v3238_v46  ;;  %v3239_v39 = vmax.f32 %v3091_v57, 1e-24 }
 0x442   : > { %3612 = vst [vmem:[%s6729_s10 + $0x300] sm:$0xff] %v3484_v19  ;;  %v3485_v54 = vmul.f32 %v5032_v61, %v6841_v49  ;;  %v3085_v4 = vpop.xlane.xlu0 %3084 }
 0x443   : > { %v5034_v7 = vpop.eup %5033  ;;  %5043 = vrsqrt.f32 %v3239_v39  ;;  %v3236_v50 = vmax.f32 %v3085_v4, 1e-24 }
 0x444   : > { %3613 = vst [vmem:[%s6729_s10 + $0x308] sm:$0xff] %v3485_v54  ;;  %v3490_v12 = vmul.f32 %v5034_v7, %v6853_v29  ;;  %v3087_v24 = vpop.xlane.xlu1 %3086 }
 0x445   : > { %v5036_v18 = vpop.eup %5035  ;;  %5045 = vrsqrt.f32 %v3236_v50  ;;  %v3237_v28 = vmax.f32 %v3087_v24, 1e-24 }
 0x446   : > { %3618 = vst [vmem:[%s6729_s10 + $0x330] sm:$0xff] %v3490_v12  ;;  %v3491_v27 = vmul.f32 %v5036_v18, %v6861_v59  ;;  %v3097_v48 = vpop.xlane.xlu0 %3096 }
 0x447   : > { %v5038_v14 = vpop.eup %5037  ;;  %5047 = vrsqrt.f32 %v3237_v28  ;;  %v3242_v49 = vmax.f32 %v3097_v48, 1e-24 }
 0x448   : > { %3619 = vst [vmem:[%s6729_s10 + $0x338] sm:$0xff] %v3491_v27  ;;  %v3488_v34 = vmul.f32 %v5038_v14, %v6857_v44  ;;  %v3099_v43 = vpop.xlane.xlu1 %3098 }
 0x449   : > { %v5040_v37 = vpop.eup %5039  ;;  %5049 = vrsqrt.f32 %v3242_v49  ;;  %v3243_v29 = vmax.f32 %v3099_v43, 1e-24 }
 0x44a   : > { %3616 = vst [vmem:[%s6729_s10 + $0x320] sm:$0xff] %v3488_v34  ;;  %v3489_v38 = vmul.f32 %v5040_v37, %v6865_v63  ;;  %v3093_v11 = vpop.xlane.xlu0 %3092 }
 0x44b   : > { %v5042_v62 = vpop.eup %5041  ;;  %5051 = vrsqrt.f32 %v3243_v29  ;;  %v3240_v59 = vmax.f32 %v3093_v11, 1e-24 }
 0x44c   : > { %3617 = vst [vmem:[%s6729_s10 + $0x328] sm:$0xff] %v3489_v38  ;;  %v3494_v35 = vmul.f32 %v5042_v62, %v6877_v25  ;;  %v3095_v55 = vpop.xlane.xlu1 %3094 }
 0x44d   : > { %v5044_v33 = vpop.eup %5043  ;;  %5053 = vrsqrt.f32 %v3240_v59  ;;  %v3241_v44 = vmax.f32 %v3095_v55, 1e-24 }
 0x44e   : > { %3622 = vst [vmem:[%s6729_s10 + $0x350] sm:$0xff] %v3494_v35  ;;  %v3495_v8 = vmul.f32 %v5044_v33, %v6885_v32  ;;  %v3105_v36 = vpop.xlane.xlu0 %3104 }
 0x44f   : > { %v5046_v10 = vpop.eup %5045  ;;  %5055 = vrsqrt.f32 %v3241_v44  ;;  %v3246_v63 = vmax.f32 %v3105_v36, 1e-24 }
 0x450   : > { %3623 = vst [vmem:[%s6729_s10 + $0x358] sm:$0xff] %v3495_v8  ;;  %v3492_v21 = vmul.f32 %v5046_v10, %v6881_v53  ;;  %v3107_v15 = vpop.xlane.xlu1 %3106 }
 0x451   : > { %v5048_v3 = vpop.eup %5047  ;;  %5057 = vrsqrt.f32 %v3246_v63  ;;  %v3247_v25 = vmax.f32 %v3107_v15, 1e-24 }
 0x452   : > { %3620 = vst [vmem:[%s6729_s10 + $0x340] sm:$0xff] %v3492_v21  ;;  %v3493_v52 = vmul.f32 %v5048_v3, %v6889_v60  ;;  %v3101_v22 = vpop.xlane.xlu0 %3100 }
 0x453   : > { %v5050_v56 = vpop.eup %5049  ;;  %5059 = vrsqrt.f32 %v3247_v25  ;;  %v3244_v32 = vmax.f32 %v3101_v22, 1e-24 }
 0x454   : > { %3621 = vst [vmem:[%s6729_s10 + $0x348] sm:$0xff] %v3493_v52  ;;  %v3498_v51 = vmul.f32 %v5050_v56, %v6901_v0  ;;  %v3103_v20 = vpop.xlane.xlu1 %3102 }
 0x455   : > { %v5052_v46 = vpop.eup %5051  ;;  %5061 = vrsqrt.f32 %v3244_v32  ;;  %v3245_v53 = vmax.f32 %v3103_v20, 1e-24 }
 0x456   : > { %3626 = vst [vmem:[%s6729_s10 + $0x370] sm:$0xff] %v3498_v51  ;;  %v3499_v19 = vmul.f32 %v5052_v46, %v6909_v6  ;;  %v3113_v57 = vpop.xlane.xlu0 %3112 }
 0x457   : > { %v5054_v61 = vpop.eup %5053  ;;  %5063 = vrsqrt.f32 %v3245_v53  ;;  %v3250_v60 = vmax.f32 %v3113_v57, 1e-24 }
 0x458   : > { %3627 = vst [vmem:[%s6729_s10 + $0x378] sm:$0xff] %v3499_v19  ;;  %v3496_v39 = vmul.f32 %v5054_v61, %v6905_v58  ;;  %v3115_v54 = vpop.xlane.xlu1 %3114  ;;  %v7492_v19 = vld [vmem:[#allocation34_spill] sm:$0xff] }
 0x459   : > { %v5056_v4 = vpop.eup %5055  ;;  %5065 = vrsqrt.f32 %v3250_v60  ;;  %v3251_v0 = vmax.f32 %v3115_v54, 1e-24 }
 0x45a   : > { %3624 = vst [vmem:[%s6729_s10 + $0x360] sm:$0xff] %v3496_v39  ;;  %v3497_v7 = vmul.f32 %v5056_v4, %v6913_v40  ;;  %v3109_v50 = vpop.xlane.xlu0 %3108 }
 0x45b   : > { %v5058_v12 = vpop.eup %5057  ;;  %5067 = vrsqrt.f32 %v3251_v0  ;;  %v3248_v6 = vmax.f32 %v3109_v50, 1e-24 }
 0x45c   : > { %3625 = vst [vmem:[%s6729_s10 + $0x368] sm:$0xff] %v3497_v7  ;;  %v3502_v24 = vmul.f32 %v5058_v12, %v6925_v16  ;;  %v3111_v18 = vpop.xlane.xlu1 %3110 }
 0x45d   : > { %v5060_v28 = vpop.eup %5059  ;;  %5069 = vrsqrt.f32 %v3248_v6  ;;  %v3249_v58 = vmax.f32 %v3111_v18, 1e-24 }
 0x45e   : > { %3630 = vst [vmem:[%s6729_s10 + $0x390] sm:$0xff] %v3502_v24  ;;  %v3503_v27 = vmul.f32 %v5060_v28, %v6933_v31  ;;  %v3121_v48 = vpop.xlane.xlu0 %3120 }
 0x45f   : > { %v5062_v14 = vpop.eup %5061  ;;  %5071 = vrsqrt.f32 %v3249_v58  ;;  %v3254_v40 = vmax.f32 %v3121_v48, 1e-24 }
 0x460   : > { %3631 = vst [vmem:[%s6729_s10 + $0x398] sm:$0xff] %v3503_v27  ;;  %v3500_v49 = vmul.f32 %v5062_v14, %v6929_v1  ;;  %v3123_v34 = vpop.xlane.xlu1 %3122 }
 0x461   : > { %v5064_v43 = vpop.eup %5063  ;;  %5073 = vrsqrt.f32 %v3254_v40  ;;  %v3255_v16 = vmax.f32 %v3123_v34, 1e-24 }
 0x462   : > { %3628 = vst [vmem:[%s6729_s10 + $0x380] sm:$0xff] %v3500_v49  ;;  %v3501_v37 = vmul.f32 %v5064_v43, %v6937_v30  ;;  %v3117_v29 = vpop.xlane.xlu0 %3116 }
 0x463   : > { %v5066_v38 = vpop.eup %5065  ;;  %5075 = vrsqrt.f32 %v3255_v16  ;;  %v3252_v31 = vmax.f32 %v3117_v29, 1e-24 }
 0x464   : > { %3629 = vst [vmem:[%s6729_s10 + $0x388] sm:$0xff] %v3501_v37  ;;  %v3506_v11 = vmul.f32 %v5066_v38, %v6949_v42  ;;  %v3119_v62 = vpop.xlane.xlu1 %3118 }
 0x465   : > { %v5068_v59 = vpop.eup %5067  ;;  %5077 = vrsqrt.f32 %v3252_v31  ;;  %v3253_v1 = vmax.f32 %v3119_v62, 1e-24 }
 0x466   : > { %3634 = vst [vmem:[%s6729_s10 + $0x3b0] sm:$0xff] %v3506_v11  ;;  %v3507_v35 = vmul.f32 %v5068_v59, %v6957_v26 }
 0x467   : > { %v5070_v55 = vpop.eup %5069  ;;  %5079 = vrsqrt.f32 %v3253_v1  ;;  %v3125_v30 = vpop.xlane.xlu0 %3124 }
 0x468   : > { %3635 = vst [vmem:[%s6729_s10 + $0x3b8] sm:$0xff] %v3507_v35  ;;  %v3504_v33 = vmul.f32 %v5070_v55, %v6953_v23  ;;  %v3256_v44 = vmax.f32 %v3125_v30, 1e-24 }
 0x469   : > { %v5072_v8 = vpop.eup %5071  ;;  %v3127_v36 = vpop.xlane.xlu1 %3126 }
 0x46a   : > { %3632 = vst [vmem:[%s6729_s10 + $0x3a0] sm:$0xff] %v3504_v33  ;;  %v3505_v42 = vmul.f32 %v5072_v8, %v6961_v5  ;;  %5081 = vrsqrt.f32 %v3256_v44  ;;  %v3257_v10 = vmax.f32 %v3127_v36, 1e-24 }
 0x46b   : > { %v5074_v63 = vpop.eup %5073  ;;  %v3129_v21 = vpop.xlane.xlu0 %3128 }
 0x46c   : > { %3633 = vst [vmem:[%s6729_s10 + $0x3a8] sm:$0xff] %v3505_v42  ;;  %v3510_v26 = vmul.f32 %v5074_v63, %v6973_v41  ;;  %5083 = vrsqrt.f32 %v3257_v10  ;;  %v3258_v15 = vmax.f32 %v3129_v21, 1e-24 }
 0x46d   : > { %v5076_v23 = vpop.eup %5075  ;;  %v3131_v3 = vpop.xlane.xlu1 %3130 }
 0x46e   : > { %3638 = vst [vmem:[%s6729_s10 + $0x3d0] sm:$0xff] %v3510_v26  ;;  %v3511_v25 = vmul.f32 %v5076_v23, %v6981_v9  ;;  %5085 = vrsqrt.f32 %v3258_v15  ;;  %v3259_v5 = vmax.f32 %v3131_v3, 1e-24 }
 0x46f   : > { %v5078_v52 = vpop.eup %5077 }
 0x470   : > { %3639 = vst [vmem:[%s6729_s10 + $0x3d8] sm:$0xff] %v3511_v25  ;;  %v3508_v22 = vmul.f32 %v5078_v52, %v6977_v2  ;;  %5087 = vrsqrt.f32 %v3259_v5 }
 0x471   : > { %v5080_v41 = vpop.eup %5079 }
 0x472   : > { %3636 = vst [vmem:[%s6729_s10 + $0x3c0] sm:$0xff] %v3508_v22  ;;  %v3509_v56 = vmul.f32 %v5080_v41, %v6985_v45 }
 0x474   : > { %v5082_v32 = vpop.eup %5081  ;;  %3637 = vst [vmem:[%s6729_s10 + $0x3c8] sm:$0xff] %v3509_v56 }
 0x475   : > { %v3512_v51 = vmul.f32 %v5082_v32, %v6999_v47 }
 0x476   : > { %v5084_v9 = vpop.eup %5083 }
 0x477   : > { %3640 = vst [vmem:[%s6729_s10 + $0x3e0] sm:$0xff] %v3512_v51  ;;  %v3513_v20 = vmul.f32 %v5084_v9, %v7007_v17 }
 0x478   : > { %v5086_v46 = vpop.eup %5085 }
 0x479   : > { %3641 = vst [vmem:[%s6729_s10 + $0x3e8] sm:$0xff] %v3513_v20  ;;  %v3514_v53 = vmul.f32 %v5086_v46, %v6997_v13 }
 0x47a   : > { %v5088_v2 = vpop.eup %5087 }
 0x47b   : > { %3642 = vst [vmem:[%s6729_s10 + $0x3f0] sm:$0xff] %v3514_v53  ;;  %v3515_v57 = vmul.f32 %v5088_v2, %v7492_v19 }
 0x47d   : > { %3643 = vst [vmem:[%s6729_s10 + $0x3f8] sm:$0xff] %v3515_v57 }
 0x47e   : > { %s3844_s8 = sshll.u32 %s5343_s19, 13  ;;  %s3674_s20 = sshll.u32 %s6729_s10, 4  ;;  %s3675_s20 = int_to_ptr.vmem [resolvable:$true] %s3674_s20 }
 0x47f   : > { %s3657_s9 = scalar_lea.hbm %s7220_s4, %s3844_s8  ;;  %s5290_s11 = smov 8192  }
 0x480   : > { %p7493_p9 = scmp.ne.s32.totalorder %s7283_s27, 0  ;;  %s5291_s14 = smov 16384  }
 0x481   : > { %s5292_s7 = smov 64   ;;  %s5293_s6 = smov 128  }
 0x482   : > { %4615 = sst [smem:[#allocation14]] (%p7493_p9), %s5290_s11  ;;  %s5294_s19 = smov 8  }
 0x483   : > { %4616 = sst [smem:[#allocation14 + $0x1]] (%p7493_p9), %s5291_s14  ;;  %s5295_s13 = smov [#allocation13]  }
 0x484   : > { %4617 = sst [smem:[#allocation14 + $0x2]] (%p7493_p9), %s5292_s7  ;;  %s5296_s23 = smov 0  }
 0x485   : > { %4618 = sst [smem:[#allocation14 + $0x3]] (%p7493_p9), %s5293_s6 }
 0x486   : > { %4619 = sst [smem:[#allocation14 + $0x4]] (%p7493_p9), %s5293_s6 }
 0x487   : > { %4620 = sst [smem:[#allocation14 + $0x5]] (%p7493_p9), %s5294_s19 }
 0x488   : > { %4621 = dma.general (%p7493_p9), %s3675_s20, 16384, %s3657_s9, %s3645_s30, %s5295_s13, [#allocation14], %s5296_s23, 0  }
 0x489 PF: > { %s3702_s25 = sand.u32 1, %s5264_s15   ;;  %p7494_p10 = scmp.ne.s32.totalorder %s7284_s28, 0 }
 0x48a   : > { %s3703_s29 = scalar_lea.sflag [#allocation4], %s3702_s25 }
 0x48b   : > { %p4631_p1 = pnand %p3806_p4, %p7494_p10 }
 0x48d   : > { %5259 = dma.done.wait (!%p4631_p1), %s3703_s29, 16384  }
 0x48e   : > { %5261 = vsyncadd (!%p4631_p1), %s3703_s29, 4294950912  ;;  %p21_p2 = scmp.ge.s32.totalorder %s5347_s21, 4   ;;  %s7495_s15 = smov %s5268_s16 }
 0x48f   : > { %s7496_s16 = smov %s5272_s17  ;;  %s7497_s17 = smov %s5359_s24 }
 0x490   : > { %s7498_s18 = smov %s5347_s21  ;;  %23 = sbr.rel (!%p21_p2) target bundleno = 8 (0x8), region = 112 }
 0x497   :  { %3708 = vsyncpa [#allocation3], 1 }
 0x498   :  { %3710 = vsyncpa [#allocation3 + $0x1], 1 }
 0x499   :  { %3711 = vsyncpa [#allocation6], 1 }
 0x49a   :  { %3713 = vsyncpa [#allocation6 + $0x1], 1 }
 0x49b   :  { %3714 = vsyncpa [#allocation9], 1 }
 0x49c   :  { %3715 = vsyncpa [#allocation4], 1 }
 0x49d   :  { %3717 = vsyncpa [#allocation4 + $0x1], 1 }

</bundles_post_ra>
